<compile_context>
chip_gen: v5e
topology: v5e:2x2
jax: 0.10.0
libtpu: 0.0.40
codegen_flags: <defaults>
</compile_context>

<pallas_src>
import functools
import math

import jax
import jax.numpy as jnp
from jax import lax
from jax.experimental import pallas as pl
from jax.experimental.pallas import tpu as pltpu


# ----------------------------------------------------------------------------
# Small helpers
# ----------------------------------------------------------------------------
def _const_spec(arr):
    """Full-extent block that is identical for every grid step (weights)."""
    nd = arr.ndim
    return pl.BlockSpec(arr.shape, lambda *_, _nd=nd: (0,) * _nd)


# ----------------------------------------------------------------------------
# Kernel 1: fused init_norm + patch-embed matmul + pos-emb + post_emb_norm
# ----------------------------------------------------------------------------
def _embed_kernel(x_ref, ig_ref, ib_ref, w_ref, b_ref, pos_ref, pg_ref, pb_ref,
                  o_ref, *, eps):
    f32, bf16 = jnp.float32, jnp.bfloat16
    x = x_ref[0].astype(f32)                                     # (N, C*p*p)
    # per-sample LayerNorm over the whole (C,H,W) volume (== all N*Kp elements;
    # gamma/beta were permuted to the patchified layout in prepare_params)
    mu = jnp.mean(x, axis=(0, 1), keepdims=True)
    var = jnp.mean(jnp.square(x - mu), axis=(0, 1), keepdims=True)
    xn = (x - mu) * lax.rsqrt(var + eps) * ig_ref[...] + ib_ref[...]
    y = jnp.dot(xn.astype(bf16), w_ref[...], preferred_element_type=f32)
    y = y + b_ref[...] + pos_ref[...]
    mu2 = jnp.mean(y, axis=-1, keepdims=True)
    var2 = jnp.mean(jnp.square(y - mu2), axis=-1, keepdims=True)
    o_ref[0] = ((y - mu2) * lax.rsqrt(var2 + eps) * pg_ref[...]
                + pb_ref[...]).astype(o_ref.dtype)


def pallas_embed(patches, pp, eps=1e-5):
    B, N, Kp = patches.shape
    D = pp["patch_w"].shape[1]
    weights = (pp["init_g"], pp["init_b"], pp["patch_w"], pp["patch_b"],
               pp["pos_emb"], pp["post_norm_g"], pp["post_norm_b"])
    return pl.pallas_call(
        functools.partial(_embed_kernel, eps=eps),
        grid=(B,),
        in_specs=[pl.BlockSpec((1, N, Kp), lambda b: (b, 0, 0))]
                 + [_const_spec(w) for w in weights],
        out_specs=pl.BlockSpec((1, N, D), lambda b: (b, 0, 0)),
        out_shape=jax.ShapeDtypeStruct((B, N, D), jnp.float32),
        compiler_params=pltpu.CompilerParams(dimension_semantics=("parallel",)),
    )(patches, *weights)


# ----------------------------------------------------------------------------
# Kernel 2: ALL transformer blocks in one pallas_call (grid = (B, depth))
# ----------------------------------------------------------------------------
def _blocks_kernel(x_ref, ln1_g, ln1_b, w_qkv, b_qkv, w_o, b_o,
                   ln2_g, ln2_b, w_m1, b_m1, w_m2, b_m2,
                   hid_ref, acc_ref, attn_ref, *, heads, eps):
    f32, bf16 = jnp.float32, jnp.bfloat16
    d = pl.program_id(1)

    @pl.when(d == 0)
    def _():                                                     # new sample
        acc_ref[...] = x_ref[0].astype(f32)

    x = acc_ref[...]                                             # (N, D) f32
    D = x.shape[-1]
    hd = D // heads
    scale = 1.0 / math.sqrt(hd)

    # ---- LN1 + fused QKV projection (single wide MXU matmul) ----------------
    mu = jnp.mean(x, axis=-1, keepdims=True)
    var = jnp.mean(jnp.square(x - mu), axis=-1, keepdims=True)
    h = (x - mu) * lax.rsqrt(var + eps) * ln1_g[0] + ln1_b[0]
    qkv = jnp.dot(h.astype(bf16), w_qkv[0], preferred_element_type=f32) + b_qkv[0]

    # ---- per-head scaled-dot-product attention (scores are per-head anyway);
    #      head outputs are written into a VMEM buffer so a SINGLE (N,D)@(D,D)
    #      output projection follows --------------------------------------------
    for hh in range(heads):
        q = qkv[:, hh * hd:(hh + 1) * hd].astype(bf16)
        k = qkv[:, D + hh * hd:D + (hh + 1) * hd].astype(bf16)
        v = qkv[:, 2 * D + hh * hd:2 * D + (hh + 1) * hd].astype(bf16)
        s = lax.dot_general(q, k, (((1,), (1,)), ((), ())),
                            preferred_element_type=f32) * scale
        s = s - jnp.max(s, axis=-1, keepdims=True)
        p = jnp.exp(s)
        # approx reciprocal on the EUP; use an exact divide for bit-parity
        p = p * pl.reciprocal(jnp.sum(p, axis=-1, keepdims=True), approx=True)
        attn_ref[:, hh * hd:(hh + 1) * hd] = jnp.dot(
            p.astype(bf16), v, preferred_element_type=f32)

    x = x + jnp.dot(attn_ref[...].astype(bf16), w_o[0],
                    preferred_element_type=f32) + b_o[0]

    # ---- LN2 + MLP (tanh-GELU) + residual ------------------------------------
    mu = jnp.mean(x, axis=-1, keepdims=True)
    var = jnp.mean(jnp.square(x - mu), axis=-1, keepdims=True)
    h = (x - mu) * lax.rsqrt(var + eps) * ln2_g[0] + ln2_b[0]
    m = jnp.dot(h.astype(bf16), w_m1[0], preferred_element_type=f32) + b_m1[0]
    m = jax.nn.gelu(m, approximate=True)
    m = jnp.dot(m.astype(bf16), w_m2[0], preferred_element_type=f32) + b_m2[0]
    x = x + m

    acc_ref[...] = x                                             # carry to d+1
    hid_ref[0, 0] = x.astype(hid_ref.dtype)                      # layer_hiddens[d]


def pallas_transformer_stack(x_bnd, stacked, heads, eps=1e-5):
    """Run all `depth` blocks in one kernel; returns (depth, B, N, D) hiddens."""
    B, N, D = x_bnd.shape
    depth = stacked["w_qkv"].shape[0]
    names = ("ln1_g", "ln1_b", "w_qkv", "b_qkv", "w_o", "b_o",
             "ln2_g", "ln2_b", "w_m1", "b_m1", "w_m2", "b_m2")
    weights = tuple(stacked[n] for n in names)

    def wspec(arr):
        return pl.BlockSpec((1,) + arr.shape[1:], lambda b, d: (d, 0, 0))

    # TODO(synk): at real ViT sizes (N>=256, D>=768) add a KV/sequence tile and
    # move heads to a grid axis so the per-step VMEM stays within v7x's 64 MiB.
    return pl.pallas_call(
        functools.partial(_blocks_kernel, heads=heads, eps=eps),
        grid=(B, depth),
        in_specs=[pl.BlockSpec((1, N, D), lambda b, d: (b, 0, 0))]
                 + [wspec(w) for w in weights],
        out_specs=pl.BlockSpec((1, 1, N, D), lambda b, d: (d, b, 0, 0)),
        out_shape=jax.ShapeDtypeStruct((depth, B, N, D), jnp.float32),
        scratch_shapes=[pltpu.VMEM((N, D), jnp.float32),   # activation carry
                        pltpu.VMEM((N, D), jnp.float32)],  # attention buffer
        compiler_params=pltpu.CompilerParams(
            dimension_semantics=("parallel", "arbitrary")),
    )(x_bnd, *weights)


# ----------------------------------------------------------------------------
# Kernel 3: matmul + bias (conv-transpose 2x2/s2 as matmul), column-tiled
# ----------------------------------------------------------------------------
def _linear_kernel(a_ref, w_ref, b_ref, o_ref):
    a = a_ref[...].astype(jnp.bfloat16)
    o_ref[...] = (jnp.dot(a, w_ref[...], preferred_element_type=jnp.float32)
                  + b_ref[...]).astype(o_ref.dtype)


def pallas_linear(a, w, b):
    """Matmul + bias.  Wide outputs are split into 2 column tiles so the grid
    can shard across v7x's two TensorCores (one extra ~0.35us step elsewhere)."""
    M, K = a.shape
    _, Nc = w.shape
    bn = Nc // 2 if (Nc >= 512 and (Nc // 2) % 128 == 0) else Nc
    return pl.pallas_call(
        _linear_kernel,
        grid=(Nc // bn,),
        in_specs=[pl.BlockSpec((M, K), lambda j: (0, 0)),
                  pl.BlockSpec((K, bn), lambda j: (0, j)),
                  pl.BlockSpec((1, bn), lambda j: (0, j))],
        out_specs=pl.BlockSpec((M, bn), lambda j: (0, j)),
        out_shape=jax.ShapeDtypeStruct((M, Nc), jnp.float32),
        compiler_params=pltpu.CompilerParams(dimension_semantics=("parallel",)),
    )(a, w, b)


# ----------------------------------------------------------------------------
# Kernel 4: fused BatchNorm (batch stats) + GELU + conv-transpose matmul
# ----------------------------------------------------------------------------
def _bn_gelu_linear_kernel(x_ref, g_ref, b_ref, w_ref, wb_ref, o_ref, *, eps):
    f32, bf16 = jnp.float32, jnp.bfloat16
    x = x_ref[...].astype(f32)                                   # (rows, C)
    mean = jnp.mean(x, axis=0, keepdims=True)
    var = jnp.mean(jnp.square(x - mean), axis=0, keepdims=True)
    xn = (x - mean) * lax.rsqrt(var + eps) * g_ref[...] + b_ref[...]
    xg = jax.nn.gelu(xn, approximate=True)
    o_ref[...] = (jnp.dot(xg.astype(bf16), w_ref[...],
                          preferred_element_type=f32) + wb_ref[...]).astype(o_ref.dtype)


def pallas_bn_gelu_linear(x2d, gamma, beta, w, wb, eps=1e-5):
    # TODO(synk): PyTorch BatchNorm2d in eval() uses running stats; batch
    # statistics (training / default mode) are used here.
    M, C = x2d.shape
    _, Nc = w.shape
    return pl.pallas_call(
        functools.partial(_bn_gelu_linear_kernel, eps=eps),
        out_shape=jax.ShapeDtypeStruct((M, Nc), jnp.float32),
    )(x2d, gamma.reshape(1, C), beta.reshape(1, C), w, wb)


# ----------------------------------------------------------------------------
# Kernel 5: fused decoder tail (upsample + concat + fusion 1x1 + seg 1x1)
# ----------------------------------------------------------------------------
def _tail_kernel(f0_ref, f1_ref, f2_ref, f3_ref, f4_ref,
                 w0_ref, w1_ref, w2_ref, w3_ref, w4_ref, fb_ref,
                 u1_ref, u2_ref, u3_ref, swt_ref, sb_ref, o_ref):
    f32, bf16 = jnp.float32, jnp.bfloat16

    def proj(f_ref, w_ref):                                      # 1x1 conv slice
        return jnp.dot(f_ref[0].astype(bf16), w_ref[...],
                       preferred_element_type=f32)

    def up(u_ref, g):                                            # nearest upsample
        return jnp.dot(u_ref[...], g.astype(bf16), preferred_element_type=f32)

    h = proj(f0_ref, w0_ref)                                     # scale 1
    h = h + up(u1_ref, proj(f1_ref, w1_ref))                     # x2
    h = h + up(u2_ref, proj(f2_ref, w2_ref))                     # x4
    h = h + up(u3_ref, proj(f3_ref, w3_ref))                     # x8
    h = h + up(u2_ref, proj(f4_ref, w4_ref))                     # x4 (same sel.)
    h = h + fb_ref[...]                                          # (Hf*Wf, dim)
    # seg head emitted transposed -> lane-dense stores and NCHW-ready layout
    yt = lax.dot_general(swt_ref[...], h.astype(bf16),
                         (((1,), (1,)), ((), ())),
                         preferred_element_type=f32) + sb_ref[...]
    o_ref[0] = yt.astype(o_ref.dtype)                            # (nclass, Hf*Wf)


def pallas_decoder_tail(feats, pp):
    """feats: 5 un-upsampled channels-last maps, each (B, Hi*Wi, Ci)."""
    B = feats[0].shape[0]
    nclass = pp["seg_wt"].shape[0]
    hw = pp["u1"].shape[0]
    consts = (pp["fw0"], pp["fw1"], pp["fw2"], pp["fw3"], pp["fw4"],
              pp["fusion_b"], pp["u1"], pp["u2"], pp["u3"],
              pp["seg_wt"], pp["seg_bt"])
    feat_specs = [pl.BlockSpec((1,) + f.shape[1:], lambda b: (b, 0, 0))
                  for f in feats]
    return pl.pallas_call(
        _tail_kernel,
        grid=(B,),
        in_specs=feat_specs + [_const_spec(c) for c in consts],
        out_specs=pl.BlockSpec((1, nclass, hw), lambda b: (b, 0, 0)),
        out_shape=jax.ShapeDtypeStruct((B, nclass, hw), jnp.float32),
        compiler_params=pltpu.CompilerParams(dimension_semantics=("parallel",)),
    )(*feats, *consts)


# ----------------------------------------------------------------------------
# Plain-JAX glue (pure layout ops)
# ----------------------------------------------------------------------------
def pixel_shuffle_2x2(y2d, B, H, W):
    """(B*H*W, 4*Cout) ConvTranspose2d(k=2,s=2) matmul result -> (B,2H,2W,Cout)."""
    Cout = y2d.shape[1] // 4
    y = y2d.reshape(B, H, W, 2, 2, Cout).transpose(0, 1, 3, 2, 4, 5)
    return y.reshape(B, 2 * H, 2 * W, Cout)


def maxpool2x2(x_bhwc):
    B, H, W, C = x_bhwc.shape
    return jnp.max(x_bhwc.reshape(B, H // 2, 2, W // 2, 2, C), axis=(2, 4))


# ----------------------------------------------------------------------------
# JEPASegmentor forward
# ----------------------------------------------------------------------------
def jepa_segmentor_forward(params, datacube, cfg):
    p = cfg["patch_size"]
    dim = cfg["dim"]
    heads = cfg["heads"]
    feature_maps = cfg["feature_maps"]

    cube = jnp.squeeze(datacube)
    B, C, H, W = cube.shape
    Hp, Wp = H // p, W // p
    N = Hp * Wp

    # patchify (pure layout; init_norm itself is fused into the embed kernel)
    patches = (cube.reshape(B, C, Hp, p, Wp, p)
                   .transpose(0, 2, 4, 1, 3, 5)
                   .reshape(B, N, C * p * p))
    h = pallas_embed(patches, params)                            # (B, N, dim)

    # student_encoder.forward(return_hiddens=True): all blocks in ONE kernel
    hiddens = pallas_transformer_stack(h, params["blocks"], heads)
    enc_feats = [hiddens[i] for i in range(hiddens.shape[0]) if i in feature_maps]

    # fpn1: ConvT(2,2) -> BN -> GELU -> ConvT(2,2)
    f0 = pallas_linear(enc_feats[0].reshape(B * N, dim),
                       params["fpn1_ct1_w"], params["fpn1_ct1_b"])
    f0 = pixel_shuffle_2x2(f0, B, Hp, Wp)                        # (B,2Hp,2Wp,8d)
    f0 = pallas_bn_gelu_linear(f0.reshape(B * 4 * N, 8 * dim),
                               params["fpn1_bn_g"], params["fpn1_bn_b"],
                               params["fpn1_ct2_w"], params["fpn1_ct2_b"])
    f0 = pixel_shuffle_2x2(f0, B, 2 * Hp, 2 * Wp)                # (B,4Hp,4Wp,4d)

    # fpn2: ConvT(2,2)
    f1 = pallas_linear(enc_feats[1].reshape(B * N, dim),
                       params["fpn2_ct_w"], params["fpn2_ct_b"])
    f1 = pixel_shuffle_2x2(f1, B, Hp, Wp)                        # (B,2Hp,2Wp,4d)

    # fpn3 / fpn5: identity; fpn4: 2x2 maxpool
    f2 = enc_feats[2]                                            # (B, N, dim)
    f3 = maxpool2x2(enc_feats[3].reshape(B, Hp, Wp, dim)
                    ).reshape(B, (Hp // 2) * (Wp // 2), dim)
    f4 = enc_feats[4]

    Hf, Wf = 4 * Hp, 4 * Wp
    tail_feats = [f0.reshape(B, Hf * Wf, 4 * dim),
                  f1.reshape(B, (2 * Hp) * (2 * Wp), 4 * dim),
                  f2, f3, f4]
    logits = pallas_decoder_tail(tail_feats, params)             # (B, ncls, Hf*Wf)
    return logits.reshape(B, -1, Hf, Wf)                         # NCHW, no transpose


# ----------------------------------------------------------------------------
# Deterministic parameter construction + one-time kernel-ready preparation
# ----------------------------------------------------------------------------
def init_params(key, cfg):
    dim = cfg["dim"]
    C, H, W = cfg["C"], cfg["H"], cfg["W"]
    p = cfg["patch_size"]
    N = (H // p) * (W // p)
    depth = cfg["depth"]
    mlp = cfg["mlp_hidden"]
    nclass = cfg["num_classes"]
    chan_mult = len(cfg["feature_maps"]) + 6

    keys = iter(jax.random.split(key, 64))

    def nrm(shape):
        return jax.random.normal(next(keys), shape, jnp.float32) * 0.02

    params = {
        "init_norm_g": jnp.ones((C * H * W,), jnp.float32),
        "init_norm_b": jnp.zeros((C * H * W,), jnp.float32),
        "patch_w": nrm((C * p * p, dim)),
        "patch_b": jnp.zeros((dim,), jnp.float32),
        "pos_emb": nrm((1, N, dim)),
        "post_norm_g": jnp.ones((dim,), jnp.float32),
        "post_norm_b": jnp.zeros((dim,), jnp.float32),
        "fpn1_ct1_w": nrm((dim, 2, 2, dim * 8)),
        "fpn1_ct1_b": jnp.zeros((dim * 8,), jnp.float32),
        "fpn1_bn_g": jnp.ones((dim * 8,), jnp.float32),
        "fpn1_bn_b": jnp.zeros((dim * 8,), jnp.float32),
        "fpn1_ct2_w": nrm((dim * 8, 2, 2, dim * 4)),
        "fpn1_ct2_b": jnp.zeros((dim * 4,), jnp.float32),
        "fpn2_ct_w": nrm((dim, 2, 2, dim * 4)),
        "fpn2_ct_b": jnp.zeros((dim * 4,), jnp.float32),
        "fusion_w": nrm((dim * chan_mult, dim)),
        "fusion_b": jnp.zeros((dim,), jnp.float32),
        "seg_w": nrm((dim, nclass)),
        "seg_b": jnp.zeros((nclass,), jnp.float32),
    }
    blocks = []
    for _ in range(depth):
        blocks.append({
            "ln1_g": jnp.ones((dim,), jnp.float32),
            "ln1_b": jnp.zeros((dim,), jnp.float32),
            "w_qkv": nrm((dim, 3 * dim)),
            "b_qkv": jnp.zeros((3 * dim,), jnp.float32),
            "w_o": nrm((dim, dim)),
            "b_o": jnp.zeros((dim,), jnp.float32),
            "ln2_g": jnp.ones((dim,), jnp.float32),
            "ln2_b": jnp.zeros((dim,), jnp.float32),
            "w_m1": nrm((dim, mlp)),
            "b_m1": jnp.zeros((mlp,), jnp.float32),
            "w_m2": nrm((mlp, dim)),
            "b_m2": jnp.zeros((dim,), jnp.float32),
        })
    params["blocks"] = blocks
    return params


def prepare_params(params, cfg):
    """One-time, outside the jit hot path: cast matmul weights to bf16, stack
    transformer-block weights along a depth axis, permute init_norm affine to
    the patchified layout, build the decoder-tail upsample selection matrices,
    and pre-transpose the seg head for lane-dense output."""
    bf16 = jnp.bfloat16
    p = cfg["patch_size"]
    C, H, W = cfg["C"], cfg["H"], cfg["W"]
    dim = cfg["dim"]
    Hp, Wp = H // p, W // p

    def patchify_param(v):
        return (v.reshape(C, Hp, p, Wp, p).transpose(1, 3, 0, 2, 4)
                 .reshape(Hp * Wp, C * p * p))

    pp = {
        "init_g": patchify_param(params["init_norm_g"]),
        "init_b": patchify_param(params["init_norm_b"]),
        "patch_w": params["patch_w"].astype(bf16),
        "patch_b": params["patch_b"].reshape(1, -1),
        "pos_emb": params["pos_emb"][0],
        "post_norm_g": params["post_norm_g"].reshape(1, -1),
        "post_norm_b": params["post_norm_b"].reshape(1, -1),
        "fpn1_bn_g": params["fpn1_bn_g"],
        "fpn1_bn_b": params["fpn1_bn_b"],
    }

    def ct(w, b):
        # TODO(synk): raw PyTorch ConvTranspose2d weights are (Cin,Cout,kh,kw)
        # and must be permuted to (Cin,kh,kw,Cout) before this reshape.
        cin, _, _, cout = w.shape
        return (w.reshape(cin, 4 * cout).astype(bf16),
                jnp.tile(b, 4).reshape(1, 4 * cout))

    pp["fpn1_ct1_w"], pp["fpn1_ct1_b"] = ct(params["fpn1_ct1_w"], params["fpn1_ct1_b"])
    pp["fpn1_ct2_w"], pp["fpn1_ct2_b"] = ct(params["fpn1_ct2_w"], params["fpn1_ct2_b"])
    pp["fpn2_ct_w"], pp["fpn2_ct_b"] = ct(params["fpn2_ct_w"], params["fpn2_ct_b"])

    # transformer blocks: stack every weight on a leading depth axis
    def stack(name, prep):
        return jnp.stack([prep(blk[name]) for blk in params["blocks"]])

    row = lambda v: v.reshape(1, -1)
    pp["blocks"] = {
        "ln1_g": stack("ln1_g", row), "ln1_b": stack("ln1_b", row),
        "w_qkv": stack("w_qkv", lambda w: w.astype(bf16)),
        "b_qkv": stack("b_qkv", row),
        "w_o": stack("w_o", lambda w: w.astype(bf16)),
        "b_o": stack("b_o", row),
        "ln2_g": stack("ln2_g", row), "ln2_b": stack("ln2_b", row),
        "w_m1": stack("w_m1", lambda w: w.astype(bf16)),
        "b_m1": stack("b_m1", row),
        "w_m2": stack("w_m2", lambda w: w.astype(bf16)),
        "b_m2": stack("b_m2", row),
    }

    # decoder tail: fusion weight split per feature map (concat channel order),
    # one-hot nearest-upsample selection matrices, transposed seg head.
    splits = [4 * dim, 4 * dim, dim, dim, dim]
    offs = [0]
    for s in splits:
        offs.append(offs[-1] + s)
    fw = params["fusion_w"].astype(bf16)
    for i in range(5):
        pp[f"fw{i}"] = fw[offs[i]:offs[i + 1]]
    pp["fusion_b"] = params["fusion_b"].reshape(1, -1)

    Hf, Wf = 4 * Hp, 4 * Wp

    def upsel(scale):
        idx = jnp.arange(Hf * Wf)
        hh, ww = idx // Wf, idx % Wf
        src = (hh // scale) * (Wf // scale) + (ww // scale)
        return jax.nn.one_hot(src, (Hf // scale) * (Wf // scale), dtype=bf16)

    pp["u1"] = upsel(2)
    pp["u2"] = upsel(4)          # reused for both 4x-scale identity maps
    pp["u3"] = upsel(8)

    pp["seg_wt"] = params["seg_w"].T.astype(bf16)                # (nclass, dim)
    pp["seg_bt"] = params["seg_b"].reshape(-1, 1)                # (nclass, 1)
    return pp


# ----------------------------------------------------------------------------
if __name__ == "__main__":
    cfg = dict(
        B=2, C=4, H=16, W=16,
        patch_size=4,
        dim=32, heads=2, depth=5, mlp_hidden=64,
        feature_maps=(0, 1, 2, 3, 4),
        num_classes=3,
    )

    key = jax.random.PRNGKey(0)
    k_param, k_data = jax.random.split(key)
    raw_params = init_params(k_param, cfg)
    params = prepare_params(raw_params, cfg)                     # one-time prep
    datacube = jax.random.normal(
        k_data, (cfg["B"], cfg["C"], cfg["H"], cfg["W"]), jnp.float32)

    fwd = jax.jit(functools.partial(jepa_segmentor_forward, cfg=cfg))
    logits = fwd(params, datacube)
    jax.block_until_ready(logits)

    # Expected output: (B, num_classes, 4*H/patch, 4*W/patch) = (2, 3, 16, 16)
    assert logits.shape == (cfg["B"], cfg["num_classes"],
                            4 * cfg["H"] // cfg["patch_size"],
                            4 * cfg["W"] // cfg["patch_size"])
    assert bool(jnp.all(jnp.isfinite(logits)))
    print("KERNEL_OK")
</pallas_src>

<mosaic_0001>
module attributes {stable_mosaic.version = 11 : i64} {
  func.func @_embed_kernel(%arg0: i32, %arg1: memref<1x16x64xf32, #tpu.memory_space<vmem>>, %arg2: memref<16x64xf32, #tpu.memory_space<vmem>>, %arg3: memref<16x64xf32, #tpu.memory_space<vmem>>, %arg4: memref<64x32xbf16, #tpu.memory_space<vmem>>, %arg5: memref<1x32xf32, #tpu.memory_space<vmem>>, %arg6: memref<16x32xf32, #tpu.memory_space<vmem>>, %arg7: memref<1x32xf32, #tpu.memory_space<vmem>>, %arg8: memref<1x32xf32, #tpu.memory_space<vmem>>, %arg9: memref<1x16x32xf32, #tpu.memory_space<vmem>>) attributes {dimension_semantics = [#tpu.dimension_semantics<parallel>], iteration_bounds = array<i64: 2>, scalar_prefetch = 0 : i64, scratch_operands = 0 : i64, tpu.core_type = #tpu.core_type<tc>, window_params = [{transform_indices = @transform_0, window_bounds = array<i64: 1, 16, 64>}, {pipeline_mode = #tpu.pipeline_mode<synchronous>, transform_indices = @transform_1, window_bounds = array<i64: 16, 64>}, {pipeline_mode = #tpu.pipeline_mode<synchronous>, transform_indices = @transform_2, window_bounds = array<i64: 16, 64>}, {pipeline_mode = #tpu.pipeline_mode<synchronous>, transform_indices = @transform_3, window_bounds = array<i64: 64, 32>}, {pipeline_mode = #tpu.pipeline_mode<synchronous>, transform_indices = @transform_4, window_bounds = array<i64: 1, 32>}, {pipeline_mode = #tpu.pipeline_mode<synchronous>, transform_indices = @transform_5, window_bounds = array<i64: 16, 32>}, {pipeline_mode = #tpu.pipeline_mode<synchronous>, transform_indices = @transform_6, window_bounds = array<i64: 1, 32>}, {pipeline_mode = #tpu.pipeline_mode<synchronous>, transform_indices = @transform_7, window_bounds = array<i64: 1, 32>}, {transform_indices = @transform_8, window_bounds = array<i64: 1, 16, 32>}]} {
    %c0 = arith.constant 0 : index
    %c0_0 = arith.constant 0 : index
    %c0_1 = arith.constant 0 : index
    %0 = vector.load %arg1[%c0, %c0_0, %c0_1] : memref<1x16x64xf32, #tpu.memory_space<vmem>>, vector<1x16x64xf32>
    %1 = vector.shape_cast %0 : vector<1x16x64xf32> to vector<16x64xf32>
    %2 = vector.shape_cast %1 : vector<16x64xf32> to vector<1x16x64xf32>
    %cst = arith.constant dense<0.000000e+00> : vector<1xf32>
    %3 = vector.multi_reduction <add>, %2, %cst [1, 2] : vector<1x16x64xf32> to vector<1xf32>
    %4 = vector.shape_cast %3 : vector<1xf32> to vector<1x1x1xf32>
    %5 = vector.extract %4[0, 0, 0] : f32 from vector<1x1x1xf32>
    %6 = vector.broadcast %5 : f32 to vector<1x1xf32>
    %cst_2 = arith.constant 1.024000e+03 : f32
    %7 = vector.broadcast %cst_2 : f32 to vector<1x1xf32>
    %8 = arith.divf %6, %7 : vector<1x1xf32>
    %9 = vector.broadcast %8 : vector<1x1xf32> to vector<16x64xf32>
    %10 = arith.subf %1, %9 : vector<16x64xf32>
    %11 = arith.mulf %10, %10 : vector<16x64xf32>
    %12 = vector.shape_cast %11 : vector<16x64xf32> to vector<1x16x64xf32>
    %cst_3 = arith.constant dense<0.000000e+00> : vector<1xf32>
    %13 = vector.multi_reduction <add>, %12, %cst_3 [1, 2] : vector<1x16x64xf32> to vector<1xf32>
    %14 = vector.shape_cast %13 : vector<1xf32> to vector<1x1x1xf32>
    %15 = vector.extract %14[0, 0, 0] : f32 from vector<1x1x1xf32>
    %16 = vector.broadcast %15 : f32 to vector<1x1xf32>
    %cst_4 = arith.constant 1.024000e+03 : f32
    %17 = vector.broadcast %cst_4 : f32 to vector<1x1xf32>
    %18 = arith.divf %16, %17 : vector<1x1xf32>
    %19 = vector.broadcast %8 : vector<1x1xf32> to vector<16x64xf32>
    %20 = arith.subf %1, %19 : vector<16x64xf32>
    %cst_5 = arith.constant 9.99999974E-6 : f32
    %21 = vector.broadcast %cst_5 : f32 to vector<1x1xf32>
    %22 = arith.addf %18, %21 : vector<1x1xf32>
    %23 = math.rsqrt %22 : vector<1x1xf32>
    %24 = vector.broadcast %23 : vector<1x1xf32> to vector<16x64xf32>
    %25 = arith.mulf %20, %24 : vector<16x64xf32>
    %c0_6 = arith.constant 0 : index
    %c0_7 = arith.constant 0 : index
    %26 = vector.load %arg2[%c0_6, %c0_7] : memref<16x64xf32, #tpu.memory_space<vmem>>, vector<16x64xf32>
    %27 = arith.mulf %25, %26 : vector<16x64xf32>
    %c0_8 = arith.constant 0 : index
    %c0_9 = arith.constant 0 : index
    %28 = vector.load %arg3[%c0_8, %c0_9] : memref<16x64xf32, #tpu.memory_space<vmem>>, vector<16x64xf32>
    %29 = arith.addf %27, %28 : vector<16x64xf32>
    %30 = arith.truncf %29 : vector<16x64xf32> to vector<16x64xbf16>
    %c0_10 = arith.constant 0 : index
    %c0_11 = arith.constant 0 : index
    %31 = vector.load %arg4[%c0_10, %c0_11] : memref<64x32xbf16, #tpu.memory_space<vmem>>, vector<64x32xbf16>
    %cst_12 = arith.constant dense<0.000000e+00> : vector<16x32xf32>
    %32 = tpu.matmul %30, %31, %cst_12 {dimension_numbers = #tpu.dot_dimension_numbers<[1], [0], [0], [1], [0, 0, 1, 1], [], []>} : vector<16x64xbf16>, vector<64x32xbf16>, vector<16x32xf32> -> vector<16x32xf32>
    %c0_13 = arith.constant 0 : index
    %c0_14 = arith.constant 0 : index
    %33 = vector.load %arg5[%c0_13, %c0_14] : memref<1x32xf32, #tpu.memory_space<vmem>>, vector<1x32xf32>
    %34 = vector.broadcast %33 : vector<1x32xf32> to vector<16x32xf32>
    %35 = arith.addf %32, %34 : vector<16x32xf32>
    %c0_15 = arith.constant 0 : index
    %c0_16 = arith.constant 0 : index
    %36 = vector.load %arg6[%c0_15, %c0_16] : memref<16x32xf32, #tpu.memory_space<vmem>>, vector<16x32xf32>
    %37 = arith.addf %35, %36 : vector<16x32xf32>
    %cst_17 = arith.constant dense<0.000000e+00> : vector<16xf32>
    %38 = vector.multi_reduction <add>, %37, %cst_17 [1] : vector<16x32xf32> to vector<16xf32>
    %39 = vector.shape_cast %38 : vector<16xf32> to vector<16x1xf32>
    %cst_18 = arith.constant 3.200000e+01 : f32
    %40 = vector.broadcast %cst_18 : f32 to vector<16x1xf32>
    %41 = arith.divf %39, %40 : vector<16x1xf32>
    %42 = vector.broadcast %41 : vector<16x1xf32> to vector<16x32xf32>
    %43 = arith.subf %37, %42 : vector<16x32xf32>
    %44 = arith.mulf %43, %43 : vector<16x32xf32>
    %cst_19 = arith.constant dense<0.000000e+00> : vector<16xf32>
    %45 = vector.multi_reduction <add>, %44, %cst_19 [1] : vector<16x32xf32> to vector<16xf32>
    %46 = vector.shape_cast %45 : vector<16xf32> to vector<16x1xf32>
    %cst_20 = arith.constant 3.200000e+01 : f32
    %47 = vector.broadcast %cst_20 : f32 to vector<16x1xf32>
    %48 = arith.divf %46, %47 : vector<16x1xf32>
    %49 = vector.broadcast %41 : vector<16x1xf32> to vector<16x32xf32>
    %50 = arith.subf %37, %49 : vector<16x32xf32>
    %cst_21 = arith.constant 9.99999974E-6 : f32
    %51 = vector.broadcast %cst_21 : f32 to vector<16x1xf32>
    %52 = arith.addf %48, %51 : vector<16x1xf32>
    %53 = math.rsqrt %52 : vector<16x1xf32>
    %54 = vector.broadcast %53 : vector<16x1xf32> to vector<16x32xf32>
    %55 = arith.mulf %50, %54 : vector<16x32xf32>
    %c0_22 = arith.constant 0 : index
    %c0_23 = arith.constant 0 : index
    %56 = vector.load %arg7[%c0_22, %c0_23] : memref<1x32xf32, #tpu.memory_space<vmem>>, vector<1x32xf32>
    %57 = vector.broadcast %56 : vector<1x32xf32> to vector<16x32xf32>
    %58 = arith.mulf %55, %57 : vector<16x32xf32>
    %c0_24 = arith.constant 0 : index
    %c0_25 = arith.constant 0 : index
    %59 = vector.load %arg8[%c0_24, %c0_25] : memref<1x32xf32, #tpu.memory_space<vmem>>, vector<1x32xf32>
    %60 = vector.broadcast %59 : vector<1x32xf32> to vector<16x32xf32>
    %61 = arith.addf %58, %60 : vector<16x32xf32>
    %c0_26 = arith.constant 0 : index
    %c0_27 = arith.constant 0 : index
    %c0_28 = arith.constant 0 : index
    %62 = vector.load %arg9[%c0_26, %c0_27, %c0_28] : memref<1x16x32xf32, #tpu.memory_space<vmem>>, vector<1x16x32xf32>
    %63 = vector.shape_cast %62 : vector<1x16x32xf32> to vector<16x32xf32>
    %64 = vector.shape_cast %61 : vector<16x32xf32> to vector<1x16x32xf32>
    tpu.vector_store %arg9[%c0_26, %c0_27, %c0_28], %64 {strides = array<i32>} : memref<1x16x32xf32, #tpu.memory_space<vmem>>, vector<1x16x32xf32>,
    return
  }
  func.func @transform_0(%arg0: i32) -> (i32, i32, i32) {
    %c0_i32 = arith.constant 0 : i32
    %c0_i32_0 = arith.constant 0 : i32
    %c0_i32_1 = arith.constant 0 : i32
    return %arg0, %c0_i32, %c0_i32_0 : i32, i32, i32
  }
  func.func @transform_1(%arg0: i32) -> (i32, i32) {
    %c0_i32 = arith.constant 0 : i32
    %c0_i32_0 = arith.constant 0 : i32
    %c0_i32_1 = arith.constant 0 : i32
    return %c0_i32, %c0_i32_0 : i32, i32
  }
  func.func @transform_2(%arg0: i32) -> (i32, i32) {
    %c0_i32 = arith.constant 0 : i32
    %c0_i32_0 = arith.constant 0 : i32
    %c0_i32_1 = arith.constant 0 : i32
    return %c0_i32, %c0_i32_0 : i32, i32
  }
  func.func @transform_3(%arg0: i32) -> (i32, i32) {
    %c0_i32 = arith.constant 0 : i32
    %c0_i32_0 = arith.constant 0 : i32
    %c0_i32_1 = arith.constant 0 : i32
    return %c0_i32, %c0_i32_0 : i32, i32
  }
  func.func @transform_4(%arg0: i32) -> (i32, i32) {
    %c0_i32 = arith.constant 0 : i32
    %c0_i32_0 = arith.constant 0 : i32
    %c0_i32_1 = arith.constant 0 : i32
    return %c0_i32, %c0_i32_0 : i32, i32
  }
  func.func @transform_5(%arg0: i32) -> (i32, i32) {
    %c0_i32 = arith.constant 0 : i32
    %c0_i32_0 = arith.constant 0 : i32
    %c0_i32_1 = arith.constant 0 : i32
    return %c0_i32, %c0_i32_0 : i32, i32
  }
  func.func @transform_6(%arg0: i32) -> (i32, i32) {
    %c0_i32 = arith.constant 0 : i32
    %c0_i32_0 = arith.constant 0 : i32
    %c0_i32_1 = arith.constant 0 : i32
    return %c0_i32, %c0_i32_0 : i32, i32
  }
  func.func @transform_7(%arg0: i32) -> (i32, i32) {
    %c0_i32 = arith.constant 0 : i32
    %c0_i32_0 = arith.constant 0 : i32
    %c0_i32_1 = arith.constant 0 : i32
    return %c0_i32, %c0_i32_0 : i32, i32
  }
  func.func @transform_8(%arg0: i32) -> (i32, i32, i32) {
    %c0_i32 = arith.constant 0 : i32
    %c0_i32_0 = arith.constant 0 : i32
    %c0_i32_1 = arith.constant 0 : i32
    return %arg0, %c0_i32, %c0_i32_0 : i32, i32, i32
  }
}

module attributes {stable_mosaic.version = 11 : i64} {
  func.func @_blocks_kernel(%arg0: i32, %arg1: i32, %arg2: memref<1x16x32xf32, #tpu.memory_space<vmem>>, %arg3: memref<1x1x32xf32, #tpu.memory_space<vmem>>, %arg4: memref<1x1x32xf32, #tpu.memory_space<vmem>>, %arg5: memref<1x32x96xbf16, #tpu.memory_space<vmem>>, %arg6: memref<1x1x96xf32, #tpu.memory_space<vmem>>, %arg7: memref<1x32x32xbf16, #tpu.memory_space<vmem>>, %arg8: memref<1x1x32xf32, #tpu.memory_space<vmem>>, %arg9: memref<1x1x32xf32, #tpu.memory_space<vmem>>, %arg10: memref<1x1x32xf32, #tpu.memory_space<vmem>>, %arg11: memref<1x32x64xbf16, #tpu.memory_space<vmem>>, %arg12: memref<1x1x64xf32, #tpu.memory_space<vmem>>, %arg13: memref<1x64x32xbf16, #tpu.memory_space<vmem>>, %arg14: memref<1x1x32xf32, #tpu.memory_space<vmem>>, %arg15: memref<1x1x16x32xf32, #tpu.memory_space<vmem>>, %arg16: memref<16x32xf32, #tpu.memory_space<vmem>>, %arg17: memref<16x32xf32, #tpu.memory_space<vmem>>) attributes {dimension_semantics = [#tpu.dimension_semantics<parallel>, #tpu.dimension_semantics<arbitrary>], iteration_bounds = array<i64: 2, 5>, scalar_prefetch = 0 : i64, scratch_operands = 2 : i64, tpu.core_type = #tpu.core_type<tc>, window_params = [{transform_indices = @transform_0, window_bounds = array<i64: 1, 16, 32>}, {transform_indices = @transform_1, window_bounds = array<i64: 1, 1, 32>}, {transform_indices = @transform_2, window_bounds = array<i64: 1, 1, 32>}, {transform_indices = @transform_3, window_bounds = array<i64: 1, 32, 96>}, {transform_indices = @transform_4, window_bounds = array<i64: 1, 1, 96>}, {transform_indices = @transform_5, window_bounds = array<i64: 1, 32, 32>}, {transform_indices = @transform_6, window_bounds = array<i64: 1, 1, 32>}, {transform_indices = @transform_7, window_bounds = array<i64: 1, 1, 32>}, {transform_indices = @transform_8, window_bounds = array<i64: 1, 1, 32>}, {transform_indices = @transform_9, window_bounds = array<i64: 1, 32, 64>}, {transform_indices = @transform_10, window_bounds = array<i64: 1, 1, 64>}, {transform_indices = @transform_11, window_bounds = array<i64: 1, 64, 32>}, {transform_indices = @transform_12, window_bounds = array<i64: 1, 1, 32>}, {transform_indices = @transform_13, window_bounds = array<i64: 1, 1, 16, 32>}]} {
    %c0_i32 = arith.constant 0 : i32
    %0 = arith.cmpi eq, %arg1, %c0_i32 : i32
    %1 = arith.extui %0 : i1 to i32
    %c0_i32_0 = arith.constant 0 : i32
    %2 = arith.cmpi ne, %1, %c0_i32_0 : i32
    scf.if %2 {
      %c0_76 = arith.constant 0 : index
      %c0_77 = arith.constant 0 : index
      %c0_78 = arith.constant 0 : index
      %152 = vector.load %arg2[%c0_76, %c0_77, %c0_78] : memref<1x16x32xf32, #tpu.memory_space<vmem>>, vector<1x16x32xf32>
      %153 = vector.shape_cast %152 : vector<1x16x32xf32> to vector<16x32xf32>
      %c0_79 = arith.constant 0 : index
      %c0_80 = arith.constant 0 : index
      %154 = vector.load %arg16[%c0_79, %c0_80] : memref<16x32xf32, #tpu.memory_space<vmem>>, vector<16x32xf32>
      tpu.vector_store %arg16[%c0_79, %c0_80], %153 {strides = array<i32>} : memref<16x32xf32, #tpu.memory_space<vmem>>, vector<16x32xf32>,
    } else {
    }
    %c0 = arith.constant 0 : index
    %c0_1 = arith.constant 0 : index
    %3 = vector.load %arg16[%c0, %c0_1] : memref<16x32xf32, #tpu.memory_space<vmem>>, vector<16x32xf32>
    %cst = arith.constant dense<0.000000e+00> : vector<16xf32>
    %4 = vector.multi_reduction <add>, %3, %cst [1] : vector<16x32xf32> to vector<16xf32>
    %5 = vector.shape_cast %4 : vector<16xf32> to vector<16x1xf32>
    %cst_2 = arith.constant 3.200000e+01 : f32
    %6 = vector.broadcast %cst_2 : f32 to vector<16x1xf32>
    %7 = arith.divf %5, %6 : vector<16x1xf32>
    %8 = vector.broadcast %7 : vector<16x1xf32> to vector<16x32xf32>
    %9 = arith.subf %3, %8 : vector<16x32xf32>
    %10 = arith.mulf %9, %9 : vector<16x32xf32>
    %cst_3 = arith.constant dense<0.000000e+00> : vector<16xf32>
    %11 = vector.multi_reduction <add>, %10, %cst_3 [1] : vector<16x32xf32> to vector<16xf32>
    %12 = vector.shape_cast %11 : vector<16xf32> to vector<16x1xf32>
    %cst_4 = arith.constant 3.200000e+01 : f32
    %13 = vector.broadcast %cst_4 : f32 to vector<16x1xf32>
    %14 = arith.divf %12, %13 : vector<16x1xf32>
    %15 = vector.broadcast %7 : vector<16x1xf32> to vector<16x32xf32>
    %16 = arith.subf %3, %15 : vector<16x32xf32>
    %cst_5 = arith.constant 9.99999974E-6 : f32
    %17 = vector.broadcast %cst_5 : f32 to vector<16x1xf32>
    %18 = arith.addf %14, %17 : vector<16x1xf32>
    %19 = math.rsqrt %18 : vector<16x1xf32>
    %20 = vector.broadcast %19 : vector<16x1xf32> to vector<16x32xf32>
    %21 = arith.mulf %16, %20 : vector<16x32xf32>
    %c0_6 = arith.constant 0 : index
    %c0_7 = arith.constant 0 : index
    %c0_8 = arith.constant 0 : index
    %22 = vector.load %arg3[%c0_6, %c0_7, %c0_8] : memref<1x1x32xf32, #tpu.memory_space<vmem>>, vector<1x1x32xf32>
    %23 = vector.shape_cast %22 : vector<1x1x32xf32> to vector<1x32xf32>
    %24 = vector.broadcast %23 : vector<1x32xf32> to vector<16x32xf32>
    %25 = arith.mulf %21, %24 : vector<16x32xf32>
    %c0_9 = arith.constant 0 : index
    %c0_10 = arith.constant 0 : index
    %c0_11 = arith.constant 0 : index
    %26 = vector.load %arg4[%c0_9, %c0_10, %c0_11] : memref<1x1x32xf32, #tpu.memory_space<vmem>>, vector<1x1x32xf32>
    %27 = vector.shape_cast %26 : vector<1x1x32xf32> to vector<1x32xf32>
    %28 = vector.broadcast %27 : vector<1x32xf32> to vector<16x32xf32>
    %29 = arith.addf %25, %28 : vector<16x32xf32>
    %30 = arith.truncf %29 : vector<16x32xf32> to vector<16x32xbf16>
    %c0_12 = arith.constant 0 : index
    %c0_13 = arith.constant 0 : index
    %c0_14 = arith.constant 0 : index
    %31 = vector.load %arg5[%c0_12, %c0_13, %c0_14] : memref<1x32x96xbf16, #tpu.memory_space<vmem>>, vector<1x32x96xbf16>
    %32 = vector.shape_cast %31 : vector<1x32x96xbf16> to vector<32x96xbf16>
    %cst_15 = arith.constant dense<0.000000e+00> : vector<16x96xf32>
    %33 = tpu.matmul %30, %32, %cst_15 {dimension_numbers = #tpu.dot_dimension_numbers<[1], [0], [0], [1], [0, 0, 1, 1], [], []>} : vector<16x32xbf16>, vector<32x96xbf16>, vector<16x96xf32> -> vector<16x96xf32>
    %c0_16 = arith.constant 0 : index
    %c0_17 = arith.constant 0 : index
    %c0_18 = arith.constant 0 : index
    %34 = vector.load %arg6[%c0_16, %c0_17, %c0_18] : memref<1x1x96xf32, #tpu.memory_space<vmem>>, vector<1x1x96xf32>
    %35 = vector.shape_cast %34 : vector<1x1x96xf32> to vector<1x96xf32>
    %36 = vector.broadcast %35 : vector<1x96xf32> to vector<16x96xf32>
    %37 = arith.addf %33, %36 : vector<16x96xf32>
    %38 = vector.extract_strided_slice %37 {offsets = [0, 0], sizes = [16, 16], strides = [1, 1]} : vector<16x96xf32> to vector<16x16xf32>
    %39 = arith.truncf %38 : vector<16x16xf32> to vector<16x16xbf16>
    %40 = vector.extract_strided_slice %37 {offsets = [0, 32], sizes = [16, 16], strides = [1, 1]} : vector<16x96xf32> to vector<16x16xf32>
    %41 = arith.truncf %40 : vector<16x16xf32> to vector<16x16xbf16>
    %42 = vector.extract_strided_slice %37 {offsets = [0, 64], sizes = [16, 16], strides = [1, 1]} : vector<16x96xf32> to vector<16x16xf32>
    %43 = arith.truncf %42 : vector<16x16xf32> to vector<16x16xbf16>
    %cst_19 = arith.constant dense<0.000000e+00> : vector<16x16xf32>
    %44 = tpu.matmul %39, %41, %cst_19 {dimension_numbers = #tpu.dot_dimension_numbers<[1], [1], [0], [0], [0, 0, 1, 0], [], []>} : vector<16x16xbf16>, vector<16x16xbf16>, vector<16x16xf32> -> vector<16x16xf32>
    %cst_20 = arith.constant 2.500000e-01 : f32
    %45 = vector.broadcast %cst_20 : f32 to vector<16x16xf32>
    %46 = arith.mulf %44, %45 : vector<16x16xf32>
    %cst_21 = arith.constant dense<0xFF800000> : vector<16xf32>
    %47 = vector.multi_reduction <maximumf>, %46, %cst_21 [1] : vector<16x16xf32> to vector<16xf32>
    %48 = vector.shape_cast %47 : vector<16xf32> to vector<16x1xf32>
    %49 = vector.broadcast %48 : vector<16x1xf32> to vector<16x16xf32>
    %50 = arith.subf %46, %49 : vector<16x16xf32>
    %51 = math.exp %50 : vector<16x16xf32>
    %cst_22 = arith.constant dense<0.000000e+00> : vector<16xf32>
    %52 = vector.multi_reduction <add>, %51, %cst_22 [1] : vector<16x16xf32> to vector<16xf32>
    %53 = vector.shape_cast %52 : vector<16xf32> to vector<16x1xf32>
    %54 = tpu.reciprocal %53 {approx = true} : vector<16x1xf32> -> vector<16x1xf32>
    %55 = vector.broadcast %54 : vector<16x1xf32> to vector<16x16xf32>
    %56 = arith.mulf %51, %55 : vector<16x16xf32>
    %57 = arith.truncf %56 : vector<16x16xf32> to vector<16x16xbf16>
    %cst_23 = arith.constant dense<0.000000e+00> : vector<16x16xf32>
    %58 = tpu.matmul %57, %43, %cst_23 {dimension_numbers = #tpu.dot_dimension_numbers<[1], [0], [0], [1], [0, 0, 1, 1], [], []>} : vector<16x16xbf16>, vector<16x16xbf16>, vector<16x16xf32> -> vector<16x16xf32>
    %c0_24 = arith.constant 0 : index
    %c0_25 = arith.constant 0 : index
    %59 = vector.load %arg17[%c0_24, %c0_25] : memref<16x32xf32, #tpu.memory_space<vmem>>, vector<16x16xf32>
    tpu.vector_store %arg17[%c0_24, %c0_25], %58 {strides = array<i32>} : memref<16x32xf32, #tpu.memory_space<vmem>>, vector<16x16xf32>,
    %60 = vector.extract_strided_slice %37 {offsets = [0, 16], sizes = [16, 16], strides = [1, 1]} : vector<16x96xf32> to vector<16x16xf32>
    %61 = arith.truncf %60 : vector<16x16xf32> to vector<16x16xbf16>
    %62 = vector.extract_strided_slice %37 {offsets = [0, 48], sizes = [16, 16], strides = [1, 1]} : vector<16x96xf32> to vector<16x16xf32>
    %63 = arith.truncf %62 : vector<16x16xf32> to vector<16x16xbf16>
    %64 = vector.extract_strided_slice %37 {offsets = [0, 80], sizes = [16, 16], strides = [1, 1]} : vector<16x96xf32> to vector<16x16xf32>
    %65 = arith.truncf %64 : vector<16x16xf32> to vector<16x16xbf16>
    %cst_26 = arith.constant dense<0.000000e+00> : vector<16x16xf32>
    %66 = tpu.matmul %61, %63, %cst_26 {dimension_numbers = #tpu.dot_dimension_numbers<[1], [1], [0], [0], [0, 0, 1, 0], [], []>} : vector<16x16xbf16>, vector<16x16xbf16>, vector<16x16xf32> -> vector<16x16xf32>
    %cst_27 = arith.constant 2.500000e-01 : f32
    %67 = vector.broadcast %cst_27 : f32 to vector<16x16xf32>
    %68 = arith.mulf %66, %67 : vector<16x16xf32>
    %cst_28 = arith.constant dense<0xFF800000> : vector<16xf32>
    %69 = vector.multi_reduction <maximumf>, %68, %cst_28 [1] : vector<16x16xf32> to vector<16xf32>
    %70 = vector.shape_cast %69 : vector<16xf32> to vector<16x1xf32>
    %71 = vector.broadcast %70 : vector<16x1xf32> to vector<16x16xf32>
    %72 = arith.subf %68, %71 : vector<16x16xf32>
    %73 = math.exp %72 : vector<16x16xf32>
    %cst_29 = arith.constant dense<0.000000e+00> : vector<16xf32>
    %74 = vector.multi_reduction <add>, %73, %cst_29 [1] : vector<16x16xf32> to vector<16xf32>
    %75 = vector.shape_cast %74 : vector<16xf32> to vector<16x1xf32>
    %76 = tpu.reciprocal %75 {approx = true} : vector<16x1xf32> -> vector<16x1xf32>
    %77 = vector.broadcast %76 : vector<16x1xf32> to vector<16x16xf32>
    %78 = arith.mulf %73, %77 : vector<16x16xf32>
    %79 = arith.truncf %78 : vector<16x16xf32> to vector<16x16xbf16>
    %cst_30 = arith.constant dense<0.000000e+00> : vector<16x16xf32>
    %80 = tpu.matmul %79, %65, %cst_30 {dimension_numbers = #tpu.dot_dimension_numbers<[1], [0], [0], [1], [0, 0, 1, 1], [], []>} : vector<16x16xbf16>, vector<16x16xbf16>, vector<16x16xf32> -> vector<16x16xf32>
    %c0_31 = arith.constant 0 : index
    %c16 = arith.constant 16 : index
    %81 = vector.load %arg17[%c0_31, %c16] : memref<16x32xf32, #tpu.memory_space<vmem>>, vector<16x16xf32>
    tpu.vector_store %arg17[%c0_31, %c16], %80 {strides = array<i32>} : memref<16x32xf32, #tpu.memory_space<vmem>>, vector<16x16xf32>,
    %c0_32 = arith.constant 0 : index
    %c0_33 = arith.constant 0 : index
    %82 = vector.load %arg17[%c0_32, %c0_33] : memref<16x32xf32, #tpu.memory_space<vmem>>, vector<16x32xf32>
    %83 = arith.truncf %82 : vector<16x32xf32> to vector<16x32xbf16>
    %c0_34 = arith.constant 0 : index
    %c0_35 = arith.constant 0 : index
    %c0_36 = arith.constant 0 : index
    %84 = vector.load %arg7[%c0_34, %c0_35, %c0_36] : memref<1x32x32xbf16, #tpu.memory_space<vmem>>, vector<1x32x32xbf16>
    %85 = vector.shape_cast %84 : vector<1x32x32xbf16> to vector<32x32xbf16>
    %cst_37 = arith.constant dense<0.000000e+00> : vector<16x32xf32>
    %86 = tpu.matmul %83, %85, %cst_37 {dimension_numbers = #tpu.dot_dimension_numbers<[1], [0], [0], [1], [0, 0, 1, 1], [], []>} : vector<16x32xbf16>, vector<32x32xbf16>, vector<16x32xf32> -> vector<16x32xf32>
    %87 = arith.addf %3, %86 : vector<16x32xf32>
    %c0_38 = arith.constant 0 : index
    %c0_39 = arith.constant 0 : index
    %c0_40 = arith.constant 0 : index
    %88 = vector.load %arg8[%c0_38, %c0_39, %c0_40] : memref<1x1x32xf32, #tpu.memory_space<vmem>>, vector<1x1x32xf32>
    %89 = vector.shape_cast %88 : vector<1x1x32xf32> to vector<1x32xf32>
    %90 = vector.broadcast %89 : vector<1x32xf32> to vector<16x32xf32>
    %91 = arith.addf %87, %90 : vector<16x32xf32>
    %cst_41 = arith.constant dense<0.000000e+00> : vector<16xf32>
    %92 = vector.multi_reduction <add>, %91, %cst_41 [1] : vector<16x32xf32> to vector<16xf32>
    %93 = vector.shape_cast %92 : vector<16xf32> to vector<16x1xf32>
    %cst_42 = arith.constant 3.200000e+01 : f32
    %94 = vector.broadcast %cst_42 : f32 to vector<16x1xf32>
    %95 = arith.divf %93, %94 : vector<16x1xf32>
    %96 = vector.broadcast %95 : vector<16x1xf32> to vector<16x32xf32>
    %97 = arith.subf %91, %96 : vector<16x32xf32>
    %98 = arith.mulf %97, %97 : vector<16x32xf32>
    %cst_43 = arith.constant dense<0.000000e+00> : vector<16xf32>
    %99 = vector.multi_reduction <add>, %98, %cst_43 [1] : vector<16x32xf32> to vector<16xf32>
    %100 = vector.shape_cast %99 : vector<16xf32> to vector<16x1xf32>
    %cst_44 = arith.constant 3.200000e+01 : f32
    %101 = vector.broadcast %cst_44 : f32 to vector<16x1xf32>
    %102 = arith.divf %100, %101 : vector<16x1xf32>
    %103 = vector.broadcast %95 : vector<16x1xf32> to vector<16x32xf32>
    %104 = arith.subf %91, %103 : vector<16x32xf32>
    %cst_45 = arith.constant 9.99999974E-6 : f32
    %105 = vector.broadcast %cst_45 : f32 to vector<16x1xf32>
    %106 = arith.addf %102, %105 : vector<16x1xf32>
    %107 = math.rsqrt %106 : vector<16x1xf32>
    %108 = vector.broadcast %107 : vector<16x1xf32> to vector<16x32xf32>
    %109 = arith.mulf %104, %108 : vector<16x32xf32>
    %c0_46 = arith.constant 0 : index
    %c0_47 = arith.constant 0 : index
    %c0_48 = arith.constant 0 : index
    %110 = vector.load %arg9[%c0_46, %c0_47, %c0_48] : memref<1x1x32xf32, #tpu.memory_space<vmem>>, vector<1x1x32xf32>
    %111 = vector.shape_cast %110 : vector<1x1x32xf32> to vector<1x32xf32>
    %112 = vector.broadcast %111 : vector<1x32xf32> to vector<16x32xf32>
    %113 = arith.mulf %109, %112 : vector<16x32xf32>
    %c0_49 = arith.constant 0 : index
    %c0_50 = arith.constant 0 : index
    %c0_51 = arith.constant 0 : index
    %114 = vector.load %arg10[%c0_49, %c0_50, %c0_51] : memref<1x1x32xf32, #tpu.memory_space<vmem>>, vector<1x1x32xf32>
    %115 = vector.shape_cast %114 : vector<1x1x32xf32> to vector<1x32xf32>
    %116 = vector.broadcast %115 : vector<1x32xf32> to vector<16x32xf32>
    %117 = arith.addf %113, %116 : vector<16x32xf32>
    %118 = arith.truncf %117 : vector<16x32xf32> to vector<16x32xbf16>
    %c0_52 = arith.constant 0 : index
    %c0_53 = arith.constant 0 : index
    %c0_54 = arith.constant 0 : index
    %119 = vector.load %arg11[%c0_52, %c0_53, %c0_54] : memref<1x32x64xbf16, #tpu.memory_space<vmem>>, vector<1x32x64xbf16>
    %120 = vector.shape_cast %119 : vector<1x32x64xbf16> to vector<32x64xbf16>
    %cst_55 = arith.constant dense<0.000000e+00> : vector<16x64xf32>
    %121 = tpu.matmul %118, %120, %cst_55 {dimension_numbers = #tpu.dot_dimension_numbers<[1], [0], [0], [1], [0, 0, 1, 1], [], []>} : vector<16x32xbf16>, vector<32x64xbf16>, vector<16x64xf32> -> vector<16x64xf32>
    %c0_56 = arith.constant 0 : index
    %c0_57 = arith.constant 0 : index
    %c0_58 = arith.constant 0 : index
    %122 = vector.load %arg12[%c0_56, %c0_57, %c0_58] : memref<1x1x64xf32, #tpu.memory_space<vmem>>, vector<1x1x64xf32>
    %123 = vector.shape_cast %122 : vector<1x1x64xf32> to vector<1x64xf32>
    %124 = vector.broadcast %123 : vector<1x64xf32> to vector<16x64xf32>
    %125 = arith.addf %121, %124 : vector<16x64xf32>
    %126 = arith.mulf %125, %125 : vector<16x64xf32>
    %127 = arith.mulf %125, %126 : vector<16x64xf32>
    %cst_59 = arith.constant 4.471500e-02 : f32
    %128 = vector.broadcast %cst_59 : f32 to vector<16x64xf32>
    %129 = arith.mulf %128, %127 : vector<16x64xf32>
    %130 = arith.addf %125, %129 : vector<16x64xf32>
    %cst_60 = arith.constant 0.797884583 : f32
    %131 = vector.broadcast %cst_60 : f32 to vector<16x64xf32>
    %132 = arith.mulf %131, %130 : vector<16x64xf32>
    %133 = math.tanh %132 : vector<16x64xf32>
    %cst_61 = arith.constant 1.000000e+00 : f32
    %134 = vector.broadcast %cst_61 : f32 to vector<16x64xf32>
    %135 = arith.addf %134, %133 : vector<16x64xf32>
    %cst_62 = arith.constant 5.000000e-01 : f32
    %136 = vector.broadcast %cst_62 : f32 to vector<16x64xf32>
    %137 = arith.mulf %136, %135 : vector<16x64xf32>
    %138 = arith.mulf %125, %137 : vector<16x64xf32>
    %139 = arith.truncf %138 : vector<16x64xf32> to vector<16x64xbf16>
    %c0_63 = arith.constant 0 : index
    %c0_64 = arith.constant 0 : index
    %c0_65 = arith.constant 0 : index
    %140 = vector.load %arg13[%c0_63, %c0_64, %c0_65] : memref<1x64x32xbf16, #tpu.memory_space<vmem>>, vector<1x64x32xbf16>
    %141 = vector.shape_cast %140 : vector<1x64x32xbf16> to vector<64x32xbf16>
    %cst_66 = arith.constant dense<0.000000e+00> : vector<16x32xf32>
    %142 = tpu.matmul %139, %141, %cst_66 {dimension_numbers = #tpu.dot_dimension_numbers<[1], [0], [0], [1], [0, 0, 1, 1], [], []>} : vector<16x64xbf16>, vector<64x32xbf16>, vector<16x32xf32> -> vector<16x32xf32>
    %c0_67 = arith.constant 0 : index
    %c0_68 = arith.constant 0 : index
    %c0_69 = arith.constant 0 : index
    %143 = vector.load %arg14[%c0_67, %c0_68, %c0_69] : memref<1x1x32xf32, #tpu.memory_space<vmem>>, vector<1x1x32xf32>
    %144 = vector.shape_cast %143 : vector<1x1x32xf32> to vector<1x32xf32>
    %145 = vector.broadcast %144 : vector<1x32xf32> to vector<16x32xf32>
    %146 = arith.addf %142, %145 : vector<16x32xf32>
    %147 = arith.addf %91, %146 : vector<16x32xf32>
    %c0_70 = arith.constant 0 : index
    %c0_71 = arith.constant 0 : index
    %148 = vector.load %arg16[%c0_70, %c0_71] : memref<16x32xf32, #tpu.memory_space<vmem>>, vector<16x32xf32>
    tpu.vector_store %arg16[%c0_70, %c0_71], %147 {strides = array<i32>} : memref<16x32xf32, #tpu.memory_space<vmem>>, vector<16x32xf32>,
    %c0_72 = arith.constant 0 : index
    %c0_73 = arith.constant 0 : index
    %c0_74 = arith.constant 0 : index
    %c0_75 = arith.constant 0 : index
    %149 = vector.load %arg15[%c0_72, %c0_73, %c0_74, %c0_75] : memref<1x1x16x32xf32, #tpu.memory_space<vmem>>, vector<1x1x16x32xf32>
    %150 = vector.shape_cast %149 : vector<1x1x16x32xf32> to vector<16x32xf32>
    %151 = vector.shape_cast %147 : vector<16x32xf32> to vector<1x1x16x32xf32>
    tpu.vector_store %arg15[%c0_72, %c0_73, %c0_74, %c0_75], %151 {strides = array<i32>} : memref<1x1x16x32xf32, #tpu.memory_space<vmem>>, vector<1x1x16x32xf32>,
    return
  }
  func.func @transform_0(%arg0: i32, %arg1: i32) -> (i32, i32, i32) {
    %c0_i32 = arith.constant 0 : i32
    %c0_i32_0 = arith.constant 0 : i32
    %c0_i32_1 = arith.constant 0 : i32
    return %arg0, %c0_i32, %c0_i32_0 : i32, i32, i32
  }
  func.func @transform_1(%arg0: i32, %arg1: i32) -> (i32, i32, i32) {
    %c0_i32 = arith.constant 0 : i32
    %c0_i32_0 = arith.constant 0 : i32
    %c0_i32_1 = arith.constant 0 : i32
    return %arg1, %c0_i32, %c0_i32_0 : i32, i32, i32
  }
  func.func @transform_2(%arg0: i32, %arg1: i32) -> (i32, i32, i32) {
    %c0_i32 = arith.constant 0 : i32
    %c0_i32_0 = arith.constant 0 : i32
    %c0_i32_1 = arith.constant 0 : i32
    return %arg1, %c0_i32, %c0_i32_0 : i32, i32, i32
  }
  func.func @transform_3(%arg0: i32, %arg1: i32) -> (i32, i32, i32) {
    %c0_i32 = arith.constant 0 : i32
    %c0_i32_0 = arith.constant 0 : i32
    %c0_i32_1 = arith.constant 0 : i32
    return %arg1, %c0_i32, %c0_i32_0 : i32, i32, i32
  }
  func.func @transform_4(%arg0: i32, %arg1: i32) -> (i32, i32, i32) {
    %c0_i32 = arith.constant 0 : i32
    %c0_i32_0 = arith.constant 0 : i32
    %c0_i32_1 = arith.constant 0 : i32
    return %arg1, %c0_i32, %c0_i32_0 : i32, i32, i32
  }
  func.func @transform_5(%arg0: i32, %arg1: i32) -> (i32, i32, i32) {
    %c0_i32 = arith.constant 0 : i32
    %c0_i32_0 = arith.constant 0 : i32
    %c0_i32_1 = arith.constant 0 : i32
    return %arg1, %c0_i32, %c0_i32_0 : i32, i32, i32
  }
  func.func @transform_6(%arg0: i32, %arg1: i32) -> (i32, i32, i32) {
    %c0_i32 = arith.constant 0 : i32
    %c0_i32_0 = arith.constant 0 : i32
    %c0_i32_1 = arith.constant 0 : i32
    return %arg1, %c0_i32, %c0_i32_0 : i32, i32, i32
  }
  func.func @transform_7(%arg0: i32, %arg1: i32) -> (i32, i32, i32) {
    %c0_i32 = arith.constant 0 : i32
    %c0_i32_0 = arith.constant 0 : i32
    %c0_i32_1 = arith.constant 0 : i32
    return %arg1, %c0_i32, %c0_i32_0 : i32, i32, i32
  }
  func.func @transform_8(%arg0: i32, %arg1: i32) -> (i32, i32, i32) {
    %c0_i32 = arith.constant 0 : i32
    %c0_i32_0 = arith.constant 0 : i32
    %c0_i32_1 = arith.constant 0 : i32
    return %arg1, %c0_i32, %c0_i32_0 : i32, i32, i32
  }
  func.func @transform_9(%arg0: i32, %arg1: i32) -> (i32, i32, i32) {
    %c0_i32 = arith.constant 0 : i32
    %c0_i32_0 = arith.constant 0 : i32
    %c0_i32_1 = arith.constant 0 : i32
    return %arg1, %c0_i32, %c0_i32_0 : i32, i32, i32
  }
  func.func @transform_10(%arg0: i32, %arg1: i32) -> (i32, i32, i32) {
    %c0_i32 = arith.constant 0 : i32
    %c0_i32_0 = arith.constant 0 : i32
    %c0_i32_1 = arith.constant 0 : i32
    return %arg1, %c0_i32, %c0_i32_0 : i32, i32, i32
  }
  func.func @transform_11(%arg0: i32, %arg1: i32) -> (i32, i32, i32) {
    %c0_i32 = arith.constant 0 : i32
    %c0_i32_0 = arith.constant 0 : i32
    %c0_i32_1 = arith.constant 0 : i32
    return %arg1, %c0_i32, %c0_i32_0 : i32, i32, i32
  }
  func.func @transform_12(%arg0: i32, %arg1: i32) -> (i32, i32, i32) {
    %c0_i32 = arith.constant 0 : i32
    %c0_i32_0 = arith.constant 0 : i32
    %c0_i32_1 = arith.constant 0 : i32
    return %arg1, %c0_i32, %c0_i32_0 : i32, i32, i32
  }
  func.func @transform_13(%arg0: i32, %arg1: i32) -> (i32, i32, i32, i32) {
    %c0_i32 = arith.constant 0 : i32
    %c0_i32_0 = arith.constant 0 : i32
    %c0_i32_1 = arith.constant 0 : i32
    return %arg1, %arg0, %c0_i32, %c0_i32_0 : i32, i32, i32, i32
  }
}

module attributes {stable_mosaic.version = 11 : i64} {
  func.func @_linear_kernel(%arg0: i32, %arg1: memref<32x32xf32, #tpu.memory_space<vmem>>, %arg2: memref<32x512xbf16, #tpu.memory_space<vmem>>, %arg3: memref<1x512xf32, #tpu.memory_space<vmem>>, %arg4: memref<32x512xf32, #tpu.memory_space<vmem>>) attributes {dimension_semantics = [#tpu.dimension_semantics<parallel>], iteration_bounds = array<i64: 2>, scalar_prefetch = 0 : i64, scratch_operands = 0 : i64, tpu.core_type = #tpu.core_type<tc>, window_params = [{pipeline_mode = #tpu.pipeline_mode<synchronous>, transform_indices = @transform_0, window_bounds = array<i64: 32, 32>}, {transform_indices = @transform_1, window_bounds = array<i64: 32, 512>}, {transform_indices = @transform_2, window_bounds = array<i64: 1, 512>}, {transform_indices = @transform_3, window_bounds = array<i64: 32, 512>}]} {
    %c0 = arith.constant 0 : index
    %c0_0 = arith.constant 0 : index
    %0 = vector.load %arg1[%c0, %c0_0] : memref<32x32xf32, #tpu.memory_space<vmem>>, vector<32x32xf32>
    %1 = arith.truncf %0 : vector<32x32xf32> to vector<32x32xbf16>
    %c0_1 = arith.constant 0 : index
    %c0_2 = arith.constant 0 : index
    %2 = vector.load %arg2[%c0_1, %c0_2] : memref<32x512xbf16, #tpu.memory_space<vmem>>, vector<32x512xbf16>
    %cst = arith.constant dense<0.000000e+00> : vector<32x512xf32>
    %3 = tpu.matmul %1, %2, %cst {dimension_numbers = #tpu.dot_dimension_numbers<[1], [0], [0], [1], [0, 0, 1, 1], [], []>} : vector<32x32xbf16>, vector<32x512xbf16>, vector<32x512xf32> -> vector<32x512xf32>
    %c0_3 = arith.constant 0 : index
    %c0_4 = arith.constant 0 : index
    %4 = vector.load %arg3[%c0_3, %c0_4] : memref<1x512xf32, #tpu.memory_space<vmem>>, vector<1x512xf32>
    %5 = vector.broadcast %4 : vector<1x512xf32> to vector<32x512xf32>
    %6 = arith.addf %3, %5 : vector<32x512xf32>
    %c0_5 = arith.constant 0 : index
    %c0_6 = arith.constant 0 : index
    %7 = vector.load %arg4[%c0_5, %c0_6] : memref<32x512xf32, #tpu.memory_space<vmem>>, vector<32x512xf32>
    tpu.vector_store %arg4[%c0_5, %c0_6], %6 {strides = array<i32>} : memref<32x512xf32, #tpu.memory_space<vmem>>, vector<32x512xf32>,
    return
  }
  func.func @transform_0(%arg0: i32) -> (i32, i32) {
    %c0_i32 = arith.constant 0 : i32
    %c0_i32_0 = arith.constant 0 : i32
    %c0_i32_1 = arith.constant 0 : i32
    return %c0_i32, %c0_i32_0 : i32, i32
  }
  func.func @transform_1(%arg0: i32) -> (i32, i32) {
    %c0_i32 = arith.constant 0 : i32
    %c0_i32_0 = arith.constant 0 : i32
    return %c0_i32, %arg0 : i32, i32
  }
  func.func @transform_2(%arg0: i32) -> (i32, i32) {
    %c0_i32 = arith.constant 0 : i32
    %c0_i32_0 = arith.constant 0 : i32
    return %c0_i32, %arg0 : i32, i32
  }
  func.func @transform_3(%arg0: i32) -> (i32, i32) {
    %c0_i32 = arith.constant 0 : i32
    %c0_i32_0 = arith.constant 0 : i32
    return %c0_i32, %arg0 : i32, i32
  }
}

module attributes {stable_mosaic.version = 11 : i64} {
  func.func @_bn_gelu_linear_kernel(%arg0: memref<128x256xf32, #tpu.memory_space<vmem>>, %arg1: memref<1x256xf32, #tpu.memory_space<vmem>>, %arg2: memref<1x256xf32, #tpu.memory_space<vmem>>, %arg3: memref<256x512xbf16, #tpu.memory_space<vmem>>, %arg4: memref<1x512xf32, #tpu.memory_space<vmem>>, %arg5: memref<128x512xf32, #tpu.memory_space<vmem>>) attributes {dimension_semantics = [], scalar_prefetch = 0 : i64, scratch_operands = 0 : i64, tpu.core_type = #tpu.core_type<tc>} {
    %c0 = arith.constant 0 : index
    %c0_0 = arith.constant 0 : index
    %0 = vector.load %arg0[%c0, %c0_0] : memref<128x256xf32, #tpu.memory_space<vmem>>, vector<128x256xf32>
    %cst = arith.constant dense<0.000000e+00> : vector<256xf32>
    %1 = vector.multi_reduction <add>, %0, %cst [0] : vector<128x256xf32> to vector<256xf32>
    %2 = vector.shape_cast %1 : vector<256xf32> to vector<1x256xf32>
    %cst_1 = arith.constant 1.280000e+02 : f32
    %3 = vector.broadcast %cst_1 : f32 to vector<1x256xf32>
    %4 = arith.divf %2, %3 : vector<1x256xf32>
    %5 = vector.broadcast %4 : vector<1x256xf32> to vector<128x256xf32>
    %6 = arith.subf %0, %5 : vector<128x256xf32>
    %7 = arith.mulf %6, %6 : vector<128x256xf32>
    %cst_2 = arith.constant dense<0.000000e+00> : vector<256xf32>
    %8 = vector.multi_reduction <add>, %7, %cst_2 [0] : vector<128x256xf32> to vector<256xf32>
    %9 = vector.shape_cast %8 : vector<256xf32> to vector<1x256xf32>
    %cst_3 = arith.constant 1.280000e+02 : f32
    %10 = vector.broadcast %cst_3 : f32 to vector<1x256xf32>
    %11 = arith.divf %9, %10 : vector<1x256xf32>
    %12 = vector.broadcast %4 : vector<1x256xf32> to vector<128x256xf32>
    %13 = arith.subf %0, %12 : vector<128x256xf32>
    %cst_4 = arith.constant 9.99999974E-6 : f32
    %14 = vector.broadcast %cst_4 : f32 to vector<1x256xf32>
    %15 = arith.addf %11, %14 : vector<1x256xf32>
    %16 = math.rsqrt %15 : vector<1x256xf32>
    %17 = vector.broadcast %16 : vector<1x256xf32> to vector<128x256xf32>
    %18 = arith.mulf %13, %17 : vector<128x256xf32>
    %c0_5 = arith.constant 0 : index
    %c0_6 = arith.constant 0 : index
    %19 = vector.load %arg1[%c0_5, %c0_6] : memref<1x256xf32, #tpu.memory_space<vmem>>, vector<1x256xf32>
    %20 = vector.broadcast %19 : vector<1x256xf32> to vector<128x256xf32>
    %21 = arith.mulf %18, %20 : vector<128x256xf32>
    %c0_7 = arith.constant 0 : index
    %c0_8 = arith.constant 0 : index
    %22 = vector.load %arg2[%c0_7, %c0_8] : memref<1x256xf32, #tpu.memory_space<vmem>>, vector<1x256xf32>
    %23 = vector.broadcast %22 : vector<1x256xf32> to vector<128x256xf32>
    %24 = arith.addf %21, %23 : vector<128x256xf32>
    %25 = arith.mulf %24, %24 : vector<128x256xf32>
    %26 = arith.mulf %24, %25 : vector<128x256xf32>
    %cst_9 = arith.constant 4.471500e-02 : f32
    %27 = vector.broadcast %cst_9 : f32 to vector<128x256xf32>
    %28 = arith.mulf %27, %26 : vector<128x256xf32>
    %29 = arith.addf %24, %28 : vector<128x256xf32>
    %cst_10 = arith.constant 0.797884583 : f32
    %30 = vector.broadcast %cst_10 : f32 to vector<128x256xf32>
    %31 = arith.mulf %30, %29 : vector<128x256xf32>
    %32 = math.tanh %31 : vector<128x256xf32>
    %cst_11 = arith.constant 1.000000e+00 : f32
    %33 = vector.broadcast %cst_11 : f32 to vector<128x256xf32>
    %34 = arith.addf %33, %32 : vector<128x256xf32>
    %cst_12 = arith.constant 5.000000e-01 : f32
    %35 = vector.broadcast %cst_12 : f32 to vector<128x256xf32>
    %36 = arith.mulf %35, %34 : vector<128x256xf32>
    %37 = arith.mulf %24, %36 : vector<128x256xf32>
    %38 = arith.truncf %37 : vector<128x256xf32> to vector<128x256xbf16>
    %c0_13 = arith.constant 0 : index
    %c0_14 = arith.constant 0 : index
    %39 = vector.load %arg3[%c0_13, %c0_14] : memref<256x512xbf16, #tpu.memory_space<vmem>>, vector<256x512xbf16>
    %cst_15 = arith.constant dense<0.000000e+00> : vector<128x512xf32>
    %40 = tpu.matmul %38, %39, %cst_15 {dimension_numbers = #tpu.dot_dimension_numbers<[1], [0], [0], [1], [0, 0, 1, 1], [], []>} : vector<128x256xbf16>, vector<256x512xbf16>, vector<128x512xf32> -> vector<128x512xf32>
    %c0_16 = arith.constant 0 : index
    %c0_17 = arith.constant 0 : index
    %41 = vector.load %arg4[%c0_16, %c0_17] : memref<1x512xf32, #tpu.memory_space<vmem>>, vector<1x512xf32>
    %42 = vector.broadcast %41 : vector<1x512xf32> to vector<128x512xf32>
    %43 = arith.addf %40, %42 : vector<128x512xf32>
    %c0_18 = arith.constant 0 : index
    %c0_19 = arith.constant 0 : index
    %44 = vector.load %arg5[%c0_18, %c0_19] : memref<128x512xf32, #tpu.memory_space<vmem>>, vector<128x512xf32>
    tpu.vector_store %arg5[%c0_18, %c0_19], %43 {strides = array<i32>} : memref<128x512xf32, #tpu.memory_space<vmem>>, vector<128x512xf32>,
    return
  }
}

module attributes {stable_mosaic.version = 11 : i64} {
  func.func @_linear_kernel(%arg0: i32, %arg1: memref<32x32xf32, #tpu.memory_space<vmem>>, %arg2: memref<32x256xbf16, #tpu.memory_space<vmem>>, %arg3: memref<1x256xf32, #tpu.memory_space<vmem>>, %arg4: memref<32x256xf32, #tpu.memory_space<vmem>>) attributes {dimension_semantics = [#tpu.dimension_semantics<parallel>], iteration_bounds = array<i64: 2>, scalar_prefetch = 0 : i64, scratch_operands = 0 : i64, tpu.core_type = #tpu.core_type<tc>, window_params = [{pipeline_mode = #tpu.pipeline_mode<synchronous>, transform_indices = @transform_0, window_bounds = array<i64: 32, 32>}, {transform_indices = @transform_1, window_bounds = array<i64: 32, 256>}, {transform_indices = @transform_2, window_bounds = array<i64: 1, 256>}, {transform_indices = @transform_3, window_bounds = array<i64: 32, 256>}]} {
    %c0 = arith.constant 0 : index
    %c0_0 = arith.constant 0 : index
    %0 = vector.load %arg1[%c0, %c0_0] : memref<32x32xf32, #tpu.memory_space<vmem>>, vector<32x32xf32>
    %1 = arith.truncf %0 : vector<32x32xf32> to vector<32x32xbf16>
    %c0_1 = arith.constant 0 : index
    %c0_2 = arith.constant 0 : index
    %2 = vector.load %arg2[%c0_1, %c0_2] : memref<32x256xbf16, #tpu.memory_space<vmem>>, vector<32x256xbf16>
    %cst = arith.constant dense<0.000000e+00> : vector<32x256xf32>
    %3 = tpu.matmul %1, %2, %cst {dimension_numbers = #tpu.dot_dimension_numbers<[1], [0], [0], [1], [0, 0, 1, 1], [], []>} : vector<32x32xbf16>, vector<32x256xbf16>, vector<32x256xf32> -> vector<32x256xf32>
    %c0_3 = arith.constant 0 : index
    %c0_4 = arith.constant 0 : index
    %4 = vector.load %arg3[%c0_3, %c0_4] : memref<1x256xf32, #tpu.memory_space<vmem>>, vector<1x256xf32>
    %5 = vector.broadcast %4 : vector<1x256xf32> to vector<32x256xf32>
    %6 = arith.addf %3, %5 : vector<32x256xf32>
    %c0_5 = arith.constant 0 : index
    %c0_6 = arith.constant 0 : index
    %7 = vector.load %arg4[%c0_5, %c0_6] : memref<32x256xf32, #tpu.memory_space<vmem>>, vector<32x256xf32>
    tpu.vector_store %arg4[%c0_5, %c0_6], %6 {strides = array<i32>} : memref<32x256xf32, #tpu.memory_space<vmem>>, vector<32x256xf32>,
    return
  }
  func.func @transform_0(%arg0: i32) -> (i32, i32) {
    %c0_i32 = arith.constant 0 : i32
    %c0_i32_0 = arith.constant 0 : i32
    %c0_i32_1 = arith.constant 0 : i32
    return %c0_i32, %c0_i32_0 : i32, i32
  }
  func.func @transform_1(%arg0: i32) -> (i32, i32) {
    %c0_i32 = arith.constant 0 : i32
    %c0_i32_0 = arith.constant 0 : i32
    return %c0_i32, %arg0 : i32, i32
  }
  func.func @transform_2(%arg0: i32) -> (i32, i32) {
    %c0_i32 = arith.constant 0 : i32
    %c0_i32_0 = arith.constant 0 : i32
    return %c0_i32, %arg0 : i32, i32
  }
  func.func @transform_3(%arg0: i32) -> (i32, i32) {
    %c0_i32 = arith.constant 0 : i32
    %c0_i32_0 = arith.constant 0 : i32
    return %c0_i32, %arg0 : i32, i32
  }
}

module attributes {stable_mosaic.version = 11 : i64} {
  func.func @_tail_kernel(%arg0: i32, %arg1: memref<1x256x128xf32, #tpu.memory_space<vmem>>, %arg2: memref<1x64x128xf32, #tpu.memory_space<vmem>>, %arg3: memref<1x16x32xf32, #tpu.memory_space<vmem>>, %arg4: memref<1x4x32xf32, #tpu.memory_space<vmem>>, %arg5: memref<1x16x32xf32, #tpu.memory_space<vmem>>, %arg6: memref<128x32xbf16, #tpu.memory_space<vmem>>, %arg7: memref<128x32xbf16, #tpu.memory_space<vmem>>, %arg8: memref<32x32xbf16, #tpu.memory_space<vmem>>, %arg9: memref<32x32xbf16, #tpu.memory_space<vmem>>, %arg10: memref<32x32xbf16, #tpu.memory_space<vmem>>, %arg11: memref<1x32xf32, #tpu.memory_space<vmem>>, %arg12: memref<256x64xbf16, #tpu.memory_space<vmem>>, %arg13: memref<256x16xbf16, #tpu.memory_space<vmem>>, %arg14: memref<256x4xbf16, #tpu.memory_space<vmem>>, %arg15: memref<3x32xbf16, #tpu.memory_space<vmem>>, %arg16: memref<3x1xf32, #tpu.memory_space<vmem>>, %arg17: memref<1x3x256xf32, #tpu.memory_space<vmem>>) attributes {dimension_semantics = [#tpu.dimension_semantics<parallel>], iteration_bounds = array<i64: 2>, scalar_prefetch = 0 : i64, scratch_operands = 0 : i64, tpu.core_type = #tpu.core_type<tc>, window_params = [{transform_indices = @transform_0, window_bounds = array<i64: 1, 256, 128>}, {transform_indices = @transform_1, window_bounds = array<i64: 1, 64, 128>}, {transform_indices = @transform_2, window_bounds = array<i64: 1, 16, 32>}, {transform_indices = @transform_3, window_bounds = array<i64: 1, 4, 32>}, {transform_indices = @transform_4, window_bounds = array<i64: 1, 16, 32>}, {pipeline_mode = #tpu.pipeline_mode<synchronous>, transform_indices = @transform_5, window_bounds = array<i64: 128, 32>}, {pipeline_mode = #tpu.pipeline_mode<synchronous>, transform_indices = @transform_6, window_bounds = array<i64: 128, 32>}, {pipeline_mode = #tpu.pipeline_mode<synchronous>, transform_indices = @transform_7, window_bounds = array<i64: 32, 32>}, {pipeline_mode = #tpu.pipeline_mode<synchronous>, transform_indices = @transform_8, window_bounds = array<i64: 32, 32>}, {pipeline_mode = #tpu.pipeline_mode<synchronous>, transform_indices = @transform_9, window_bounds = array<i64: 32, 32>}, {pipeline_mode = #tpu.pipeline_mode<synchronous>, transform_indices = @transform_10, window_bounds = array<i64: 1, 32>}, {pipeline_mode = #tpu.pipeline_mode<synchronous>, transform_indices = @transform_11, window_bounds = array<i64: 256, 64>}, {pipeline_mode = #tpu.pipeline_mode<synchronous>, transform_indices = @transform_12, window_bounds = array<i64: 256, 16>}, {pipeline_mode = #tpu.pipeline_mode<synchronous>, transform_indices = @transform_13, window_bounds = array<i64: 256, 4>}, {pipeline_mode = #tpu.pipeline_mode<synchronous>, transform_indices = @transform_14, window_bounds = array<i64: 3, 32>}, {pipeline_mode = #tpu.pipeline_mode<synchronous>, transform_indices = @transform_15, window_bounds = array<i64: 3, 1>}, {transform_indices = @transform_16, window_bounds = array<i64: 1, 3, 256>}]} {
    %c0 = arith.constant 0 : index
    %c0_0 = arith.constant 0 : index
    %c0_1 = arith.constant 0 : index
    %0 = vector.load %arg1[%c0, %c0_0, %c0_1] : memref<1x256x128xf32, #tpu.memory_space<vmem>>, vector<1x256x128xf32>
    %1 = vector.shape_cast %0 : vector<1x256x128xf32> to vector<256x128xf32>
    %2 = arith.truncf %1 : vector<256x128xf32> to vector<256x128xbf16>
    %c0_2 = arith.constant 0 : index
    %c0_3 = arith.constant 0 : index
    %3 = vector.load %arg6[%c0_2, %c0_3] : memref<128x32xbf16, #tpu.memory_space<vmem>>, vector<128x32xbf16>
    %cst = arith.constant dense<0.000000e+00> : vector<256x32xf32>
    %4 = tpu.matmul %2, %3, %cst {dimension_numbers = #tpu.dot_dimension_numbers<[1], [0], [0], [1], [0, 0, 1, 1], [], []>} : vector<256x128xbf16>, vector<128x32xbf16>, vector<256x32xf32> -> vector<256x32xf32>
    %c0_4 = arith.constant 0 : index
    %c0_5 = arith.constant 0 : index
    %c0_6 = arith.constant 0 : index
    %5 = vector.load %arg2[%c0_4, %c0_5, %c0_6] : memref<1x64x128xf32, #tpu.memory_space<vmem>>, vector<1x64x128xf32>
    %6 = vector.shape_cast %5 : vector<1x64x128xf32> to vector<64x128xf32>
    %7 = arith.truncf %6 : vector<64x128xf32> to vector<64x128xbf16>
    %c0_7 = arith.constant 0 : index
    %c0_8 = arith.constant 0 : index
    %8 = vector.load %arg7[%c0_7, %c0_8] : memref<128x32xbf16, #tpu.memory_space<vmem>>, vector<128x32xbf16>
    %cst_9 = arith.constant dense<0.000000e+00> : vector<64x32xf32>
    %9 = tpu.matmul %7, %8, %cst_9 {dimension_numbers = #tpu.dot_dimension_numbers<[1], [0], [0], [1], [0, 0, 1, 1], [], []>} : vector<64x128xbf16>, vector<128x32xbf16>, vector<64x32xf32> -> vector<64x32xf32>
    %c0_10 = arith.constant 0 : index
    %c0_11 = arith.constant 0 : index
    %10 = vector.load %arg12[%c0_10, %c0_11] : memref<256x64xbf16, #tpu.memory_space<vmem>>, vector<256x64xbf16>
    %11 = arith.truncf %9 : vector<64x32xf32> to vector<64x32xbf16>
    %cst_12 = arith.constant dense<0.000000e+00> : vector<256x32xf32>
    %12 = tpu.matmul %10, %11, %cst_12 {dimension_numbers = #tpu.dot_dimension_numbers<[1], [0], [0], [1], [0, 0, 1, 1], [], []>} : vector<256x64xbf16>, vector<64x32xbf16>, vector<256x32xf32> -> vector<256x32xf32>
    %13 = arith.addf %4, %12 : vector<256x32xf32>
    %c0_13 = arith.constant 0 : index
    %c0_14 = arith.constant 0 : index
    %c0_15 = arith.constant 0 : index
    %14 = vector.load %arg3[%c0_13, %c0_14, %c0_15] : memref<1x16x32xf32, #tpu.memory_space<vmem>>, vector<1x16x32xf32>
    %15 = vector.shape_cast %14 : vector<1x16x32xf32> to vector<16x32xf32>
    %16 = arith.truncf %15 : vector<16x32xf32> to vector<16x32xbf16>
    %c0_16 = arith.constant 0 : index
    %c0_17 = arith.constant 0 : index
    %17 = vector.load %arg8[%c0_16, %c0_17] : memref<32x32xbf16, #tpu.memory_space<vmem>>, vector<32x32xbf16>
    %cst_18 = arith.constant dense<0.000000e+00> : vector<16x32xf32>
    %18 = tpu.matmul %16, %17, %cst_18 {dimension_numbers = #tpu.dot_dimension_numbers<[1], [0], [0], [1], [0, 0, 1, 1], [], []>} : vector<16x32xbf16>, vector<32x32xbf16>, vector<16x32xf32> -> vector<16x32xf32>
    %c0_19 = arith.constant 0 : index
    %c0_20 = arith.constant 0 : index
    %19 = vector.load %arg13[%c0_19, %c0_20] : memref<256x16xbf16, #tpu.memory_space<vmem>>, vector<256x16xbf16>
    %20 = arith.truncf %18 : vector<16x32xf32> to vector<16x32xbf16>
    %cst_21 = arith.constant dense<0.000000e+00> : vector<256x32xf32>
    %21 = tpu.matmul %19, %20, %cst_21 {dimension_numbers = #tpu.dot_dimension_numbers<[1], [0], [0], [1], [0, 0, 1, 1], [], []>} : vector<256x16xbf16>, vector<16x32xbf16>, vector<256x32xf32> -> vector<256x32xf32>
    %22 = arith.addf %13, %21 : vector<256x32xf32>
    %c0_22 = arith.constant 0 : index
    %c0_23 = arith.constant 0 : index
    %c0_24 = arith.constant 0 : index
    %23 = vector.load %arg4[%c0_22, %c0_23, %c0_24] : memref<1x4x32xf32, #tpu.memory_space<vmem>>, vector<1x4x32xf32>
    %24 = vector.shape_cast %23 : vector<1x4x32xf32> to vector<4x32xf32>
    %25 = arith.truncf %24 : vector<4x32xf32> to vector<4x32xbf16>
    %c0_25 = arith.constant 0 : index
    %c0_26 = arith.constant 0 : index
    %26 = vector.load %arg9[%c0_25, %c0_26] : memref<32x32xbf16, #tpu.memory_space<vmem>>, vector<32x32xbf16>
    %cst_27 = arith.constant dense<0.000000e+00> : vector<4x32xf32>
    %27 = tpu.matmul %25, %26, %cst_27 {dimension_numbers = #tpu.dot_dimension_numbers<[1], [0], [0], [1], [0, 0, 1, 1], [], []>} : vector<4x32xbf16>, vector<32x32xbf16>, vector<4x32xf32> -> vector<4x32xf32>
    %c0_28 = arith.constant 0 : index
    %c0_29 = arith.constant 0 : index
    %28 = vector.load %arg14[%c0_28, %c0_29] : memref<256x4xbf16, #tpu.memory_space<vmem>>, vector<256x4xbf16>
    %29 = arith.truncf %27 : vector<4x32xf32> to vector<4x32xbf16>
    %cst_30 = arith.constant dense<0.000000e+00> : vector<256x32xf32>
    %30 = tpu.matmul %28, %29, %cst_30 {dimension_numbers = #tpu.dot_dimension_numbers<[1], [0], [0], [1], [0, 0, 1, 1], [], []>} : vector<256x4xbf16>, vector<4x32xbf16>, vector<256x32xf32> -> vector<256x32xf32>
    %31 = arith.addf %22, %30 : vector<256x32xf32>
    %c0_31 = arith.constant 0 : index
    %c0_32 = arith.constant 0 : index
    %c0_33 = arith.constant 0 : index
    %32 = vector.load %arg5[%c0_31, %c0_32, %c0_33] : memref<1x16x32xf32, #tpu.memory_space<vmem>>, vector<1x16x32xf32>
    %33 = vector.shape_cast %32 : vector<1x16x32xf32> to vector<16x32xf32>
    %34 = arith.truncf %33 : vector<16x32xf32> to vector<16x32xbf16>
    %c0_34 = arith.constant 0 : index
    %c0_35 = arith.constant 0 : index
    %35 = vector.load %arg10[%c0_34, %c0_35] : memref<32x32xbf16, #tpu.memory_space<vmem>>, vector<32x32xbf16>
    %cst_36 = arith.constant dense<0.000000e+00> : vector<16x32xf32>
    %36 = tpu.matmul %34, %35, %cst_36 {dimension_numbers = #tpu.dot_dimension_numbers<[1], [0], [0], [1], [0, 0, 1, 1], [], []>} : vector<16x32xbf16>, vector<32x32xbf16>, vector<16x32xf32> -> vector<16x32xf32>
    %c0_37 = arith.constant 0 : index
    %c0_38 = arith.constant 0 : index
    %37 = vector.load %arg13[%c0_37, %c0_38] : memref<256x16xbf16, #tpu.memory_space<vmem>>, vector<256x16xbf16>
    %38 = arith.truncf %36 : vector<16x32xf32> to vector<16x32xbf16>
    %cst_39 = arith.constant dense<0.000000e+00> : vector<256x32xf32>
    %39 = tpu.matmul %37, %38, %cst_39 {dimension_numbers = #tpu.dot_dimension_numbers<[1], [0], [0], [1], [0, 0, 1, 1], [], []>} : vector<256x16xbf16>, vector<16x32xbf16>, vector<256x32xf32> -> vector<256x32xf32>
    %40 = arith.addf %31, %39 : vector<256x32xf32>
    %c0_40 = arith.constant 0 : index
    %c0_41 = arith.constant 0 : index
    %41 = vector.load %arg11[%c0_40, %c0_41] : memref<1x32xf32, #tpu.memory_space<vmem>>, vector<1x32xf32>
    %42 = vector.broadcast %41 : vector<1x32xf32> to vector<256x32xf32>
    %43 = arith.addf %40, %42 : vector<256x32xf32>
    %c0_42 = arith.constant 0 : index
    %c0_43 = arith.constant 0 : index
    %44 = vector.load %arg15[%c0_42, %c0_43] : memref<3x32xbf16, #tpu.memory_space<vmem>>, vector<3x32xbf16>
    %45 = arith.truncf %43 : vector<256x32xf32> to vector<256x32xbf16>
    %cst_44 = arith.constant dense<0.000000e+00> : vector<3x256xf32>
    %46 = tpu.matmul %44, %45, %cst_44 {dimension_numbers = #tpu.dot_dimension_numbers<[1], [1], [0], [0], [0, 0, 1, 0], [], []>} : vector<3x32xbf16>, vector<256x32xbf16>, vector<3x256xf32> -> vector<3x256xf32>
    %c0_45 = arith.constant 0 : index
    %c0_46 = arith.constant 0 : index
    %47 = vector.load %arg16[%c0_45, %c0_46] : memref<3x1xf32, #tpu.memory_space<vmem>>, vector<3x1xf32>
    %48 = vector.broadcast %47 : vector<3x1xf32> to vector<3x256xf32>
    %49 = arith.addf %46, %48 : vector<3x256xf32>
    %c0_47 = arith.constant 0 : index
    %c0_48 = arith.constant 0 : index
    %c0_49 = arith.constant 0 : index
    %50 = vector.load %arg17[%c0_47, %c0_48, %c0_49] : memref<1x3x256xf32, #tpu.memory_space<vmem>>, vector<1x3x256xf32>
    %51 = vector.shape_cast %50 : vector<1x3x256xf32> to vector<3x256xf32>
    %52 = vector.shape_cast %49 : vector<3x256xf32> to vector<1x3x256xf32>
    tpu.vector_store %arg17[%c0_47, %c0_48, %c0_49], %52 {strides = array<i32>} : memref<1x3x256xf32, #tpu.memory_space<vmem>>, vector<1x3x256xf32>,
    return
  }
  func.func @transform_0(%arg0: i32) -> (i32, i32, i32) {
    %c0_i32 = arith.constant 0 : i32
    %c0_i32_0 = arith.constant 0 : i32
    %c0_i32_1 = arith.constant 0 : i32
    return %arg0, %c0_i32, %c0_i32_0 : i32, i32, i32
  }
  func.func @transform_1(%arg0: i32) -> (i32, i32, i32) {
    %c0_i32 = arith.constant 0 : i32
    %c0_i32_0 = arith.constant 0 : i32
    %c0_i32_1 = arith.constant 0 : i32
    return %arg0, %c0_i32, %c0_i32_0 : i32, i32, i32
  }
  func.func @transform_2(%arg0: i32) -> (i32, i32, i32) {
    %c0_i32 = arith.constant 0 : i32
    %c0_i32_0 = arith.constant 0 : i32
    %c0_i32_1 = arith.constant 0 : i32
    return %arg0, %c0_i32, %c0_i32_0 : i32, i32, i32
  }
  func.func @transform_3(%arg0: i32) -> (i32, i32, i32) {
    %c0_i32 = arith.constant 0 : i32
    %c0_i32_0 = arith.constant 0 : i32
    %c0_i32_1 = arith.constant 0 : i32
    return %arg0, %c0_i32, %c0_i32_0 : i32, i32, i32
  }
  func.func @transform_4(%arg0: i32) -> (i32, i32, i32) {
    %c0_i32 = arith.constant 0 : i32
    %c0_i32_0 = arith.constant 0 : i32
    %c0_i32_1 = arith.constant 0 : i32
    return %arg0, %c0_i32, %c0_i32_0 : i32, i32, i32
  }
  func.func @transform_5(%arg0: i32) -> (i32, i32) {
    %c0_i32 = arith.constant 0 : i32
    %c0_i32_0 = arith.constant 0 : i32
    %c0_i32_1 = arith.constant 0 : i32
    return %c0_i32, %c0_i32_0 : i32, i32
  }
  func.func @transform_6(%arg0: i32) -> (i32, i32) {
    %c0_i32 = arith.constant 0 : i32
    %c0_i32_0 = arith.constant 0 : i32
    %c0_i32_1 = arith.constant 0 : i32
    return %c0_i32, %c0_i32_0 : i32, i32
  }
  func.func @transform_7(%arg0: i32) -> (i32, i32) {
    %c0_i32 = arith.constant 0 : i32
    %c0_i32_0 = arith.constant 0 : i32
    %c0_i32_1 = arith.constant 0 : i32
    return %c0_i32, %c0_i32_0 : i32, i32
  }
  func.func @transform_8(%arg0: i32) -> (i32, i32) {
    %c0_i32 = arith.constant 0 : i32
    %c0_i32_0 = arith.constant 0 : i32
    %c0_i32_1 = arith.constant 0 : i32
    return %c0_i32, %c0_i32_0 : i32, i32
  }
  func.func @transform_9(%arg0: i32) -> (i32, i32) {
    %c0_i32 = arith.constant 0 : i32
    %c0_i32_0 = arith.constant 0 : i32
    %c0_i32_1 = arith.constant 0 : i32
    return %c0_i32, %c0_i32_0 : i32, i32
  }
  func.func @transform_10(%arg0: i32) -> (i32, i32) {
    %c0_i32 = arith.constant 0 : i32
    %c0_i32_0 = arith.constant 0 : i32
    %c0_i32_1 = arith.constant 0 : i32
    return %c0_i32, %c0_i32_0 : i32, i32
  }
  func.func @transform_11(%arg0: i32) -> (i32, i32) {
    %c0_i32 = arith.constant 0 : i32
    %c0_i32_0 = arith.constant 0 : i32
    %c0_i32_1 = arith.constant 0 : i32
    return %c0_i32, %c0_i32_0 : i32, i32
  }
  func.func @transform_12(%arg0: i32) -> (i32, i32) {
    %c0_i32 = arith.constant 0 : i32
    %c0_i32_0 = arith.constant 0 : i32
    %c0_i32_1 = arith.constant 0 : i32
    return %c0_i32, %c0_i32_0 : i32, i32
  }
  func.func @transform_13(%arg0: i32) -> (i32, i32) {
    %c0_i32 = arith.constant 0 : i32
    %c0_i32_0 = arith.constant 0 : i32
    %c0_i32_1 = arith.constant 0 : i32
    return %c0_i32, %c0_i32_0 : i32, i32
  }
  func.func @transform_14(%arg0: i32) -> (i32, i32) {
    %c0_i32 = arith.constant 0 : i32
    %c0_i32_0 = arith.constant 0 : i32
    %c0_i32_1 = arith.constant 0 : i32
    return %c0_i32, %c0_i32_0 : i32, i32
  }
  func.func @transform_15(%arg0: i32) -> (i32, i32) {
    %c0_i32 = arith.constant 0 : i32
    %c0_i32_0 = arith.constant 0 : i32
    %c0_i32_1 = arith.constant 0 : i32
    return %c0_i32, %c0_i32_0 : i32, i32
  }
  func.func @transform_16(%arg0: i32) -> (i32, i32, i32) {
    %c0_i32 = arith.constant 0 : i32
    %c0_i32_0 = arith.constant 0 : i32
    %c0_i32_1 = arith.constant 0 : i32
    return %arg0, %c0_i32, %c0_i32_0 : i32, i32, i32
  }
}

</mosaic_0001>

<bundles_post_ra>
// kernel: jepa_segmentor_forward.8
= control target key start
LH: loop header
LB: loop body
LE: loop exit
PB: predicated region body
PF: predicated region fallthrough
CT: control target
= control target key end

     0   :  { %s640_s12 = smov 0   ;;  %s642_s13 = smov 0   ;;  %s754_s0 = inlined_call_operand.vmem [shape: f32[32,32], index: 0, kind: input, shape index: {}]   ;;  %s755_s1 = inlined_call_operand.vmem [shape: bf16[32,1024], index: 1, kind: input, shape index: {}]   ;;  %s756_s2 = inlined_call_operand.vmem [shape: f32[1,1024], index: 2, kind: input, shape index: {}]   ;;  %s757_s3 = inlined_call_operand.vmem [shape: f32[32,1024], index: 3, kind: output, shape index: {}]  }
   0x1   :  { %s644_s14 = smov 0  }
   0x2 LB: > { %s656_s15 = sadd.s32 4294967295, %s618_s14   ;;  %s659_s16 = sadd.s32 1, %s618_s14   ;;  %s618_s14 = sphi %s644_s14, %s761_s14   ;;  %s614_s13 = sphi %s642_s13, %s760_s13   ;;  %s610_s12 = sphi %s640_s12, %s759_s12  }
   0x3   : > { %s38_s17 = ssub.s32 %s618_s14, %s659_s16  ;;  %s41_s18 = sadd.s32 1, %s614_s13 }
   0x4   : > { %p39_p0 = scmp.eq.s32.totalorder %s38_s17, 0  ;;  %p48_p1 = scmp.ne.s32.totalorder %s614_s13, %s610_s12 }
   0x5   : > { %p49_p2 = scmp.eq.s32.totalorder %s618_s14, 0  ;;  %p104_p3 = scmp.eq.s32.totalorder %s656_s15, 1 }
   0x6   : > { %s669_s19 = scalar_select %p39_p0, %s614_s13, %s41_s18  }
   0x7   : > { %p50_p4 = por %p49_p2, %p48_p1  ;;  %p671_p5 = por %p104_p3, %p48_p1 }
   0x8   : > { %p509_p6 = scmp.ge.s32.totalorder %s618_s14, 2 }
   0xa   : > { %129 = sbr.rel (%p509_p6) target bundleno = 27 (0x1b), region = 20 }
   0xf   : > { %132 = sbr.rel (!%p50_p4) target bundleno = 27 (0x1b), region = 24  ;;  %s134_s21 = sand.u32 (%p50_p4), 1, %s614_s13  }
  0x10   : > { %s562_s22 = sshll.u32 (%p50_p4), %s618_s14, 4  ;;  %s510_s23 = sshll.u32 (%p50_p4), %s134_s21, 6 }
  0x11   : > { %s139_s26 = scalar_lea.vmem (%p50_p4), %s755_s1, %s562_s22  ;;  %s136_s27 = scalar_lea.vmem (%p50_p4), [#allocation2], %s510_s23 }
  0x12   : > { %v152_v0 = vld [vmem:[%s139_s26] sm:$0xff] (%p50_p4)  ;;  %v154_v1 = vld [vmem:[%s139_s26 + $0x8] sm:$0xff] (%p50_p4) }
  0x13   : > { %v156_v2 = vld [vmem:[%s139_s26 + $0x20] sm:$0xff] (%p50_p4)  ;;  %153 = vst [vmem:[%s136_s27] sm:$0xff] (%p50_p4), %v152_v0  ;;  %v158_v3 = vld [vmem:[%s139_s26 + $0x28] sm:$0xff] (%p50_p4) }
  0x14   : > { %155 = vst [vmem:[%s136_s27 + $0x8] sm:$0xff] %v154_v1  ;;  %v160_v4 = vld [vmem:[%s139_s26 + $0x40] sm:$0xff]  ;;  %v162_v5 = vld [vmem:[%s139_s26 + $0x48] sm:$0xff] }
  0x15   : > { %157 = vst [vmem:[%s136_s27 + $0x10] sm:$0xff] %v156_v2  ;;  %v164_v6 = vld [vmem:[%s139_s26 + $0x60] sm:$0xff]  ;;  %v166_v7 = vld [vmem:[%s139_s26 + $0x68] sm:$0xff] }
  0x16   : > { %159 = vst [vmem:[%s136_s27 + $0x18] sm:$0xff] %v158_v3 }
  0x17   : > { %161 = vst [vmem:[%s136_s27 + $0x20] sm:$0xff] %v160_v4 }
  0x18   : > { %163 = vst [vmem:[%s136_s27 + $0x28] sm:$0xff] %v162_v5 }
  0x19   : > { %165 = vst [vmem:[%s136_s27 + $0x30] sm:$0xff] %v164_v6 }
  0x1a   : > { %167 = vst [vmem:[%s136_s27 + $0x38] sm:$0xff] %v166_v7 }
  0x1b PF: > { %p513_p7 = scmp.ge.s32.totalorder %s618_s14, 1  ;;  %p180_p8 = scmp.lt.s32.totalorder %s618_s14, 3 }
  0x1d   : > { %p181_p9 = pnand %p513_p7, %p180_p8 }
  0x1e   : > { %s187_s28 = sand.u32 (!%p181_p9), 1, %s610_s12   ;;  %s516_s14 = sshll.u32 (!%p181_p9), %s656_s15, 2 }
  0x1f   : > { %184 = sbr.rel (%p181_p9) target bundleno = 216 (0xd8), region = 51  ;;  %s514_s29 = sshll.u32 (!%p181_p9), %s187_s28, 6 }
  0x20   : > { %s189_s30 = scalar_lea.vmem (!%p181_p9), [#allocation2], %s514_s29  ;;  %p215_p10 = scmp.lt.s32.totalorder (!%p181_p9), %s516_s14, 7 }
  0x21   : > { %s515_s22 = sshll.u32 (!%p181_p9), %s187_s28, 7 }
  0x22   : > { %s704_s23 = scalar_lea.vmem (!%p181_p9), [#allocation3], %s515_s22 }
  0x24   : > { %v535_v8 = vld [vmem:[%s189_s30 + $0x20] sm:$0xf]  ;;  %v569_v9 = vld [vmem:[%s189_s30 + $0x2c] sm:$0xf0]  ;;  %v567_v10 = vld [vmem:[%s189_s30 + $0x24] sm:$0xf] }
  0x25   : > { %v536_v11 = vor.u32 %v569_v9, %v535_v8  ;;  %v537_v12 = vld [vmem:[%s189_s30 + $0x30] sm:$0xf0]  ;;  %v543_v13 = vld [vmem:[%s189_s30 + $0x28] sm:$0xf]  ;;  %v570_v14 = vld [vmem:[%s189_s30 + $0x34] sm:$0xf0] }
  0x26   : > { %v221_v15 = vld [vmem:[%s754_s0] sm:$0xff]  ;;  %v222_v16 = vld [vmem:[%s754_s0 + $0x8] sm:$0xff]  ;;  %v540_v17 = vor.u32 %v567_v10, %v537_v12  ;;  %v544_v18 = vor.u32 %v570_v14, %v543_v13  ;;  %v545_v20 = vld [vmem:[%s189_s30 + $0x38] sm:$0xf0]  ;;  %vm285_vm0 = vcmask 261120   ;;  %s763_s14 = smov (!%p215_p10, %s516_s14), 7 }
  0x27   : > { %v568_v19 = vld [vmem:[%s189_s30 + $0x2c] sm:$0xf]  ;;  %v519_v21 = vld [vmem:[%s189_s30] sm:$0xf]  ;;  %298 = vmatpush.bf16.msra.mxu0 %v536_v11  ;;  %v565_v23 = vld [vmem:[%s189_s30 + $0xc] sm:$0xf0]  ;;  %v225_v34 = vpack.c.bf16 %v222_v16, %v221_v15  ;;  %s217_s21 = scalar_lea.vmem %s756_s2, %s763_s14 }
  0x28   : > { %v548_v22 = vor.u32 %v568_v19, %v545_v20  ;;  %v563_v24 = vld [vmem:[%s189_s30 + $0x4] sm:$0xf]  ;;  %v521_v25 = vld [vmem:[%s189_s30 + $0x10] sm:$0xf0]  ;;  %317 = vmatpush.bf16.msra.mxu1 %v540_v17  ;;  %336 = vmatpush.bf16.msra.mxu2 %v544_v18  ;;  %v520_v26 = vor.u32 %v565_v23, %v519_v21  ;;  %v527_v28 = vld [vmem:[%s189_s30 + $0x8] sm:$0xf] }
  0x29   : > { %v524_v27 = vor.u32 %v563_v24, %v521_v25  ;;  %v566_v29 = vld [vmem:[%s189_s30 + $0x14] sm:$0xf0]  ;;  %v564_v30 = vld [vmem:[%s189_s30 + $0xc] sm:$0xf]  ;;  %v529_v32 = vld [vmem:[%s189_s30 + $0x18] sm:$0xf0] }
  0x2a   : > { %355 = vmatpush.bf16.msra.mxu3 %v548_v22  ;;  %v528_v31 = vor.u32 %v566_v29, %v527_v28  ;;  %v532_v33 = vor.u32 %v564_v30, %v529_v32  ;;  %v223_v35 = vld [vmem:[%s754_s0 + $0x10] sm:$0xff]  ;;  %v224_v36 = vld [vmem:[%s754_s0 + $0x18] sm:$0xff]  ;;  %v235_v38 = vld [vmem:[%s217_s21] sm:$0xf]  ;;  %s571_s12 = sshll.u32 (%p671_p5), %s656_s15, 5 }
  0x2b   : > { %299 = vmatpush.bf16.msra.mxu0 %v520_v26  ;;  %v226_v37 = vpack.c.bf16 %v224_v36, %v223_v35  ;;  %v237_v39 = vperm.slane %v235_v38, 0  ;;  %v238_v40 = vperm.slane %v235_v38, 1  ;;  %v239_v45 = vperm.slane %v235_v38, 2  ;;  %s393_s26 = scalar_lea.vmem (%p671_p5), %s757_s3, %s571_s12 }
  0x2c   : > { %318 = vmatpush.bf16.msra.mxu1 %v524_v27  ;;  %337 = vmatpush.bf16.msra.mxu2 %v528_v31  ;;  %v240_v46 = vperm.slane %v235_v38, 3 }
  0x2e   : > { %356 = vmatpush.bf16.msra.mxu3 %v532_v33  ;;  %549 = vmatmul.msk.bf16.vlgmr.msra.gmra.mxu0 %vm285_vm0, %v225_v34 }
  0x2f   : > { %551 = vmatmul.msk.bf16.vlgmr.msra.gmra.mxu1 %vm285_vm0, %v225_v34  ;;  %553 = vmatmul.msk.bf16.vlgmr.msra.gmra.mxu2 %vm285_vm0, %v225_v34 }
  0x31   : > { %555 = vmatmul.msk.bf16.vlgmr.msra.gmra.mxu3 %vm285_vm0, %v225_v34 }
  0x3e   : > { %550 = vmatmul.msk.bf16.gmra.mxu0 %vm285_vm0, %v226_v37 }
  0x3f   : > { %552 = vmatmul.msk.bf16.gmra.mxu1 %vm285_vm0, %v226_v37  ;;  %554 = vmatmul.msk.bf16.gmra.mxu2 %vm285_vm0, %v226_v37 }
  0x41   : > { %556 = vmatmul.msk.bf16.gmra.mxu3 %vm285_vm0, %v226_v37 }
  0xab   : > { %v301_v41 = vpop.f32.mrf.mxu0 }
  0xac   : > { %v302_v42 = vadd.f32 %v301_v41, %v237_v39  ;;  %v320_v43 = vpop.f32.mrf.mxu1 }
  0xad   : > { %v321_v44 = vadd.f32 %v320_v43, %v238_v40 }
  0xae   : > { %368 = vst [vmem:[%s704_s23] sm:$0xff] %v302_v42 }
  0xaf   : > { %369 = vst [vmem:[%s704_s23 + $0x8] sm:$0xff] %v321_v44 }
  0xb2   : > { %v339_v47 = vpop.f32.mrf.mxu2 }
  0xb3   : > { %v340_v48 = vadd.f32 %v339_v47, %v239_v45  ;;  %v303_v50 = vpop.f32.mrf.mxu0 }
  0xb4   : > { %v358_v49 = vpop.f32.mrf.mxu3  ;;  %v304_v52 = vadd.f32 %v303_v50, %v237_v39  ;;  %v322_v53 = vpop.f32.mrf.mxu1 }
  0xb5   : > { %v359_v51 = vadd.f32 %v358_v49, %v240_v46  ;;  %370 = vst [vmem:[%s704_s23 + $0x10] sm:$0xff] %v340_v48  ;;  %v323_v54 = vadd.f32 %v322_v53, %v238_v40  ;;  %v406_v11 = vld [vmem:[%s704_s23] sm:$0xff] (%p671_p5) }
  0xb6   : > { %372 = vst [vmem:[%s704_s23 + $0x20] sm:$0xff] %v304_v52  ;;  %v408_v12 = vld [vmem:[%s704_s23 + $0x8] sm:$0xff] (%p671_p5) }
  0xb7   : > { %371 = vst [vmem:[%s704_s23 + $0x18] sm:$0xff] %v359_v51 }
  0xb8   : > { %373 = vst [vmem:[%s704_s23 + $0x28] sm:$0xff] %v323_v54 }
  0xb9   : > { %407 = vst [vmem:[%s393_s26] sm:$0xff] (%p671_p5), %v406_v11 }
  0xba   : > { %v341_v55 = vpop.f32.mrf.mxu2  ;;  %409 = vst [vmem:[%s393_s26 + $0x8] sm:$0xff] (%p671_p5), %v408_v12 }
  0xbb   : > { %v342_v56 = vadd.f32 %v341_v55, %v239_v45  ;;  %v306_v58 = vpop.f32.mrf.mxu0 }
  0xbc   : > { %v360_v57 = vpop.f32.mrf.mxu3  ;;  %v307_v60 = vadd.f32 %v306_v58, %v237_v39  ;;  %v325_v61 = vpop.f32.mrf.mxu1  ;;  %v410_v13 = vld [vmem:[%s704_s23 + $0x10] sm:$0xff] (%p671_p5) }
  0xbd   : > { %v361_v59 = vadd.f32 %v360_v57, %v240_v46  ;;  %374 = vst [vmem:[%s704_s23 + $0x30] sm:$0xff] %v342_v56  ;;  %v326_v62 = vadd.f32 %v325_v61, %v238_v40  ;;  %v414_v15 = vld [vmem:[%s704_s23 + $0x20] sm:$0xff] (%p671_p5) }
  0xbe   : > { %376 = vst [vmem:[%s704_s23 + $0x40] sm:$0xff] %v307_v60  ;;  %v412_v14 = vld [vmem:[%s704_s23 + $0x18] sm:$0xff] (%p671_p5) }
  0xbf   : > { %375 = vst [vmem:[%s704_s23 + $0x38] sm:$0xff] %v361_v59  ;;  %v416_v16 = vld [vmem:[%s704_s23 + $0x28] sm:$0xff] (%p671_p5) }
  0xc0   : > { %377 = vst [vmem:[%s704_s23 + $0x48] sm:$0xff] %v326_v62 }
  0xc1   : > { %411 = vst [vmem:[%s393_s26 + $0x10] sm:$0xff] (%p671_p5), %v410_v13 }
  0xc2   : > { %v344_v63 = vpop.f32.mrf.mxu2  ;;  %413 = vst [vmem:[%s393_s26 + $0x18] sm:$0xff] (%p671_p5), %v412_v14 }
  0xc3   : > { %v345_v0 = vadd.f32 %v344_v63, %v239_v45  ;;  %v308_v2 = vpop.f32.mrf.mxu0  ;;  %415 = vst [vmem:[%s393_s26 + $0x40] sm:$0xff] (%p671_p5), %v414_v15 }
  0xc4   : > { %v363_v1 = vpop.f32.mrf.mxu3  ;;  %v309_v4 = vadd.f32 %v308_v2, %v237_v39  ;;  %v327_v5 = vpop.f32.mrf.mxu1  ;;  %v418_v17 = vld [vmem:[%s704_s23 + $0x30] sm:$0xff] (%p671_p5)  ;;  %417 = vst [vmem:[%s393_s26 + $0x48] sm:$0xff] (%p671_p5), %v416_v16 }
  0xc5   : > { %v364_v3 = vadd.f32 %v363_v1, %v240_v46  ;;  %378 = vst [vmem:[%s704_s23 + $0x50] sm:$0xff] %v345_v0  ;;  %v328_v6 = vadd.f32 %v327_v5, %v238_v40  ;;  %v422_v19 = vld [vmem:[%s704_s23 + $0x40] sm:$0xff] (%p671_p5) }
  0xc6   : > { %380 = vst [vmem:[%s704_s23 + $0x60] sm:$0xff] %v309_v4  ;;  %v420_v18 = vld [vmem:[%s704_s23 + $0x38] sm:$0xff] (%p671_p5) }
  0xc7   : > { %379 = vst [vmem:[%s704_s23 + $0x58] sm:$0xff] %v364_v3  ;;  %v424_v20 = vld [vmem:[%s704_s23 + $0x48] sm:$0xff] (%p671_p5) }
  0xc8   : > { %381 = vst [vmem:[%s704_s23 + $0x68] sm:$0xff] %v328_v6 }
  0xc9   : > { %419 = vst [vmem:[%s393_s26 + $0x50] sm:$0xff] (%p671_p5), %v418_v17 }
  0xca   : > { %v346_v7 = vpop.f32.mrf.mxu2  ;;  %421 = vst [vmem:[%s393_s26 + $0x58] sm:$0xff] (%p671_p5), %v420_v18 }
  0xcb   : > { %v347_v8 = vadd.f32 %v346_v7, %v239_v45  ;;  %390 = sbr.rel (!%p671_p5) target bundleno = 216 (0xd8), region = 59  ;;  %423 = vst [vmem:[%s393_s26 + $0x80] sm:$0xff] (%p671_p5), %v422_v19 }
  0xcc   : > { %v365_v9 = vpop.f32.mrf.mxu3  ;;  %v426_v21 = vld [vmem:[%s704_s23 + $0x50] sm:$0xff] (%p671_p5)  ;;  %425 = vst [vmem:[%s393_s26 + $0x88] sm:$0xff] (%p671_p5), %v424_v20 }
  0xcd   : > { %v366_v10 = vadd.f32 %v365_v9, %v240_v46  ;;  %382 = vst [vmem:[%s704_s23 + $0x70] sm:$0xff] %v347_v8  ;;  %v430_v23 = vld [vmem:[%s704_s23 + $0x60] sm:$0xff] (%p671_p5) }
  0xce   : > { %v428_v22 = vld [vmem:[%s704_s23 + $0x58] sm:$0xff] (%p671_p5)  ;;  %427 = vst [vmem:[%s393_s26 + $0x90] sm:$0xff] (%p671_p5), %v426_v21 }
  0xcf   : > { %383 = vst [vmem:[%s704_s23 + $0x78] sm:$0xff] %v366_v10  ;;  %v432_v24 = vld [vmem:[%s704_s23 + $0x68] sm:$0xff] (%p671_p5) }
  0xd0   : > { %429 = vst [vmem:[%s393_s26 + $0x98] sm:$0xff] %v428_v22 }
  0xd1   : > { %431 = vst [vmem:[%s393_s26 + $0xc0] sm:$0xff] %v430_v23 }
  0xd2   : > { %433 = vst [vmem:[%s393_s26 + $0xc8] sm:$0xff] %v432_v24 }
  0xd4   : > { %v434_v25 = vld [vmem:[%s704_s23 + $0x70] sm:$0xff] }
  0xd5   : > { %435 = vst [vmem:[%s393_s26 + $0xd0] sm:$0xff] %v434_v25 }
  0xd6   : > { %v436_v26 = vld [vmem:[%s704_s23 + $0x78] sm:$0xff] }
  0xd7   : > { %437 = vst [vmem:[%s393_s26 + $0xd8] sm:$0xff] %v436_v26 }
  0xd8 PF: > { %p10_p11 = scmp.ge.s32.totalorder %s659_s16, 4   ;;  %s759_s12 = smov %s614_s13 }
  0xd9   : > { %s760_s13 = smov %s669_s19  ;;  %s761_s14 = smov %s659_s16 }
  0xda   :  { %12 = sbr.rel (!%p10_p11) target bundleno = 2 (0x2), region = 116 }

// kernel: jepa_segmentor_forward.6
= control target key start
LH: loop header
LB: loop body
LE: loop exit
PB: predicated region body
PF: predicated region fallthrough
CT: control target
= control target key end

     0   :  { %s665_s27 = smov 0   ;;  %s739_s0 = inlined_call_operand.vmem [shape: f32[2,16,64], index: 0, kind: input, shape index: {}]   ;;  %s740_s1 = inlined_call_operand.vmem [shape: f32[16,64], index: 1, kind: input, shape index: {}]   ;;  %s741_s2 = inlined_call_operand.vmem [shape: f32[16,64], index: 2, kind: input, shape index: {}]   ;;  %s742_s3 = inlined_call_operand.vmem [shape: bf16[64,32], index: 3, kind: input, shape index: {}]   ;;  %s743_s4 = inlined_call_operand.vmem [shape: f32[1,32], index: 4, kind: input, shape index: {}]   ;;  %s744_s5 = inlined_call_operand.vmem [shape: f32[16,32], index: 5, kind: input, shape index: {}]   ;;  %s745_s6 = inlined_call_operand.vmem [shape: f32[1,32], index: 6, kind: input, shape index: {}]   ;;  %s746_s7 = inlined_call_operand.vmem [shape: f32[1,32], index: 7, kind: input, shape index: {}]   ;;  %s747_s8 = inlined_call_operand.vmem [shape: f32[2,16,32], index: 8, kind: output, shape index: {}]  }
   0x1 LB: > { %s549_s28 = sadd.s32 4294967295, %s616_s27   ;;  %p553_p0 = scmp.ge.s32.totalorder %s616_s27, 1  ;;  %s616_s27 = sphi %s665_s27, %s18_s27  }
   0x2   : > { %p262_p1 = scmp.lt.s32.totalorder %s616_s27, 3 }
   0x4   : > { %p263_p2 = pnand %p553_p0, %p262_p1 }
   0x5   : > { %p296_p3 = scmp.lt.s32.totalorder (!%p263_p2), %s549_s28, 1 }
   0x6   : > { %266 = sbr.rel (%p263_p2) target bundleno = 822 (0x336), region = 52 }
   0xb   : > { %s749_s28 = smov (!%p296_p3, %s549_s28), 1  ;;  %vm309_vm0 = vcmask 523264   ;;  %v618_v12 = vmov 1024.0   ;;  %v582_v35 = vld [vmem:[%s742_s3 + $0x18] sm:$0xff]  ;;  %v581_v36 = vld [vmem:[%s742_s3 + $0x10] sm:$0xff]  ;;  %v580_v37 = vld [vmem:[%s742_s3 + $0x8] sm:$0xff] }
   0xc   : > { %s577_s29 = sshll.u32 %s749_s28, 4  ;;  %600 = vrcp.f32 %v618_v12  ;;  %414 = vmatpush.bf16.msra.mxu0 %v582_v35  ;;  %v579_v38 = vld [vmem:[%s742_s3] sm:$0xff]  ;;  %v363_v50 = vld [vmem:[%s740_s1 + $0x8] sm:$0xff]  ;;  %vm428_vm5 = vcmask 261120  }
   0xd   : > { %s300_s10 = scalar_lea.vmem %s739_s0, %s577_s29  ;;  %v362_v49 = vld [vmem:[%s740_s1] sm:$0xff]  ;;  %v367_v54 = vld [vmem:[%s741_s2 + $0x8] sm:$0xff]  ;;  %s305_s22 = scalar_lea.vmem %s747_s8, %s577_s29 }
   0xe   : > { %v307_v0 = vld [vmem:[%s300_s10] sm:$0xff]  ;;  %v308_v1 = vld [vmem:[%s300_s10 + $0x8] sm:$0xff] }
   0xf   : > { %v310_v2 = vsel %vm309_vm0, %v307_v0, 0.0  ;;  %v311_v3 = vsel %vm309_vm0, %v308_v1, 0.0  ;;  %v366_v53 = vld [vmem:[%s741_s2] sm:$0xff] }
  0x10   : > { %v312_v4 = vadd.f32 %v311_v3, %v310_v2  ;;  %415 = vmatpush.bf16.msra.mxu0 %v581_v36  ;;  %v597_v60 = vld [vmem:[%s743_s4] ss:$0 sm:$0xff]  ;;  %v425_v3 = vld [vmem:[%s744_s5 + $0x8] sm:$0xff] }
  0x11   : > { %v424_v62 = vld [vmem:[%s744_s5] sm:$0xff] }
  0x12   : > { %313 = vadd.xlane.f32.xlu0 %v312_v4  ;;  %v601_v13 = vpop.eup %600 }
  0x13   : > { %v324_v14 = vmul.f32 1024.0, %v601_v13  ;;  %vm328_vm1 = vweird.f32 %v601_v13 }
  0x14   : > { %416 = vmatpush.bf16.msra.mxu0 %v580_v37 }
  0x15   : > { %v325_v15 = vsub.f32 1.0, %v324_v14 }
  0x17   : > { %v326_v16 = vmul.f32 %v601_v13, %v325_v15 }
  0x18   : > { %417 = vmatpush.bf16.msra.mxu0 %v579_v38  ;;  %v598_v38 = vld [vmem:[%s745_s6] ss:$0 sm:$0xff] }
  0x19   : > { %v327_v17 = vadd.f32 %v601_v13, %v326_v16 }
  0x1b   : > { %v329_v18 = vsel %vm328_vm1, %v601_v13, %v327_v17 }
  0x85   : > { %v314_v5 = vpop.xlane.xlu0 %313 }
  0x86   : > { %v315_v6 = vrot.slane %v314_v5, 4 }
  0x88   : > { %v316_v7 = vadd.f32 %v315_v6, %v314_v5 }
  0x8a   : > { %v317_v8 = vrot.slane %v316_v7, 2 }
  0x8c   : > { %v318_v9 = vadd.f32 %v317_v8, %v316_v7  ;;  %v619_v7 = vmov 32.0  }
  0x8e   : > { %v319_v10 = vrot.slane %v318_v9, 1 }
  0x90   : > { %v320_v11 = vadd.f32 %v319_v10, %v318_v9 }
  0x92   : > { %583 = vpush %v320_v11 }
  0xc3   : > { %s584_s11 = spop %583 }
  0xc4   : > { %v322_v19 = vstv %s584_s11 }
  0xc5   : > { %v330_v20 = vmul.f32 %v329_v18, %v322_v19 }
  0xc7   : > { %v331_v21 = vsub.f32 %v307_v0, %v330_v20  ;;  %v332_v22 = vsub.f32 %v308_v1, %v330_v20 }
  0xc9   : > { %v333_v23 = vmul.f32 %v331_v21, %v331_v21  ;;  %v334_v24 = vmul.f32 %v332_v22, %v332_v22 }
  0xcb   : > { %v335_v25 = vsel %vm309_vm0, %v333_v23, 0.0  ;;  %v336_v26 = vsel %vm309_vm0, %v334_v24, 0.0 }
  0xcc   : > { %v337_v27 = vadd.f32 %v336_v26, %v335_v25 }
  0xce   : > { %338 = vadd.xlane.f32.xlu0 %v337_v27 }
 0x141   : > { %v339_v28 = vpop.xlane.xlu0 %338 }
 0x142   : > { %v340_v29 = vrot.slane %v339_v28, 4 }
 0x144   : > { %v341_v30 = vadd.f32 %v340_v29, %v339_v28 }
 0x146   : > { %v342_v31 = vrot.slane %v341_v30, 2 }
 0x148   : > { %v343_v32 = vadd.f32 %v342_v31, %v341_v30 }
 0x14a   : > { %v344_v33 = vrot.slane %v343_v32, 1 }
 0x14c   : > { %v345_v34 = vadd.f32 %v344_v33, %v343_v32 }
 0x14e   : > { %585 = vpush %v345_v34 }
 0x17f   : > { %s586_s20 = spop %585 }
 0x180   : > { %v347_v39 = vstv %s586_s20 }
 0x181   : > { %v348_v40 = vmul.f32 %v347_v39, %v329_v18 }
 0x183   : > { %v349_v41 = vadd.f32 1e-05, %v348_v40 }
 0x185   : > { %602 = vrsqrt.f32 %v349_v41  ;;  %vm356_vm3 = vweird.f32 %v349_v41 }
 0x186   : > { %604 = vrcp.f32 %v619_v7 }
 0x18b   : > { %v603_v42 = vpop.eup %602 }
 0x18c   : > { %v351_v43 = vmul.f32 %v603_v42, %v349_v41  ;;  %vm357_vm2 = vweird.f32 %v603_v42  ;;  %v605_v8 = vpop.eup %604  ;;  %v599_v41 = vld [vmem:[%s746_s7] ss:$0 sm:$0xff] }
 0x18d   : > { %vm358_vm4 = vmor %vm356_vm3, %vm357_vm2  ;;  %v436_v9 = vmul.f32 32.0, %v605_v8  ;;  %vm440_vm6 = vweird.f32 %v605_v8 }
 0x18e   : > { %v352_v44 = vmul.f32 %v603_v42, %v351_v43 }
 0x18f   : > { %v437_v10 = vsub.f32 1.0, %v436_v9 }
 0x190   : > { %v353_v45 = vmul.f32 0.5, %v352_v44 }
 0x191   : > { %v438_v11 = vmul.f32 %v605_v8, %v437_v10 }
 0x192   : > { %v354_v46 = vsub.f32 1.5, %v353_v45 }
 0x193   : > { %v439_v12 = vadd.f32 %v605_v8, %v438_v11 }
 0x194   : > { %v355_v47 = vmul.f32 %v603_v42, %v354_v46 }
 0x195   : > { %v441_v13 = vsel %vm440_vm6, %v605_v8, %v439_v12 }
 0x196   : > { %v359_v48 = vsel %vm358_vm4, %v603_v42, %v355_v47 }
 0x197   : > { %v360_v51 = vmul.f32 %v359_v48, %v331_v21  ;;  %v361_v52 = vmul.f32 %v359_v48, %v332_v22 }
 0x199   : > { %v364_v55 = vmul.f32 %v362_v49, %v360_v51  ;;  %v365_v56 = vmul.f32 %v363_v50, %v361_v52 }
 0x19b   : > { %v368_v57 = vadd.f32 %v366_v53, %v364_v55  ;;  %v369_v58 = vadd.f32 %v367_v54, %v365_v56 }
 0x19d   : > { %v370_v59 = vpack.c.bf16 %v369_v58, %v368_v57 }
 0x19f   : > { %574 = vmatmul.msk.bf16.vlgmr.msra.gmra.mxu0 %vm309_vm0, %v370_v59 }
 0x21c   : > { %v419_v61 = vpop.f32.mrf.mxu0 }
 0x21d   : > { %v420_v63 = vadd.f32 %v597_v60, %v419_v61 }
 0x21f   : > { %v426_v0 = vadd.f32 %v424_v62, %v420_v63 }
 0x221   : > { %v429_v1 = vsel %vm428_vm5, %v426_v0, 0.0 }
 0x222   : > { %430 = vadd.xlane.f32.xlu1 %v429_v1 }
 0x224   : > { %v421_v2 = vpop.f32.mrf.mxu0 }
 0x225   : > { %v422_v4 = vadd.f32 %v597_v60, %v421_v2 }
 0x227   : > { %v427_v5 = vadd.f32 %v425_v3, %v422_v4 }
 0x229   : > { %v432_v6 = vsel %vm428_vm5, %v427_v5, 0.0 }
 0x22a   : > { %433 = vadd.xlane.f32.xlu1 %v432_v6 }
 0x295   : > { %v431_v14 = vpop.xlane.xlu1 %430 }
 0x296   : > { %v442_v15 = vmul.f32 %v441_v13, %v431_v14 }
 0x298   : > { %v444_v16 = vsub.f32 %v426_v0, %v442_v15 }
 0x29a   : > { %v446_v17 = vmul.f32 %v444_v16, %v444_v16 }
 0x29c   : > { %v448_v18 = vsel %vm428_vm5, %v446_v17, 0.0 }
 0x29d   : > { %449 = vadd.xlane.f32.xlu2 %v448_v18  ;;  %v434_v19 = vpop.xlane.xlu1 %433 }
 0x29e   : > { %v443_v20 = vmul.f32 %v441_v13, %v434_v19 }
 0x2a0   : > { %v445_v21 = vsub.f32 %v427_v5, %v443_v20 }
 0x2a2   : > { %v447_v22 = vmul.f32 %v445_v21, %v445_v21 }
 0x2a4   : > { %v451_v23 = vsel %vm428_vm5, %v447_v22, 0.0 }
 0x2a5   : > { %452 = vadd.xlane.f32.xlu2 %v451_v23 }
 0x310   : > { %v450_v24 = vpop.xlane.xlu2 %449 }
 0x311   : > { %v454_v25 = vmul.f32 %v450_v24, %v441_v13 }
 0x313   : > { %v456_v26 = vadd.f32 1e-05, %v454_v25 }
 0x315   : > { %606 = vrsqrt.f32 %v456_v26  ;;  %vm464_vm8 = vweird.f32 %v456_v26 }
 0x318   : > { %v453_v27 = vpop.xlane.xlu2 %452 }
 0x319   : > { %v455_v28 = vmul.f32 %v453_v27, %v441_v13 }
 0x31b   : > { %v607_v29 = vpop.eup %606  ;;  %v457_v30 = vadd.f32 1e-05, %v455_v28 }
 0x31c   : > { %v459_v31 = vmul.f32 %v607_v29, %v456_v26  ;;  %vm465_vm7 = vweird.f32 %v607_v29 }
 0x31d   : > { %608 = vrsqrt.f32 %v457_v30  ;;  %vm466_vm9 = vmor %vm464_vm8, %vm465_vm7  ;;  %vm474_vm11 = vweird.f32 %v457_v30 }
 0x31e   : > { %v460_v32 = vmul.f32 %v607_v29, %v459_v31 }
 0x320   : > { %v461_v33 = vmul.f32 0.5, %v460_v32 }
 0x322   : > { %v462_v34 = vsub.f32 1.5, %v461_v33 }
 0x323   : > { %v609_v35 = vpop.eup %608 }
 0x324   : > { %v463_v36 = vmul.f32 %v607_v29, %v462_v34  ;;  %v469_v37 = vmul.f32 %v609_v35, %v457_v30  ;;  %vm475_vm10 = vweird.f32 %v609_v35 }
 0x325   : > { %vm476_vm12 = vmor %vm474_vm11, %vm475_vm10 }
 0x326   : > { %v467_v39 = vsel %vm466_vm9, %v607_v29, %v463_v36  ;;  %v470_v40 = vmul.f32 %v609_v35, %v469_v37 }
 0x327   : > { %v478_v42 = vmul.f32 %v467_v39, %v444_v16 }
 0x328   : > { %v471_v43 = vmul.f32 0.5, %v470_v40 }
 0x329   : > { %v484_v44 = vmul.f32 %v598_v38, %v478_v42 }
 0x32a   : > { %v472_v45 = vsub.f32 1.5, %v471_v43 }
 0x32b   : > { %v490_v46 = vadd.f32 %v599_v41, %v484_v44 }
 0x32c   : > { %v473_v47 = vmul.f32 %v609_v35, %v472_v45 }
 0x32d   : > { %492 = vst.msk [vmem:[%s305_s22] sm:$0xff] %vm428_vm5, %v490_v46 }
 0x32e   : > { %v477_v48 = vsel %vm476_vm12, %v609_v35, %v473_v47 }
 0x32f   : > { %v479_v49 = vmul.f32 %v477_v48, %v445_v21 }
 0x331   : > { %v485_v50 = vmul.f32 %v598_v38, %v479_v49 }
 0x333   : > { %v491_v51 = vadd.f32 %v599_v41, %v485_v50 }
 0x335   : > { %493 = vst.msk [vmem:[%s305_s22 + $0x8] sm:$0xff] %vm428_vm5, %v491_v51 }
 0x336 PF: > { %s18_s27 = sadd.s32 1, %s616_s27  }
 0x337   : > { %p15_p4 = scmp.ge.s32.totalorder %s18_s27, 4  }
 0x339   :  { %17 = sbr.rel (!%p15_p4) target bundleno = 1 (0x1), region = 82 }

// kernel: jepa_segmentor_forward.7
= control target key start
LH: loop header
LB: loop body
LE: loop exit
PB: predicated region body
PF: predicated region fallthrough
CT: control target
= control target key end

     0   :  { %s1630_s25 = smov 0   ;;  %s1632_s26 = smov 0   ;;  %s1866_s0 = inlined_call_operand.vmem [shape: f32[2,16,32], index: 0, kind: input, shape index: {}]   ;;  %s1867_s1 = inlined_call_operand.vmem [shape: f32[5,1,32], index: 1, kind: input, shape index: {}]   ;;  %s1868_s2 = inlined_call_operand.vmem [shape: f32[5,1,32], index: 2, kind: input, shape index: {}]   ;;  %s1869_s3 = inlined_call_operand.vmem [shape: bf16[5,32,96], index: 3, kind: input, shape index: {}]   ;;  %s1870_s4 = inlined_call_operand.vmem [shape: f32[5,1,96], index: 4, kind: input, shape index: {}]   ;;  %s1871_s5 = inlined_call_operand.vmem [shape: bf16[5,32,32], index: 5, kind: input, shape index: {}]   ;;  %s1872_s6 = inlined_call_operand.vmem [shape: f32[5,1,32], index: 6, kind: input, shape index: {}]   ;;  %s1873_s7 = inlined_call_operand.vmem [shape: f32[5,1,32], index: 7, kind: input, shape index: {}]   ;;  %s1874_s8 = inlined_call_operand.vmem [shape: f32[5,1,32], index: 8, kind: input, shape index: {}]   ;;  %s1875_s9 = inlined_call_operand.vmem [shape: bf16[5,32,64], index: 9, kind: input, shape index: {}]   ;;  %s1876_s10 = inlined_call_operand.vmem [shape: f32[5,1,64], index: 10, kind: input, shape index: {}]   ;;  %s1877_s11 = inlined_call_operand.vmem [shape: bf16[5,64,32], index: 11, kind: input, shape index: {}]   ;;  %s1878_s12 = inlined_call_operand.vmem [shape: f32[5,1,32], index: 12, kind: input, shape index: {}]   ;;  %s1879_s13 = inlined_call_operand.vmem [shape: f32[5,2,16,32], index: 13, kind: output, shape index: {}]  }
   0x1   :  { %1884 = sst [smem:[#allocation10_spill]] %s1866_s0  ;;  %s1634_s27 = smov 0  }
   0x2   :  { %1885 = sst [smem:[#allocation11_spill]] %s1868_s2  ;;  %s1636_s28 = smov 0  }
   0x3   :  { %1886 = sst [smem:[#allocation12_spill]] %s1869_s3  ;;  %s1638_s29 = smov 0  }
   0x4   :  { %1887 = sst [smem:[#allocation13_spill]] %s1871_s5 }
   0x5   :  { %1888 = sst [smem:[#allocation14_spill]] %s1875_s9 }
   0x6   :  { %1889 = sst [smem:[#allocation15_spill]] %s1879_s13 }
   0x7 LB: > { %1890 = sst [smem:[#allocation4_spill]] %s1535_s25  ;;  %s32_s30 = sadd.s32 1, %s1543_s27  ;;  %s1551_s29 = sphi %s1638_s29, %s23_s29   ;;  %s1547_s28 = sphi %s1636_s28, %s1914_s28   ;;  %s1543_s27 = sphi %s1634_s27, %s1913_s27   ;;  %s1539_s26 = sphi %s1632_s26, %s1912_s26   ;;  %s1535_s25 = sphi %s1630_s25, %s1911_s25  }
   0x8   : > { %1891 = sst [smem:[#allocation5_spill]] %s1543_s27  ;;  %s35_s14 = sadd.s32 1, %s1547_s28 }
   0x9   : > { %1892 = sst [smem:[#allocation6_spill]] %s1547_s28  ;;  %p33_p0 = scmp.ge.s32.totalorder %s32_s30, 5 }
   0xa   : > { %1893 = sst [smem:[#allocation7_spill]] %s1551_s29  ;;  %p1348_p1 = scmp.ge.s32.totalorder %s1551_s29, 1 }
   0xb   : > { %p505_p2 = scmp.lt.s32.totalorder %s1551_s29, 11  ;;  %s1916_s30 = smov (%p33_p0, %s32_s30), 0 }
   0xc   : > { %1894 = sst [smem:[#allocation8_spill]] %s1916_s30  ;;  %s1918_s14 = smov (!%p33_p0, %s35_s14), %s1547_s28 }
   0xd   : > { %p506_p3 = pnand %p1348_p1, %p505_p2  ;;  %p37_p4 = scmp.ge.s32.totalorder %s1918_s14, 2 }
   0xe   : > { %p597_p5 = scmp.lt.s32.totalorder (!%p506_p3), %s1539_s26, 1  ;;  %p602_p6 = scmp.lt.s32.totalorder (!%p506_p3), %s1535_s25, 4 }
   0xf   : > { %s1920_s14 = smov (%p37_p4, %s1918_s14), 0  ;;  %509 = sbr.rel (%p506_p3) target bundleno = 1960 (0x7a8), region = 72 }
  0x10   : > { %1895 = sst [smem:[#allocation9_spill]] %s1920_s14 }
  0x11   : > { %s1896_s0 = sld [smem:[#allocation10_spill]] (!%p506_p3) }
  0x12   : > { %s1898_s3 = sld [smem:[#allocation12_spill]] (!%p506_p3) }
  0x13   : > { %s1899_s5 = sld [smem:[#allocation13_spill]] (!%p506_p3) }
  0x14   : > { %s1922_s26 = smov (!%p597_p5, %s1539_s26), 1  ;;  %s1900_s9 = sld [smem:[#allocation14_spill]] }
  0x15   : > { %s1664_s15 = scalar_select %p602_p6, %s1535_s25, 4 }
  0x16   : > { %s1413_s16 = sshll.u32 %s1922_s26, 4  ;;  %s1359_s17 = sshll.u32 %s1922_s26, 1 }
  0x17   : > { %s601_s20 = scalar_lea.vmem %s1896_s0, %s1413_s16  ;;  %s1414_s28 = sshll.u32 %s1664_s15, 4 }
  0x18   : > { %s1681_s25 = scalar_lea.vmem %s1898_s3, %s1414_s28  ;;  %s637_s18 = scalar_lea.vmem %s1876_s10, %s1664_s15 }
  0x19   : > { %s1690_s0 = scalar_lea.vmem %s1899_s5, %s1414_s28  ;;  %s1417_s5 = sshll.u32 %s1664_s15, 5 }
  0x1a   : > { %s1707_s26 = scalar_lea.vmem %s1900_s9, %s1414_s28  ;;  %s645_s14 = scalar_lea.vmem %s1878_s12, %s1664_s15 }
  0x1b   : > { %s1721_s23 = scalar_lea.vmem %s1877_s11, %s1417_s5  ;;  %s1360_s27 = sshll.u32 %s1664_s15, 2 }
  0x1c   : > { %s652_s29 = sadd.s32 %s1360_s27, %s1359_s17  ;;  %s1901_s13 = sld [smem:[#allocation15_spill]] }
  0x1d   : > { %s1361_s3 = sshll.u32 %s652_s29, 3  ;;  %s1902_s19 = sld [smem:[#allocation4_spill]] }
  0x22   : > { %s1727_s9 = scalar_lea.vmem %s1901_s13, %s1361_s3 }
  0x23   : > { %p1362_p7 = scmp.ne.s32.totalorder %s1902_s19, 0 }
  0x25   : > { %659 = sbr.rel (%p1362_p7) target bundleno = 45 (0x2d), region = 76 }
  0x2a   : > { %v660_v0 = vld [vmem:[%s601_s20] sm:$0xff]  ;;  %vm662_vm0 = vcmask 261120   ;;  %v661_v1 = vld [vmem:[%s601_s20 + $0x8] sm:$0xff] }
  0x2b   : > { %663 = vst.msk [vmem:[#allocation2] sm:$0xff] %vm662_vm0, %v660_v0 }
  0x2c   : > { %664 = vst.msk [vmem:[#allocation2 + $0x8] sm:$0xff] %vm662_vm0, %v661_v1 }
  0x2d PF: > { %vm667_vm1 = vcmask 261120   ;;  %v1553_v6 = vmov 32.0   ;;  %v1419_v23 = vld [vmem:[%s1681_s25 + $0x8] sm:$0xff]  ;;  %v1418_v25 = vld [vmem:[%s1681_s25] sm:$0xff]  ;;  %s1903_s25 = scalar_lea.vmem %s1867_s1, %s1664_s15  ;;  %s1904_s16 = sld [smem:[#allocation11_spill]]  ;;  %vm773_vm9 = vcmask 130048  }
  0x2e   : > { %1483 = vrcp.f32 %v1553_v6  ;;  %761 = vmatpush.bf16.msra.mxu0 %v1419_v23  ;;  %v1475_v44 = vld [vmem:[%s1903_s25] ss:$0 sm:$0xff]  ;;  %s1906_s24 = scalar_lea.vmem %s1870_s4, %s1664_s15  ;;  %s1554_s27 = smov 112   ;;  %vm918_vm10 = vcmask 261248  }
  0x2f   : > { %v1477_v55 = vld [vmem:[%s1906_s24] ss:$0 sm:$0xff]  ;;  %s1555_s29 = smov 96   ;;  %s1556_s2 = smov 80  }
  0x30   : > { %s1557_s28 = smov 64   ;;  %s1558_s13 = smov 48  }
  0x31   : > { %s1559_s19 = smov 16   ;;  %s1907_s25 = scalar_lea.vmem %s1872_s6, %s1664_s15 }
  0x32   : > { %v1730_v2 = vld [vmem:[#allocation2] sm:$0xff]  ;;  %762 = vmatpush.bf16.msra.mxu0 %v1418_v25  ;;  %s1908_s17 = scalar_lea.vmem %s1873_s7, %s1664_s15 }
  0x33   : > { %v668_v3 = vsel %vm667_vm1, %v1730_v2, 0.0  ;;  %v1734_v4 = vld [vmem:[#allocation2 + $0x8] sm:$0xff]  ;;  %s1905_s21 = scalar_lea.vmem %s1904_s16, %s1664_s15 }
  0x34   : > { %669 = vadd.xlane.f32.xlu0 %v668_v3  ;;  %v671_v5 = vsel %vm667_vm1, %v1734_v4, 0.0  ;;  %v1484_v7 = vpop.eup %1483  ;;  %v1476_v49 = vld [vmem:[%s1905_s21] ss:$0 sm:$0xff]  ;;  %s1909_s21 = scalar_lea.vmem %s1874_s8, %s1664_s15 }
  0x35   : > { %v675_v8 = vmul.f32 32.0, %v1484_v7  ;;  %vm679_vm2 = vweird.f32 %v1484_v7 }
  0x37   : > { %v676_v9 = vsub.f32 1.0, %v675_v8 }
  0x39   : > { %v677_v10 = vmul.f32 %v1484_v7, %v676_v9 }
  0x3b   : > { %v678_v11 = vadd.f32 %v1484_v7, %v677_v10 }
  0x3c   : > { %672 = vadd.xlane.f32.xlu0 %v671_v5 }
  0x3d   : > { %v1738_v12 = vsel %vm679_vm2, %v1484_v7, %v678_v11  ;;  %vm1114_vm2 = vcmask 523264  }
  0xa7   : > { %v670_v13 = vpop.xlane.xlu0 %669 }
  0xa8   : > { %v681_v14 = vmul.f32 %v1738_v12, %v670_v13 }
  0xaa   : > { %v683_v15 = vsub.f32 %v1730_v2, %v681_v14 }
  0xac   : > { %v685_v16 = vmul.f32 %v683_v15, %v683_v15 }
  0xae   : > { %v687_v17 = vsel %vm667_vm1, %v685_v16, 0.0 }
  0xaf   : > { %688 = vadd.xlane.f32.xlu1 %v687_v17  ;;  %v673_v18 = vpop.xlane.xlu0 %672 }
  0xb0   : > { %v682_v19 = vmul.f32 %v1738_v12, %v673_v18 }
  0xb2   : > { %v684_v20 = vsub.f32 %v1734_v4, %v682_v19 }
  0xb4   : > { %v686_v21 = vmul.f32 %v684_v20, %v684_v20 }
  0xb6   : > { %v690_v22 = vsel %vm667_vm1, %v686_v21, 0.0 }
  0xb7   : > { %691 = vadd.xlane.f32.xlu1 %v690_v22 }
 0x122   : > { %v689_v24 = vpop.xlane.xlu1 %688 }
 0x123   : > { %v693_v26 = vmul.f32 %v689_v24, %v1738_v12 }
 0x125   : > { %v695_v27 = vadd.f32 1e-05, %v693_v26 }
 0x127   : > { %1485 = vrsqrt.f32 %v695_v27  ;;  %vm703_vm4 = vweird.f32 %v695_v27 }
 0x12a   : > { %v692_v28 = vpop.xlane.xlu1 %691 }
 0x12b   : > { %v694_v29 = vmul.f32 %v692_v28, %v1738_v12 }
 0x12d   : > { %v1486_v30 = vpop.eup %1485  ;;  %v696_v31 = vadd.f32 1e-05, %v694_v29 }
 0x12e   : > { %v698_v32 = vmul.f32 %v1486_v30, %v695_v27  ;;  %vm704_vm3 = vweird.f32 %v1486_v30 }
 0x12f   : > { %1487 = vrsqrt.f32 %v696_v31  ;;  %vm705_vm5 = vmor %vm703_vm4, %vm704_vm3  ;;  %vm713_vm7 = vweird.f32 %v696_v31 }
 0x130   : > { %v699_v33 = vmul.f32 %v1486_v30, %v698_v32 }
 0x132   : > { %v700_v34 = vmul.f32 0.5, %v699_v33 }
 0x134   : > { %v701_v35 = vsub.f32 1.5, %v700_v34 }
 0x135   : > { %v1488_v36 = vpop.eup %1487 }
 0x136   : > { %v702_v37 = vmul.f32 %v1486_v30, %v701_v35  ;;  %v708_v38 = vmul.f32 %v1488_v36, %v696_v31  ;;  %vm714_vm6 = vweird.f32 %v1488_v36 }
 0x137   : > { %vm715_vm8 = vmor %vm713_vm7, %vm714_vm6 }
 0x138   : > { %v709_v39 = vmul.f32 %v1488_v36, %v708_v38  ;;  %v706_v40 = vsel %vm705_vm5, %v1486_v30, %v702_v37 }
 0x139   : > { %v717_v43 = vmul.f32 %v706_v40, %v683_v15 }
 0x13a   : > { %v710_v41 = vmul.f32 0.5, %v709_v39 }
 0x13b   : > { %v723_v48 = vmul.f32 %v1475_v44, %v717_v43 }
 0x13c   : > { %v711_v42 = vsub.f32 1.5, %v710_v41 }
 0x13d   : > { %v729_v51 = vadd.f32 %v1476_v49, %v723_v48 }
 0x13e   : > { %v712_v45 = vmul.f32 %v1488_v36, %v711_v42 }
 0x140   : > { %v716_v46 = vsel %vm715_vm8, %v1488_v36, %v712_v45 }
 0x141   : > { %v718_v47 = vmul.f32 %v716_v46, %v684_v20 }
 0x143   : > { %v724_v50 = vmul.f32 %v1475_v44, %v718_v47 }
 0x145   : > { %v730_v52 = vadd.f32 %v1476_v49, %v724_v50 }
 0x147   : > { %v731_v53 = vpack.c.bf16 %v730_v52, %v729_v51 }
 0x149   : > { %1371 = vmatmul.msk.bf16.vlgmr.msra.gmra.mxu0 %vm667_vm1, %v731_v53 }
 0x1c6   : > { %v764_v54 = vpop.f32.mrf.mxu0 }
 0x1c7   : > { %v765_v57 = vadd.f32 %v1477_v55, %v764_v54 }
 0x1ce   : > { %v766_v56 = vpop.f32.mrf.mxu0 }
 0x1cf   : > { %v767_v58 = vadd.f32 %v1477_v55, %v766_v56 }
 0x1d1   : > { %v1766_v59 = vpack.c.bf16 %v767_v58, %v765_v57  ;;  %v1421_v57 = vld [vmem:[%s1690_s0 + $0x8] sm:$0xff]  ;;  %v1420_v58 = vld [vmem:[%s1690_s0] sm:$0xff] }
 0x1d2   : > { %949 = vmatpush.bf16.msrb.mxu0 %v1421_v57 }
 0x1d3   : > { %841 = vrot.lane.b32.xlu0 %v1766_v59, %s1554_s27  ;;  %771 = vrot.lane.b32.xlu2 %v1766_v59, %s1555_s29 }
 0x1d6   : > { %950 = vmatpush.bf16.msrb.mxu0 %v1420_v58 }
 0x1db   : > { %843 = vrot.lane.b32.xlu2 %v1766_v59, %s1556_s2 }
 0x22d   : > { %v772_v60 = vpop.permute.xlu2 %771 }
 0x22e   : > { %v778_v61 = vsel %vm773_vm9, %v772_v60, 0 }
 0x22f   : > { %787 = vmatpush.bf16.xpose.msra.mxu1 %v778_v61 }
 0x235   : > { %v844_v62 = vpop.permute.xlu2 %843 }
 0x236   : > { %1372 = vmatmul.msk.bf16.vlgmr.msra.gmra.mxu1 %vm773_vm9, %v1766_v59  ;;  %v849_v63 = vsel %vm773_vm9, %v844_v62, 0 }
 0x237   : > { %858 = vmatpush.bf16.xpose.msra.mxu3 %v849_v63  ;;  %v1478_v63 = vld [vmem:[%s1907_s25] ss:$0 sm:$0xff] }
 0x245   : > { %v842_v0 = vpop.permute.xlu0 %841 }
 0x246   : > { %1374 = vmatmul.msk.bf16.vlgmr.msra.gmra.mxu3 %vm773_vm9, %v842_v0 }
 0x2b3   : > { %v789_v1 = vpop.f32.mrf.mxu1 }
 0x2b4   : > { %v794_v3 = vmul.f32 0.25, %v789_v1 }
 0x2b6   : > { %v796_v5 = vsel %vm773_vm9, %v794_v3, -inf }
 0x2b7   : > { %797 = vmax.xlane.f32.xlu1 %v796_v5 }
 0x2bb   : > { %v791_v6 = vpop.f32.mrf.mxu1 }
 0x2bc   : > { %v795_v7 = vmul.f32 0.25, %v791_v6 }
 0x2be   : > { %v799_v8 = vsel %vm773_vm9, %v795_v7, -inf }
 0x2bf   : > { %800 = vmax.xlane.f32.xlu2 %v799_v8 }
 0x2c9   : > { %v860_v9 = vpop.f32.mrf.mxu3 }
 0x2ca   : > { %v865_v10 = vmul.f32 0.25, %v860_v9 }
 0x2cc   : > { %v867_v11 = vsel %vm773_vm9, %v865_v10, -inf }
 0x2cd   : > { %868 = vmax.xlane.f32.xlu1 %v867_v11 }
 0x2d1   : > { %v862_v13 = vpop.f32.mrf.mxu3 }
 0x2d2   : > { %v866_v14 = vmul.f32 0.25, %v862_v13 }
 0x2d4   : > { %v870_v15 = vsel %vm773_vm9, %v866_v14, -inf }
 0x2d5   : > { %871 = vmax.xlane.f32.xlu1 %v870_v15 }
 0x2ee   : > { %819 = vrot.lane.b32.xlu1 %v1766_v59, %s1557_s28 }
 0x32a   : > { %v798_v16 = vpop.xlane.xlu1 %797 }
 0x32b   : > { %v802_v17 = vsub.f32 %v794_v3, %v798_v16 }
 0x32d   : > { %v804_v18 = vmul.f32 1.442695, %v802_v17 }
 0x32f   : > { %1489 = vpow2.f32 %v804_v18 }
 0x332   : > { %v801_v19 = vpop.xlane.xlu2 %800 }
 0x333   : > { %v803_v20 = vsub.f32 %v795_v7, %v801_v19  ;;  %v1423_v19 = vld [vmem:[%s1707_s26 + $0x8] sm:$0xff] }
 0x334   : > { %1051 = vmatpush.bf16.msrb.mxu1 %v1423_v19 }
 0x335   : > { %v1490_v21 = vpop.eup %1489  ;;  %v806_v22 = vmul.f32 1.442695, %v803_v20 }
 0x336   : > { %v808_v23 = vsel %vm773_vm9, %v1490_v21, 0.0 }
 0x337   : > { %1491 = vpow2.f32 %v806_v22  ;;  %809 = vadd.xlane.f32.xlu0 %v808_v23 }
 0x33d   : > { %v1492_v24 = vpop.eup %1491 }
 0x33e   : > { %v811_v25 = vsel %vm773_vm9, %v1492_v24, 0.0 }
 0x33f   : > { %812 = vadd.xlane.f32.xlu1 %v811_v25 }
 0x340   : > { %v869_v26 = vpop.xlane.xlu1 %868 }
 0x341   : > { %v873_v27 = vsub.f32 %v865_v10, %v869_v26 }
 0x343   : > { %v875_v28 = vmul.f32 1.442695, %v873_v27 }
 0x345   : > { %1493 = vpow2.f32 %v875_v28 }
 0x348   : > { %v872_v29 = vpop.xlane.xlu1 %871 }
 0x349   : > { %v874_v30 = vsub.f32 %v866_v14, %v872_v29 }
 0x34b   : > { %v1494_v31 = vpop.eup %1493  ;;  %v877_v32 = vmul.f32 1.442695, %v874_v30 }
 0x34c   : > { %v879_v33 = vsel %vm773_vm9, %v1494_v31, 0.0 }
 0x34d   : > { %1495 = vpow2.f32 %v877_v32  ;;  %880 = vadd.xlane.f32.xlu2 %v879_v33 }
 0x353   : > { %v1496_v34 = vpop.eup %1495 }
 0x354   : > { %v882_v35 = vsel %vm773_vm9, %v1496_v34, 0.0 }
 0x355   : > { %883 = vadd.xlane.f32.xlu2 %v882_v35 }
 0x358   : > { %890 = vrot.lane.b32.xlu1 %v1766_v59, %s1558_s13 }
 0x360   : > { %v820_v36 = vpop.permute.xlu1 %819 }
 0x361   : > { %832 = vmatpush.bf16.msra.mxu2 %v820_v36 }
 0x3aa   : > { %v810_v37 = vpop.xlane.xlu0 %809 }
 0x3ab   : > { %1497 = vrcp.f32 %v810_v37 }
 0x3b1   : > { %v1498_v39 = vpop.eup %1497 }
 0x3b2   : > { %v813_v38 = vpop.xlane.xlu1 %812  ;;  %v816_v41 = vmul.f32 %v1498_v39, %v1490_v21  ;;  %v1422_v21 = vld [vmem:[%s1707_s26] sm:$0xff] }
 0x3b3   : > { %1499 = vrcp.f32 %v813_v38  ;;  %1052 = vmatpush.bf16.msrb.mxu1 %v1422_v21  ;;  %v1479_v39 = vld [vmem:[%s1908_s17] ss:$0 sm:$0xff] }
 0x3b9   : > { %v1500_v40 = vpop.eup %1499 }
 0x3ba   : > { %v817_v42 = vmul.f32 %v1500_v40, %v1492_v24 }
 0x3bc   : > { %v818_v43 = vpack.c.bf16 %v817_v42, %v816_v41 }
 0x3be   : > { %1373 = vmatmul.msk.bf16.vlgmr.msra.gmra.mxu2 %vm773_vm9, %v818_v43 }
 0x3c0   : > { %v881_v44 = vpop.xlane.xlu2 %880 }
 0x3c1   : > { %1501 = vrcp.f32 %v881_v44  ;;  %v1480_v44 = vld [vmem:[%s1909_s21] ss:$0 sm:$0xff] }
 0x3c7   : > { %v1502_v47 = vpop.eup %1501 }
 0x3c8   : > { %v884_v45 = vpop.xlane.xlu2 %883  ;;  %v887_v49 = vmul.f32 %v1502_v47, %v1494_v31 }
 0x3c9   : > { %1503 = vrcp.f32 %v884_v45 }
 0x3ca   : > { %v891_v46 = vpop.permute.xlu1 %890 }
 0x3cb   : > { %903 = vmatpush.bf16.msrb.mxu2 %v891_v46 }
 0x3cf   : > { %v1504_v48 = vpop.eup %1503 }
 0x3d0   : > { %v888_v50 = vmul.f32 %v1504_v48, %v1496_v34 }
 0x3d2   : > { %v889_v51 = vpack.c.bf16 %v888_v50, %v887_v49  ;;  %v1427_v49 = vld [vmem:[%s1721_s23 + $0x18] sm:$0xff]  ;;  %v1426_v50 = vld [vmem:[%s1721_s23 + $0x10] sm:$0xff] }
 0x3d3   : > { %1122 = vmatpush.bf16.msrb.mxu3 %v1427_v49 }
 0x3d4   : > { %1375 = vmatmul.msk.bf16.vlgmr.msrb.gmra.mxu2 %vm773_vm9, %v889_v51  ;;  %v1425_v51 = vld [vmem:[%s1721_s23 + $0x8] sm:$0xff] }
 0x3d7   : > { %1123 = vmatpush.bf16.msrb.mxu3 %v1426_v50 }
 0x3db   : > { %1124 = vmatpush.bf16.msrb.mxu3 %v1425_v51 }
 0x441   : > { %v834_v52 = vpop.f32.mrf.mxu2 }
 0x442   : > { %839 = vst.msk [vmem:[#allocation3] sm:$0xff] %vm773_vm9, %v834_v52  ;;  %v1481_v52 = vld [vmem:[%s637_s18] ss:$0 sm:$0xff] }
 0x449   : > { %v836_v53 = vpop.f32.mrf.mxu2 }
 0x44a   : > { %840 = vst.msk [vmem:[#allocation3 + $0x8] sm:$0xff] %vm773_vm9, %v836_v53  ;;  %v1424_v53 = vld [vmem:[%s1721_s23] sm:$0xff] }
 0x44b   : > { %1125 = vmatpush.bf16.msrb.mxu3 %v1424_v53 }
 0x457   : > { %v905_v54 = vpop.f32.mrf.mxu2 }
 0x458   : > { %912 = vrot.lane.b32.xlu2 %v905_v54, %s1559_s19 }
 0x45f   : > { %v907_v55 = vpop.f32.mrf.mxu2 }
 0x460   : > { %914 = vrot.lane.b32.xlu0 %v907_v55, %s1559_s19 }
 0x4b2   : > { %v913_v56 = vpop.permute.xlu2 %912 }
 0x4b3   : > { %919 = vst.msk [vmem:[#allocation3] sm:$0xff] %vm918_vm10, %v913_v56 }
 0x4ba   : > { %v921_v60 = vld [vmem:[#allocation3] sm:$0xff] }
 0x4d2   : > { %v915_v59 = vpop.permute.xlu0 %914 }
 0x4d3   : > { %920 = vst.msk [vmem:[#allocation3 + $0x8] sm:$0xff] %vm918_vm10, %v915_v59 }
 0x4da   : > { %v922_v61 = vld [vmem:[#allocation3 + $0x8] sm:$0xff] }
 0x4db   : > { %v923_v62 = vpack.c.bf16 %v922_v61, %v921_v60 }
 0x4dd   : > { %1384 = vmatmul.msk.bf16.vlgmr.msrb.gmra.mxu0 %vm667_vm1, %v923_v62 }
 0x55a   : > { %v952_v0 = vpop.f32.mrf.mxu0 }
 0x55b   : > { %v957_v1 = vadd.f32 %v952_v0, %v1730_v2 }
 0x55d   : > { %v1799_v3 = vadd.f32 %v1478_v63, %v957_v1 }
 0x55f   : > { %v965_v5 = vsel %vm667_vm1, %v1799_v3, 0.0 }
 0x560   : > { %966 = vadd.xlane.f32.xlu1 %v965_v5 }
 0x562   : > { %v954_v6 = vpop.f32.mrf.mxu0 }
 0x563   : > { %v958_v7 = vadd.f32 %v954_v6, %v1734_v4 }
 0x565   : > { %v1804_v8 = vadd.f32 %v1478_v63, %v958_v7 }
 0x567   : > { %v968_v9 = vsel %vm667_vm1, %v1804_v8, 0.0 }
 0x568   : > { %969 = vadd.xlane.f32.xlu2 %v968_v9 }
 0x5d3   : > { %v967_v10 = vpop.xlane.xlu1 %966 }
 0x5d4   : > { %v971_v2 = vmul.f32 %v967_v10, %v1738_v12 }
 0x5d6   : > { %v973_v11 = vsub.f32 %v1799_v3, %v971_v2 }
 0x5d8   : > { %v975_v13 = vmul.f32 %v973_v11, %v973_v11 }
 0x5da   : > { %v977_v14 = vsel %vm667_vm1, %v975_v13, 0.0 }
 0x5db   : > { %978 = vadd.xlane.f32.xlu0 %v977_v14  ;;  %v970_v15 = vpop.xlane.xlu2 %969 }
 0x5dc   : > { %v972_v4 = vmul.f32 %v970_v15, %v1738_v12 }
 0x5de   : > { %v974_v16 = vsub.f32 %v1804_v8, %v972_v4 }
 0x5e0   : > { %v976_v17 = vmul.f32 %v974_v16, %v974_v16 }
 0x5e2   : > { %v980_v18 = vsel %vm667_vm1, %v976_v17, 0.0 }
 0x5e3   : > { %981 = vadd.xlane.f32.xlu1 %v980_v18 }
 0x64e   : > { %v979_v20 = vpop.xlane.xlu0 %978 }
 0x64f   : > { %v983_v22 = vmul.f32 %v979_v20, %v1738_v12 }
 0x651   : > { %v985_v23 = vadd.f32 1e-05, %v983_v22 }
 0x653   : > { %1505 = vrsqrt.f32 %v985_v23  ;;  %vm993_vm12 = vweird.f32 %v985_v23 }
 0x656   : > { %v982_v24 = vpop.xlane.xlu1 %981 }
 0x657   : > { %v984_v25 = vmul.f32 %v982_v24, %v1738_v12 }
 0x659   : > { %v1506_v26 = vpop.eup %1505  ;;  %v986_v27 = vadd.f32 1e-05, %v984_v25 }
 0x65a   : > { %v988_v28 = vmul.f32 %v1506_v26, %v985_v23  ;;  %vm994_vm11 = vweird.f32 %v1506_v26 }
 0x65b   : > { %1507 = vrsqrt.f32 %v986_v27  ;;  %vm995_vm13 = vmor %vm993_vm12, %vm994_vm11  ;;  %vm1003_vm15 = vweird.f32 %v986_v27 }
 0x65c   : > { %v989_v29 = vmul.f32 %v1506_v26, %v988_v28 }
 0x65e   : > { %v990_v30 = vmul.f32 0.5, %v989_v29 }
 0x660   : > { %v991_v31 = vsub.f32 1.5, %v990_v30 }
 0x661   : > { %v1508_v32 = vpop.eup %1507 }
 0x662   : > { %v992_v33 = vmul.f32 %v1506_v26, %v991_v31  ;;  %v998_v34 = vmul.f32 %v1508_v32, %v986_v27  ;;  %vm1004_vm14 = vweird.f32 %v1508_v32 }
 0x663   : > { %vm1005_vm0 = vmor %vm1003_vm15, %vm1004_vm14 }
 0x664   : > { %v999_v35 = vmul.f32 %v1508_v32, %v998_v34  ;;  %v996_v36 = vsel %vm995_vm13, %v1506_v26, %v992_v33 }
 0x665   : > { %v1007_v12 = vmul.f32 %v996_v36, %v973_v11 }
 0x666   : > { %v1000_v37 = vmul.f32 0.5, %v999_v35 }
 0x667   : > { %v1013_v43 = vmul.f32 %v1479_v39, %v1007_v12 }
 0x668   : > { %v1001_v38 = vsub.f32 1.5, %v1000_v37 }
 0x669   : > { %v1019_v46 = vadd.f32 %v1480_v44, %v1013_v43 }
 0x66a   : > { %v1002_v40 = vmul.f32 %v1508_v32, %v1001_v38 }
 0x66c   : > { %v1006_v41 = vsel %vm1005_vm0, %v1508_v32, %v1002_v40 }
 0x66d   : > { %v1008_v42 = vmul.f32 %v1006_v41, %v974_v16  ;;  %v1482_v16 = vld [vmem:[%s645_s14] ss:$0 sm:$0xff] }
 0x66f   : > { %v1014_v45 = vmul.f32 %v1479_v39, %v1008_v42 }
 0x671   : > { %v1020_v47 = vadd.f32 %v1480_v44, %v1014_v45 }
 0x673   : > { %v1021_v48 = vpack.c.bf16 %v1020_v47, %v1019_v46 }
 0x675   : > { %1393 = vmatmul.msk.bf16.vlgmr.msrb.gmra.mxu1 %vm667_vm1, %v1021_v48 }
 0x6f2   : > { %v1054_v54 = vpop.f32.mrf.mxu1 }
 0x6f3   : > { %v1055_v55 = vadd.f32 %v1481_v52, %v1054_v54 }
 0x6f5   : > { %v1059_v56 = vmul.f32 %v1055_v55, %v1055_v55 }
 0x6f7   : > { %v1061_v57 = vmul.f32 %v1059_v56, %v1055_v55 }
 0x6f9   : > { %v1063_v58 = vmul.f32 0.044715, %v1061_v57 }
 0x6fa   : > { %v1056_v59 = vpop.f32.mrf.mxu1 }
 0x6fb   : > { %v1065_v60 = vadd.f32 %v1063_v58, %v1055_v55  ;;  %v1057_v61 = vadd.f32 %v1481_v52, %v1056_v59 }
 0x6fd   : > { %v1067_v62 = vmul.f32 0.7978846, %v1065_v60  ;;  %v1060_v63 = vmul.f32 %v1057_v61, %v1057_v61 }
 0x6ff   : > { %v1062_v0 = vmul.f32 %v1060_v63, %v1057_v61  ;;  %1509 = vtanh.f32 %v1067_v62 }
 0x701   : > { %v1064_v1 = vmul.f32 0.044715, %v1062_v0 }
 0x703   : > { %v1066_v5 = vadd.f32 %v1064_v1, %v1057_v61 }
 0x705   : > { %v1068_v6 = vmul.f32 0.7978846, %v1066_v5  ;;  %v1510_v7 = vpop.eup %1509 }
 0x706   : > { %v1071_v9 = vadd.f32 1.0, %v1510_v7 }
 0x707   : > { %1511 = vtanh.f32 %v1068_v6 }
 0x708   : > { %v1073_v2 = vmul.f32 0.5, %v1071_v9 }
 0x70a   : > { %v1075_v14 = vmul.f32 %v1073_v2, %v1055_v55 }
 0x70d   : > { %v1512_v10 = vpop.eup %1511 }
 0x70e   : > { %v1072_v11 = vadd.f32 1.0, %v1512_v10 }
 0x710   : > { %v1074_v13 = vmul.f32 0.5, %v1072_v11 }
 0x712   : > { %v1076_v15 = vmul.f32 %v1074_v13, %v1057_v61 }
 0x714   : > { %v1077_v4 = vpack.c.bf16 %v1076_v15, %v1075_v14 }
 0x716   : > { %1410 = vmatmul.msk.bf16.vlgmr.msrb.gmra.mxu3 %vm1114_vm2, %v1077_v4 }
 0x799   : > { %v1127_v17 = vpop.f32.mrf.mxu3 }
 0x79a   : > { %v1128_v18 = vadd.f32 %v1482_v16, %v1127_v17 }
 0x79c   : > { %v1132_v19 = vadd.f32 %v1128_v18, %v1799_v3 }
 0x79e   : > { %1134 = vst.msk [vmem:[#allocation2] sm:$0xff] %vm667_vm1, %v1132_v19 }
 0x79f   : > { %1136 = vst.msk [vmem:[%s1727_s9] sm:$0xff] %vm667_vm1, %v1132_v19 }
 0x7a1   : > { %v1129_v20 = vpop.f32.mrf.mxu3 }
 0x7a2   : > { %v1130_v21 = vadd.f32 %v1482_v16, %v1129_v20 }
 0x7a4   : > { %v1133_v22 = vadd.f32 %v1130_v21, %v1804_v8 }
 0x7a6   : > { %1135 = vst.msk [vmem:[#allocation2 + $0x8] sm:$0xff] %vm667_vm1, %v1133_v22 }
 0x7a7   : > { %1137 = vst.msk [vmem:[%s1727_s9 + $0x8] sm:$0xff] %vm667_vm1, %v1133_v22 }
 0x7a8 PF: > { %s1910_s24 = sld [smem:[#allocation7_spill]] }
 0x7a9   : > { %s1911_s25 = sld [smem:[#allocation5_spill]] }
 0x7aa   : > { %s1912_s26 = sld [smem:[#allocation6_spill]] }
 0x7ab   : > { %s1913_s27 = sld [smem:[#allocation8_spill]] }
 0x7ac   : > { %s1914_s28 = sld [smem:[#allocation9_spill]] }
 0x7ae   : > { %s23_s29 = sadd.s32 1, %s1910_s24  }
 0x7af   : > { %p20_p8 = scmp.ge.s32.totalorder %s23_s29, 12  }
 0x7b1   :  { %22 = sbr.rel (!%p20_p8) target bundleno = 7 (0x7), region = 142 }

// kernel: jepa_segmentor_forward.10
= control target key start
LH: loop header
LB: loop body
LE: loop exit
PB: predicated region body
PF: predicated region fallthrough
CT: control target
= control target key end

     0   :  { %s544_s12 = smov 0   ;;  %s546_s13 = smov 0   ;;  %s642_s0 = inlined_call_operand.vmem [shape: f32[32,32], index: 0, kind: input, shape index: {}]   ;;  %s643_s1 = inlined_call_operand.vmem [shape: bf16[32,512], index: 1, kind: input, shape index: {}]   ;;  %s644_s2 = inlined_call_operand.vmem [shape: f32[1,512], index: 2, kind: input, shape index: {}]   ;;  %s645_s3 = inlined_call_operand.vmem [shape: f32[32,512], index: 3, kind: output, shape index: {}]  }
   0x1   :  { %s548_s14 = smov 0  }
   0x2 LB: > { %s560_s15 = sadd.s32 4294967295, %s522_s14   ;;  %s563_s16 = sadd.s32 1, %s522_s14   ;;  %s522_s14 = sphi %s548_s14, %s649_s14   ;;  %s518_s13 = sphi %s546_s13, %s648_s13   ;;  %s514_s12 = sphi %s544_s12, %s647_s12  }
   0x3   : > { %s38_s17 = ssub.s32 %s522_s14, %s563_s16  ;;  %s41_s18 = sadd.s32 1, %s518_s13 }
   0x4   : > { %p39_p0 = scmp.eq.s32.totalorder %s38_s17, 0  ;;  %p48_p1 = scmp.ne.s32.totalorder %s518_s13, %s514_s12 }
   0x5   : > { %p49_p2 = scmp.eq.s32.totalorder %s522_s14, 0  ;;  %p104_p3 = scmp.eq.s32.totalorder %s560_s15, 1 }
   0x6   : > { %s573_s19 = scalar_select %p39_p0, %s518_s13, %s41_s18  }
   0x7   : > { %p50_p4 = por %p49_p2, %p48_p1  ;;  %p575_p5 = por %p104_p3, %p48_p1 }
   0x8   : > { %p433_p6 = scmp.ge.s32.totalorder %s522_s14, 2 }
   0xa   : > { %129 = sbr.rel (%p433_p6) target bundleno = 23 (0x17), region = 20 }
   0xf   : > { %132 = sbr.rel (!%p50_p4) target bundleno = 23 (0x17), region = 24  ;;  %s134_s21 = sand.u32 (%p50_p4), 1, %s518_s13  }
  0x10   : > { %s466_s22 = sshll.u32 (%p50_p4), %s522_s14, 3  ;;  %s434_s23 = sshll.u32 (%p50_p4), %s134_s21, 5 }
  0x11   : > { %s139_s26 = scalar_lea.vmem (%p50_p4), %s643_s1, %s466_s22  ;;  %s136_s27 = scalar_lea.vmem (%p50_p4), [#allocation2], %s434_s23 }
  0x12   : > { %v174_v0 = vld [vmem:[%s139_s26] sm:$0xff] (%p50_p4)  ;;  %v176_v1 = vld [vmem:[%s139_s26 + $0x10] sm:$0xff] (%p50_p4) }
  0x13   : > { %v178_v2 = vld [vmem:[%s139_s26 + $0x20] sm:$0xff] (%p50_p4)  ;;  %175 = vst [vmem:[%s136_s27] sm:$0xff] (%p50_p4), %v174_v0  ;;  %v180_v3 = vld [vmem:[%s139_s26 + $0x30] sm:$0xff] (%p50_p4) }
  0x14   : > { %177 = vst [vmem:[%s136_s27 + $0x8] sm:$0xff] %v176_v1 }
  0x15   : > { %179 = vst [vmem:[%s136_s27 + $0x10] sm:$0xff] %v178_v2 }
  0x16   : > { %181 = vst [vmem:[%s136_s27 + $0x18] sm:$0xff] %v180_v3 }
  0x17 PF: > { %p437_p7 = scmp.ge.s32.totalorder %s522_s14, 1  ;;  %p194_p8 = scmp.lt.s32.totalorder %s522_s14, 3 }
  0x19   : > { %p195_p9 = pnand %p437_p7, %p194_p8 }
  0x1a   : > { %s201_s28 = sand.u32 (!%p195_p9), 1, %s514_s12   ;;  %s440_s14 = sshll.u32 (!%p195_p9), %s560_s15, 1 }
  0x1b   : > { %198 = sbr.rel (%p195_p9) target bundleno = 194 (0xc2), region = 66  ;;  %s438_s29 = sshll.u32 (!%p195_p9), %s201_s28, 5 }
  0x1c   : > { %s203_s30 = scalar_lea.vmem (!%p195_p9), [#allocation2], %s438_s29  ;;  %p229_p10 = scmp.lt.s32.totalorder (!%p195_p9), %s440_s14, 3 }
  0x1d   : > { %s439_s22 = sshll.u32 (!%p195_p9), %s201_s28, 6 }
  0x1e   : > { %s608_s23 = scalar_lea.vmem (!%p195_p9), [#allocation3], %s439_s22 }
  0x20   : > { %v451_v4 = vld [vmem:[%s203_s30 + $0x10] sm:$0xf]  ;;  %v470_v5 = vld [vmem:[%s203_s30 + $0x14] sm:$0xf0]  ;;  %v469_v6 = vld [vmem:[%s203_s30 + $0x14] sm:$0xf] }
  0x21   : > { %v452_v7 = vor.u32 %v470_v5, %v451_v4  ;;  %v453_v8 = vld [vmem:[%s203_s30 + $0x18] sm:$0xf0]  ;;  %v443_v9 = vld [vmem:[%s203_s30] sm:$0xf]  ;;  %v468_v10 = vld [vmem:[%s203_s30 + $0x4] sm:$0xf0] }
  0x22   : > { %v456_v11 = vor.u32 %v469_v6, %v453_v8  ;;  %v467_v12 = vld [vmem:[%s203_s30 + $0x4] sm:$0xf]  ;;  %v445_v13 = vld [vmem:[%s203_s30 + $0x8] sm:$0xf0]  ;;  %v444_v15 = vor.u32 %v468_v10, %v443_v9  ;;  %v237_v17 = vld [vmem:[%s642_s0 + $0x10] sm:$0xff]  ;;  %vm271_vm0 = vcmask 261120  }
  0x23   : > { %v235_v14 = vld [vmem:[%s642_s0] sm:$0xff]  ;;  %284 = vmatpush.bf16.msra.mxu0 %v452_v7  ;;  %472 = vmatpush.bf16.msra.mxu2 %v452_v7  ;;  %v236_v16 = vld [vmem:[%s642_s0 + $0x8] sm:$0xff]  ;;  %v238_v18 = vld [vmem:[%s642_s0 + $0x18] sm:$0xff]  ;;  %v448_v19 = vor.u32 %v467_v12, %v445_v13  ;;  %s651_s14 = smov (!%p229_p10, %s440_s14), 3  ;;  %s471_s12 = sshll.u32 (%p575_p5), %s560_s15, 4 }
  0x24   : > { %303 = vmatpush.bf16.msra.mxu1 %v456_v11  ;;  %474 = vmatpush.bf16.msra.mxu3 %v456_v11  ;;  %v239_v20 = vpack.c.bf16 %v236_v16, %v235_v14  ;;  %v240_v21 = vpack.c.bf16 %v238_v18, %v237_v17  ;;  %s231_s21 = scalar_lea.vmem %s644_s2, %s651_s14  ;;  %s333_s26 = scalar_lea.vmem (%p575_p5), %s645_s3, %s471_s12 }
  0x25   : > { %v245_v22 = vld [vmem:[%s231_s21] sm:$0x3] }
  0x26   : > { %v247_v23 = vperm.slane %v245_v22, 0  ;;  %v248_v24 = vperm.slane %v245_v22, 1 }
  0x27   : > { %285 = vmatpush.bf16.msra.mxu0 %v444_v15  ;;  %473 = vmatpush.bf16.msra.mxu2 %v444_v15 }
  0x28   : > { %304 = vmatpush.bf16.msra.mxu1 %v448_v19  ;;  %475 = vmatpush.bf16.msra.mxu3 %v448_v19 }
  0x2a   : > { %457 = vmatmul.msk.bf16.vlgmr.msra.gmra.mxu0 %vm271_vm0, %v239_v20  ;;  %458 = vmatmul.msk.bf16.vlgmr.msra.gmra.mxu2 %vm271_vm0, %v240_v21 }
  0x2b   : > { %459 = vmatmul.msk.bf16.vlgmr.msra.gmra.mxu1 %vm271_vm0, %v239_v20  ;;  %460 = vmatmul.msk.bf16.vlgmr.msra.gmra.mxu3 %vm271_vm0, %v240_v21 }
  0xa7   : > { %v287_v25 = vpop.f32.mrf.mxu0 }
  0xa8   : > { %v288_v26 = vadd.f32 %v287_v25, %v247_v23  ;;  %v306_v27 = vpop.f32.mrf.mxu1 }
  0xa9   : > { %v307_v28 = vadd.f32 %v306_v27, %v248_v24 }
  0xaa   : > { %316 = vst [vmem:[%s608_s23] sm:$0xff] %v288_v26 }
  0xab   : > { %317 = vst [vmem:[%s608_s23 + $0x8] sm:$0xff] %v307_v28 }
  0xad   : > { %v292_v29 = vpop.f32.mrf.mxu2 }
  0xae   : > { %v293_v30 = vadd.f32 %v292_v29, %v247_v23  ;;  %v311_v31 = vpop.f32.mrf.mxu3 }
  0xaf   : > { %v312_v32 = vadd.f32 %v311_v31, %v248_v24  ;;  %v289_v33 = vpop.f32.mrf.mxu0 }
  0xb0   : > { %320 = vst [vmem:[%s608_s23 + $0x20] sm:$0xff] %v293_v30  ;;  %v290_v34 = vadd.f32 %v289_v33, %v247_v23  ;;  %v308_v35 = vpop.f32.mrf.mxu1 }
  0xb1   : > { %321 = vst [vmem:[%s608_s23 + $0x28] sm:$0xff] %v312_v32  ;;  %v309_v36 = vadd.f32 %v308_v35, %v248_v24  ;;  %v346_v41 = vld [vmem:[%s608_s23] sm:$0xff] (%p575_p5) }
  0xb2   : > { %318 = vst [vmem:[%s608_s23 + $0x10] sm:$0xff] %v290_v34  ;;  %v348_v42 = vld [vmem:[%s608_s23 + $0x8] sm:$0xff] (%p575_p5) }
  0xb3   : > { %319 = vst [vmem:[%s608_s23 + $0x18] sm:$0xff] %v309_v36 }
  0xb4   : > { %347 = vst [vmem:[%s333_s26] sm:$0xff] (%p575_p5), %v346_v41 }
  0xb5   : > { %v294_v37 = vpop.f32.mrf.mxu2  ;;  %330 = sbr.rel (!%p575_p5) target bundleno = 194 (0xc2), region = 74  ;;  %349 = vst [vmem:[%s333_s26 + $0x8] sm:$0xff] (%p575_p5), %v348_v42 }
  0xb6   : > { %v295_v38 = vadd.f32 %v294_v37, %v247_v23  ;;  %v313_v39 = vpop.f32.mrf.mxu3 }
  0xb7   : > { %v314_v40 = vadd.f32 %v313_v39, %v248_v24  ;;  %v354_v45 = vld [vmem:[%s608_s23 + $0x20] sm:$0xff] (%p575_p5) }
  0xb8   : > { %322 = vst [vmem:[%s608_s23 + $0x30] sm:$0xff] %v295_v38  ;;  %v356_v46 = vld [vmem:[%s608_s23 + $0x28] sm:$0xff] (%p575_p5) }
  0xb9   : > { %323 = vst [vmem:[%s608_s23 + $0x38] sm:$0xff] %v314_v40  ;;  %v350_v43 = vld [vmem:[%s608_s23 + $0x10] sm:$0xff] (%p575_p5) }
  0xba   : > { %v352_v44 = vld [vmem:[%s608_s23 + $0x18] sm:$0xff]  ;;  %351 = vst [vmem:[%s333_s26 + $0x20] sm:$0xff] %v350_v43 }
  0xbb   : > { %353 = vst [vmem:[%s333_s26 + $0x28] sm:$0xff] %v352_v44 }
  0xbc   : > { %355 = vst [vmem:[%s333_s26 + $0x40] sm:$0xff] %v354_v45 }
  0xbd   : > { %357 = vst [vmem:[%s333_s26 + $0x48] sm:$0xff] %v356_v46 }
  0xbf   : > { %v358_v47 = vld [vmem:[%s608_s23 + $0x30] sm:$0xff] }
  0xc0   : > { %v360_v48 = vld [vmem:[%s608_s23 + $0x38] sm:$0xff]  ;;  %359 = vst [vmem:[%s333_s26 + $0x60] sm:$0xff] %v358_v47 }
  0xc1   : > { %361 = vst [vmem:[%s333_s26 + $0x68] sm:$0xff] %v360_v48 }
  0xc2 PF: > { %p10_p11 = scmp.ge.s32.totalorder %s563_s16, 4   ;;  %s647_s12 = smov %s518_s13 }
  0xc3   : > { %s648_s13 = smov %s573_s19  ;;  %s649_s14 = smov %s563_s16 }
  0xc4   :  { %12 = sbr.rel (!%p10_p11) target bundleno = 2 (0x2), region = 131 }

// kernel: jepa_segmentor_forward.9
= control target key start
LH: loop header
LB: loop body
LE: loop exit
PB: predicated region body
PF: predicated region fallthrough
CT: control target
= control target key end

     0   :  { %s3420_s3 = inlined_call_operand.vmem [shape: bf16[256,512], index: 3, kind: input, shape index: {}]   ;;  %s3421_s0 = inlined_call_operand.vmem [shape: f32[128,256], index: 0, kind: input, shape index: {}]   ;;  %s3422_s1 = inlined_call_operand.vmem [shape: f32[1,256], index: 1, kind: input, shape index: {}]   ;;  %s3423_s2 = inlined_call_operand.vmem [shape: f32[1,256], index: 2, kind: input, shape index: {}]   ;;  %s3424_s4 = inlined_call_operand.vmem [shape: f32[1,512], index: 4, kind: input, shape index: {}]   ;;  %s3425_s5 = inlined_call_operand.vmem [shape: f32[128,512], index: 5, kind: output, shape index: {}]  }
   0x1   :  { %v1613_v0 = vld [vmem:[%s3420_s3 + $0xe0] sm:$0xf]  ;;  %v1785_v1 = vld [vmem:[%s3420_s3 + $0xec] sm:$0xf0]  ;;  %v1783_v5 = vld [vmem:[%s3420_s3 + $0xe4] sm:$0xf] }
   0x2   :  { %v1741_v2 = vld [vmem:[%s3420_s3 + $0x1e0] sm:$0xf]  ;;  %v1614_v3 = vor.u32 %v1785_v1, %v1613_v0  ;;  %v1817_v4 = vld [vmem:[%s3420_s3 + $0x1ec] sm:$0xf0]  ;;  %v1615_v6 = vld [vmem:[%s3420_s3 + $0xf0] sm:$0xf0] }
   0x3   :  { %v1742_v7 = vor.u32 %v1817_v4, %v1741_v2  ;;  %v1618_v8 = vor.u32 %v1783_v5, %v1615_v6  ;;  %v1815_v9 = vld [vmem:[%s3420_s3 + $0x1e4] sm:$0xf]  ;;  %v1743_v10 = vld [vmem:[%s3420_s3 + $0x1f0] sm:$0xf0]  ;;  %v1597_v11 = vld [vmem:[%s3420_s3 + $0xc0] sm:$0xf] }
   0x4   :  { %1039 = vmatpush.bf16.msra.mxu0 %v1614_v3  ;;  %v1746_v12 = vor.u32 %v1815_v9, %v1743_v10  ;;  %v1781_v13 = vld [vmem:[%s3420_s3 + $0xcc] sm:$0xf0]  ;;  %v1725_v14 = vld [vmem:[%s3420_s3 + $0x1c0] sm:$0xf]  ;;  %v1779_v18 = vld [vmem:[%s3420_s3 + $0xc4] sm:$0xf] }
   0x5   :  { %v1813_v15 = vld [vmem:[%s3420_s3 + $0x1cc] sm:$0xf0]  ;;  %1088 = vmatpush.bf16.msra.mxu1 %v1742_v7  ;;  %1137 = vmatpush.bf16.msra.mxu2 %v1618_v8  ;;  %v1598_v16 = vor.u32 %v1781_v13, %v1597_v11  ;;  %v1599_v19 = vld [vmem:[%s3420_s3 + $0xd0] sm:$0xf0]  ;;  %v1811_v20 = vld [vmem:[%s3420_s3 + $0x1c4] sm:$0xf] }
   0x6   :  { %v1726_v17 = vor.u32 %v1813_v15, %v1725_v14  ;;  %1186 = vmatpush.bf16.msra.mxu3 %v1746_v12  ;;  %v1602_v21 = vor.u32 %v1779_v18, %v1599_v19  ;;  %v1727_v22 = vld [vmem:[%s3420_s3 + $0x1d0] sm:$0xf0]  ;;  %v1581_v23 = vld [vmem:[%s3420_s3 + $0xa0] sm:$0xf]  ;;  %v1777_v24 = vld [vmem:[%s3420_s3 + $0xac] sm:$0xf0] }
   0x7   :  { %v1730_v25 = vor.u32 %v1811_v20, %v1727_v22  ;;  %v1709_v26 = vld [vmem:[%s3420_s3 + $0x1a0] sm:$0xf]  ;;  %v1809_v27 = vld [vmem:[%s3420_s3 + $0x1ac] sm:$0xf0]  ;;  %v1775_v28 = vld [vmem:[%s3420_s3 + $0xa4] sm:$0xf]  ;;  %v1582_v29 = vor.u32 %v1777_v24, %v1581_v23 }
   0x8   :  { %1040 = vmatpush.bf16.msra.mxu0 %v1598_v16  ;;  %v1583_v30 = vld [vmem:[%s3420_s3 + $0xb0] sm:$0xf0]  ;;  %v1807_v31 = vld [vmem:[%s3420_s3 + $0x1a4] sm:$0xf]  ;;  %v1710_v33 = vor.u32 %v1809_v27, %v1709_v26  ;;  %v1565_v35 = vld [vmem:[%s3420_s3 + $0x80] sm:$0xf] }
   0x9   :  { %v1711_v32 = vld [vmem:[%s3420_s3 + $0x1b0] sm:$0xf0]  ;;  %1089 = vmatpush.bf16.msra.mxu1 %v1726_v17  ;;  %1138 = vmatpush.bf16.msra.mxu2 %v1602_v21  ;;  %v1586_v34 = vor.u32 %v1775_v28, %v1583_v30  ;;  %v1773_v36 = vld [vmem:[%s3420_s3 + $0x8c] sm:$0xf0]  ;;  %v1693_v37 = vld [vmem:[%s3420_s3 + $0x180] sm:$0xf] }
   0xa   :  { %1187 = vmatpush.bf16.msra.mxu3 %v1730_v25  ;;  %v1714_v38 = vor.u32 %v1807_v31, %v1711_v32  ;;  %v1805_v39 = vld [vmem:[%s3420_s3 + $0x18c] sm:$0xf0]  ;;  %v1771_v40 = vld [vmem:[%s3420_s3 + $0x84] sm:$0xf]  ;;  %v1567_v41 = vld [vmem:[%s3420_s3 + $0x90] sm:$0xf0]  ;;  %v1566_v44 = vor.u32 %v1773_v36, %v1565_v35 }
   0xb   :  { %v1803_v42 = vld [vmem:[%s3420_s3 + $0x184] sm:$0xf]  ;;  %v1695_v43 = vld [vmem:[%s3420_s3 + $0x190] sm:$0xf0]  ;;  %v1694_v45 = vor.u32 %v1805_v39, %v1693_v37  ;;  %v1570_v46 = vor.u32 %v1771_v40, %v1567_v41  ;;  %v1549_v47 = vld [vmem:[%s3420_s3 + $0x60] sm:$0xf] }
   0xc   :  { %1041 = vmatpush.bf16.msra.mxu0 %v1582_v29  ;;  %v1769_v48 = vld [vmem:[%s3420_s3 + $0x6c] sm:$0xf0]  ;;  %v1677_v49 = vld [vmem:[%s3420_s3 + $0x160] sm:$0xf]  ;;  %v1698_v50 = vor.u32 %v1803_v42, %v1695_v43  ;;  %v1767_v52 = vld [vmem:[%s3420_s3 + $0x64] sm:$0xf] }
   0xd   :  { %1090 = vmatpush.bf16.msra.mxu1 %v1710_v33  ;;  %1139 = vmatpush.bf16.msra.mxu2 %v1586_v34  ;;  %v1801_v51 = vld [vmem:[%s3420_s3 + $0x16c] sm:$0xf0]  ;;  %v1551_v53 = vld [vmem:[%s3420_s3 + $0x70] sm:$0xf0]  ;;  %v1799_v54 = vld [vmem:[%s3420_s3 + $0x164] sm:$0xf]  ;;  %v1550_v56 = vor.u32 %v1769_v48, %v1549_v47 }
   0xe   :  { %1188 = vmatpush.bf16.msra.mxu3 %v1714_v38  ;;  %v1679_v55 = vld [vmem:[%s3420_s3 + $0x170] sm:$0xf0]  ;;  %v1678_v57 = vor.u32 %v1801_v51, %v1677_v49  ;;  %v1554_v58 = vor.u32 %v1767_v52, %v1551_v53  ;;  %v1533_v59 = vld [vmem:[%s3420_s3 + $0x40] sm:$0xf]  ;;  %v1765_v60 = vld [vmem:[%s3420_s3 + $0x4c] sm:$0xf0] }
   0xf   :  { %v1661_v61 = vld [vmem:[%s3420_s3 + $0x140] sm:$0xf]  ;;  %v1682_v62 = vor.u32 %v1799_v54, %v1679_v55  ;;  %v1797_v63 = vld [vmem:[%s3420_s3 + $0x14c] sm:$0xf0]  ;;  %v1763_v0 = vld [vmem:[%s3420_s3 + $0x44] sm:$0xf]  ;;  %v1534_v4 = vor.u32 %v1765_v60, %v1533_v59 }
  0x10   :  { %1042 = vmatpush.bf16.msra.mxu0 %v1566_v44  ;;  %v1535_v1 = vld [vmem:[%s3420_s3 + $0x50] sm:$0xf0]  ;;  %v1795_v2 = vld [vmem:[%s3420_s3 + $0x144] sm:$0xf]  ;;  %v1517_v5 = vld [vmem:[%s3420_s3 + $0x20] sm:$0xf]  ;;  %v1662_v7 = vor.u32 %v1797_v63, %v1661_v61 }
  0x11   :  { %1091 = vmatpush.bf16.msra.mxu1 %v1694_v45  ;;  %1140 = vmatpush.bf16.msra.mxu2 %v1570_v46  ;;  %v1663_v3 = vld [vmem:[%s3420_s3 + $0x150] sm:$0xf0]  ;;  %v1761_v6 = vld [vmem:[%s3420_s3 + $0x2c] sm:$0xf0]  ;;  %v1538_v8 = vor.u32 %v1763_v0, %v1535_v1  ;;  %v1645_v9 = vld [vmem:[%s3420_s3 + $0x120] sm:$0xf] }
  0x12   :  { %1189 = vmatpush.bf16.msra.mxu3 %v1698_v50  ;;  %v1793_v10 = vld [vmem:[%s3420_s3 + $0x12c] sm:$0xf0]  ;;  %v1759_v11 = vld [vmem:[%s3420_s3 + $0x24] sm:$0xf]  ;;  %v1666_v12 = vor.u32 %v1795_v2, %v1663_v3  ;;  %v1519_v13 = vld [vmem:[%s3420_s3 + $0x30] sm:$0xf0]  ;;  %v1518_v20 = vor.u32 %v1761_v6, %v1517_v5 }
  0x13   :  { %v2086_v14 = vld [vmem:[%s3421_s0] sm:$0xff]  ;;  %v2091_v15 = vld [vmem:[%s3421_s0 + $0x10] sm:$0xff]  ;;  %v1646_v23 = vor.u32 %v1793_v10, %v1645_v9  ;;  %v1522_v24 = vor.u32 %v1759_v11, %v1519_v13  ;;  %v2145_v36 = vld [vmem:[%s3421_s0 + $0x8] sm:$0xff]  ;;  %v1890_v61 = vmov 128.0  }
  0x14   :  { %1043 = vmatpush.bf16.msra.mxu0 %v1550_v56  ;;  %v1791_v16 = vld [vmem:[%s3420_s3 + $0x124] sm:$0xf]  ;;  %v1647_v17 = vld [vmem:[%s3420_s3 + $0x130] sm:$0xf0]  ;;  %v52_v19 = vadd.f32 %v2091_v15, %v2086_v14  ;;  %v1501_v21 = vld [vmem:[%s3420_s3] sm:$0xf]  ;;  %1820 = vrcp.f32 %v1890_v61 }
  0x15   :  { %1092 = vmatpush.bf16.msra.mxu1 %v1678_v57  ;;  %1141 = vmatpush.bf16.msra.mxu2 %v1554_v58  ;;  %v2102_v18 = vld [vmem:[%s3421_s0 + $0x20] sm:$0xff]  ;;  %v2112_v22 = vld [vmem:[%s3421_s0 + $0x30] sm:$0xff]  ;;  %v1650_v29 = vor.u32 %v1791_v16, %v1647_v17  ;;  %v2155_v40 = vld [vmem:[%s3421_s0 + $0x18] sm:$0xff] }
  0x16   :  { %1190 = vmatpush.bf16.msra.mxu3 %v1682_v62  ;;  %v1757_v25 = vld [vmem:[%s3420_s3 + $0xc] sm:$0xf0]  ;;  %v1629_v26 = vld [vmem:[%s3420_s3 + $0x100] sm:$0xf]  ;;  %v53_v28 = vadd.f32 %v52_v19, %v2102_v18  ;;  %v1755_v30 = vld [vmem:[%s3420_s3 + $0x4] sm:$0xf]  ;;  %v73_v44 = vadd.f32 %v2155_v40, %v2145_v36 }
  0x17   :  { %v1789_v27 = vld [vmem:[%s3420_s3 + $0x10c] sm:$0xf0]  ;;  %v1503_v31 = vld [vmem:[%s3420_s3 + $0x10] sm:$0xf0]  ;;  %v2133_v32 = vld [vmem:[%s3421_s0 + $0x40] sm:$0xff]  ;;  %v1502_v37 = vor.u32 %v1757_v25, %v1501_v21 }
  0x18   :  { %1044 = vmatpush.bf16.msra.mxu0 %v1534_v4  ;;  %v1787_v33 = vld [vmem:[%s3420_s3 + $0x104] sm:$0xf]  ;;  %v1631_v34 = vld [vmem:[%s3420_s3 + $0x110] sm:$0xf0]  ;;  %v54_v35 = vadd.f32 %v53_v28, %v2112_v22  ;;  %v1630_v38 = vor.u32 %v1789_v27, %v1629_v26  ;;  %v2160_v41 = vld [vmem:[%s3421_s0 + $0x28] sm:$0xff]  ;;  %v1506_v42 = vor.u32 %v1755_v30, %v1503_v31 }
  0x19   :  { %1093 = vmatpush.bf16.msra.mxu1 %v1662_v7  ;;  %1142 = vmatpush.bf16.msra.mxu2 %v1538_v8  ;;  %v2150_v39 = vld [vmem:[%s3421_s0 + $0x50] sm:$0xff]  ;;  %v1634_v45 = vor.u32 %v1787_v33, %v1631_v34  ;;  %v2168_v46 = vld [vmem:[%s3421_s0 + $0x60] sm:$0xff]  ;;  %v2173_v47 = vld [vmem:[%s3421_s0 + $0x38] sm:$0xff]  ;;  %v74_v49 = vadd.f32 %v73_v44, %v2160_v41 }
  0x1a   :  { %1191 = vmatpush.bf16.msra.mxu3 %v1666_v12  ;;  %v55_v43 = vadd.f32 %v54_v35, %v2133_v32  ;;  %v2180_v50 = vld [vmem:[%s3421_s0 + $0x70] sm:$0xff]  ;;  %v2185_v51 = vld [vmem:[%s3421_s0 + $0x48] sm:$0xff]  ;;  %v2192_v54 = vld [vmem:[%s3421_s0 + $0x80] sm:$0xff]  ;;  %v1821_v9 = vpop.eup %1820 }
  0x1b   :  { %v75_v53 = vadd.f32 %v74_v49, %v2173_v47  ;;  %v2197_v55 = vld [vmem:[%s3421_s0 + $0x58] sm:$0xff]  ;;  %v2204_v58 = vld [vmem:[%s3421_s0 + $0x90] sm:$0xff]  ;;  %v2209_v59 = vld [vmem:[%s3421_s0 + $0x68] sm:$0xff]  ;;  %vm99_vm0 = vweird.f32 %v1821_v9 }
  0x1c   :  { %1045 = vmatpush.bf16.msra.mxu0 %v1518_v20  ;;  %v56_v48 = vadd.f32 %v55_v43, %v2150_v39  ;;  %v2216_v63 = vld [vmem:[%s3421_s0 + $0xa0] sm:$0xff]  ;;  %v2221_v0 = vld [vmem:[%s3421_s0 + $0x78] sm:$0xff]  ;;  %v2228_v3 = vld [vmem:[%s3421_s0 + $0xb0] sm:$0xff]  ;;  %v95_v20 = vmul.f32 128.0, %v1821_v9 }
  0x1d   :  { %1094 = vmatpush.bf16.msra.mxu1 %v1646_v23  ;;  %1143 = vmatpush.bf16.msra.mxu2 %v1522_v24  ;;  %v76_v57 = vadd.f32 %v75_v53, %v2185_v51  ;;  %v2233_v4 = vld [vmem:[%s3421_s0 + $0x88] sm:$0xff]  ;;  %v2240_v7 = vld [vmem:[%s3421_s0 + $0xc0] sm:$0xff]  ;;  %v2245_v8 = vld [vmem:[%s3421_s0 + $0x98] sm:$0xff] }
  0x1e   :  { %1192 = vmatpush.bf16.msra.mxu3 %v1650_v29  ;;  %v57_v52 = vadd.f32 %v56_v48, %v2168_v46  ;;  %v2252_v12 = vld [vmem:[%s3421_s0 + $0xd0] sm:$0xff]  ;;  %v2257_v13 = vld [vmem:[%s3421_s0 + $0xa8] sm:$0xff]  ;;  %v2264_v19 = vld [vmem:[%s3421_s0 + $0xe0] sm:$0xff]  ;;  %v96_v29 = vsub.f32 1.0, %v95_v20 }
  0x1f   :  { %v77_v62 = vadd.f32 %v76_v57, %v2197_v55  ;;  %v2269_v21 = vld [vmem:[%s3421_s0 + $0xb8] sm:$0xff]  ;;  %v2276_v25 = vld [vmem:[%s3421_s0 + $0xf0] sm:$0xff]  ;;  %v2281_v26 = vld [vmem:[%s3421_s0 + $0xc8] sm:$0xff] }
  0x20   :  { %1046 = vmatpush.bf16.msra.mxu0 %v1502_v37  ;;  %v58_v56 = vadd.f32 %v57_v52, %v2180_v50  ;;  %v2288_v30 = vld [vmem:[%s3421_s0 + $0xd8] sm:$0xff]  ;;  %v2295_v34 = vld [vmem:[%s3421_s0 + $0xe8] sm:$0xff] }
  0x21   :  { %1095 = vmatpush.bf16.msra.mxu1 %v1630_v38  ;;  %1144 = vmatpush.bf16.msra.mxu2 %v1506_v42  ;;  %v78_v2 = vadd.f32 %v77_v62, %v2209_v59  ;;  %v97_v38 = vmul.f32 %v1821_v9, %v96_v29  ;;  %v2301_v42 = vld [vmem:[%s3421_s0 + $0xf8] sm:$0xff] }
  0x22   :  { %1193 = vmatpush.bf16.msra.mxu3 %v1634_v45  ;;  %v59_v60 = vadd.f32 %v58_v56, %v2192_v54 }
  0x23   :  { %v79_v6 = vadd.f32 %v78_v2, %v2221_v0  ;;  %v98_v49 = vadd.f32 %v1821_v9, %v97_v38 }
  0x24   :  { %v60_v1 = vadd.f32 %v59_v60, %v2204_v58 }
  0x25   :  { %v80_v11 = vadd.f32 %v79_v6, %v2233_v4  ;;  %v2305_v57 = vsel %vm99_vm0, %v1821_v9, %v98_v49 }
  0x26   :  { %v61_v5 = vadd.f32 %v60_v1, %v2216_v63 }
  0x27   :  { %v81_v17 = vadd.f32 %v80_v11, %v2245_v8 }
  0x28   :  { %v62_v10 = vadd.f32 %v61_v5, %v2228_v3 }
  0x29   :  { %v82_v24 = vadd.f32 %v81_v17, %v2257_v13 }
  0x2a   :  { %v63_v16 = vadd.f32 %v62_v10, %v2240_v7 }
  0x2b   :  { %v83_v28 = vadd.f32 %v82_v24, %v2269_v21 }
  0x2c   :  { %v64_v23 = vadd.f32 %v63_v16, %v2252_v12 }
  0x2d   :  { %v84_v33 = vadd.f32 %v83_v28, %v2281_v26 }
  0x2e   :  { %v65_v27 = vadd.f32 %v64_v23, %v2264_v19 }
  0x2f   :  { %v85_v37 = vadd.f32 %v84_v33, %v2288_v30 }
  0x30   :  { %v66_v31 = vadd.f32 %v65_v27, %v2276_v25 }
  0x31   :  { %v86_v44 = vadd.f32 %v85_v37, %v2295_v34 }
  0x32   :  { %v67_v35 = vrot.slane %v66_v31, 4 }
  0x33   :  { %v87_v48 = vadd.f32 %v86_v44, %v2301_v42 }
  0x34   :  { %v68_v43 = vadd.f32 %v67_v35, %v66_v31 }
  0x35   :  { %v88_v53 = vrot.slane %v87_v48, 4 }
  0x36   :  { %v69_v45 = vrot.slane %v68_v43, 2 }
  0x37   :  { %v89_v61 = vadd.f32 %v88_v53, %v87_v48 }
  0x38   :  { %v70_v52 = vadd.f32 %v69_v45, %v68_v43 }
  0x39   :  { %v90_v5 = vrot.slane %v89_v61, 2 }
  0x3a   :  { %v71_v56 = vrot.slane %v70_v52, 1 }
  0x3b   :  { %v91_v16 = vadd.f32 %v90_v5, %v89_v61 }
  0x3c   :  { %v72_v60 = vadd.f32 %v71_v56, %v70_v52 }
  0x3d   :  { %v92_v20 = vrot.slane %v91_v16, 1 }
  0x3e   :  { %v101_v62 = vmul.f32 %v2305_v57, %v72_v60 }
  0x40   :  { %v2309_v1 = vsub.f32 %v2086_v14, %v101_v62  ;;  %v2312_v2 = vsub.f32 %v2091_v15, %v101_v62  ;;  %v2315_v6 = vsub.f32 %v2102_v18, %v101_v62  ;;  %v2318_v10 = vsub.f32 %v2112_v22, %v101_v62 }
  0x41   :  { %v2325_v14 = vsub.f32 %v2133_v32, %v101_v62  ;;  %v2330_v17 = vsub.f32 %v2150_v39, %v101_v62  ;;  %v2335_v23 = vsub.f32 %v2168_v46, %v101_v62  ;;  %v93_v32 = vadd.f32 %v92_v20, %v91_v16 }
  0x42   :  { %v135_v9 = vmul.f32 %v2309_v1, %v2309_v1  ;;  %v137_v11 = vmul.f32 %v2312_v2, %v2312_v2  ;;  %v139_v15 = vmul.f32 %v2315_v6, %v2315_v6  ;;  %v141_v18 = vmul.f32 %v2318_v10, %v2318_v10 }
  0x43   :  { %v143_v24 = vmul.f32 %v2325_v14, %v2325_v14  ;;  %v2340_v28 = vsub.f32 %v2180_v50, %v101_v62  ;;  %v145_v39 = vmul.f32 %v2330_v17, %v2330_v17  ;;  %v2345_v31 = vmul.f32 %v2305_v57, %v93_v32 }
  0x44   :  { %v167_v22 = vadd.f32 %v137_v11, %v135_v9  ;;  %v2348_v33 = vsub.f32 %v2192_v54, %v101_v62  ;;  %v147_v46 = vmul.f32 %v2335_v23, %v2335_v23  ;;  %v2361_v38 = vsub.f32 %v2204_v58, %v101_v62 }
  0x45   :  { %v2354_v37 = vsub.f32 %v2145_v36, %v2345_v31  ;;  %v2358_v50 = vsub.f32 %v2155_v40, %v2345_v31  ;;  %v149_v43 = vmul.f32 %v2340_v28, %v2340_v28  ;;  %v2367_v44 = vsub.f32 %v2160_v41, %v2345_v31 }
  0x46   :  { %v168_v27 = vadd.f32 %v167_v22, %v139_v15  ;;  %v2370_v45 = vsub.f32 %v2216_v63, %v101_v62  ;;  %v151_v36 = vmul.f32 %v2348_v33, %v2348_v33  ;;  %v2376_v40 = vsub.f32 %v2173_v47, %v2345_v31 }
  0x47   :  { %v136_v58 = vmul.f32 %v2354_v37, %v2354_v37  ;;  %v138_v49 = vmul.f32 %v2358_v50, %v2358_v50  ;;  %v2383_v41 = vsub.f32 %v2228_v3, %v101_v62  ;;  %v153_v63 = vmul.f32 %v2361_v38, %v2361_v38 }
  0x48   :  { %v169_v29 = vadd.f32 %v168_v27, %v141_v18  ;;  %v2389_v53 = vsub.f32 %v2185_v51, %v2345_v31  ;;  %v140_v47 = vmul.f32 %v2367_v44, %v2367_v44  ;;  %v2394_v56 = vsub.f32 %v2240_v7, %v101_v62 }
  0x49   :  { %v155_v60 = vmul.f32 %v2370_v45, %v2370_v45  ;;  %v2400_v3 = vsub.f32 %v2197_v55, %v2345_v31  ;;  %v142_v5 = vmul.f32 %v2376_v40, %v2376_v40  ;;  %v188_v9 = vadd.f32 %v138_v49, %v136_v58 }
  0x4a   :  { %v170_v35 = vadd.f32 %v169_v29, %v143_v24  ;;  %v2405_v51 = vsub.f32 %v2252_v12, %v101_v62  ;;  %v157_v11 = vmul.f32 %v2383_v41, %v2383_v41  ;;  %v2411_v16 = vsub.f32 %v2209_v59, %v2345_v31 }
  0x4b   :  { %v144_v15 = vmul.f32 %v2389_v53, %v2389_v53  ;;  %v189_v55 = vadd.f32 %v188_v9, %v140_v47  ;;  %v2416_v18 = vsub.f32 %v2264_v19, %v101_v62  ;;  %v159_v22 = vmul.f32 %v2394_v56, %v2394_v56 }
  0x4c   :  { %v171_v54 = vadd.f32 %v170_v35, %v145_v39  ;;  %v2422_v20 = vsub.f32 %v2221_v0, %v2345_v31  ;;  %v146_v24 = vmul.f32 %v2400_v3, %v2400_v3  ;;  %v2427_v27 = vsub.f32 %v2276_v25, %v101_v62 }
  0x4d   :  { %v190_v59 = vadd.f32 %v189_v55, %v142_v5  ;;  %v161_v32 = vmul.f32 %v2405_v51, %v2405_v51  ;;  %v2433_v39 = vsub.f32 %v2233_v4, %v2345_v31  ;;  %v148_v29 = vmul.f32 %v2411_v16, %v2411_v16 }
  0x4e   :  { %v172_v48 = vadd.f32 %v171_v54, %v147_v46  ;;  %v163_v46 = vmul.f32 %v2416_v18, %v2416_v18  ;;  %v2441_v25 = vsub.f32 %v2245_v8, %v2345_v31  ;;  %v150_v62 = vmul.f32 %v2422_v20, %v2422_v20 }
  0x4f   :  { %v191_v0 = vadd.f32 %v190_v59, %v144_v15  ;;  %v165_v4 = vmul.f32 %v2427_v27, %v2427_v27  ;;  %v2455_v8 = vsub.f32 %v2269_v21, %v2345_v31  ;;  %v2467_v9 = vsub.f32 %v2288_v30, %v2345_v31 }
  0x50   :  { %v173_v52 = vadd.f32 %v172_v48, %v149_v43  ;;  %v152_v48 = vmul.f32 %v2433_v39, %v2433_v39  ;;  %v2473_v15 = vsub.f32 %v2295_v34, %v2345_v31 }
  0x51   :  { %v192_v43 = vadd.f32 %v191_v0, %v146_v24  ;;  %v158_v21 = vmul.f32 %v2455_v8, %v2455_v8  ;;  %v162_v30 = vmul.f32 %v2467_v9, %v2467_v9 }
  0x52   :  { %v174_v61 = vadd.f32 %v173_v52, %v151_v36  ;;  %v2449_v36 = vsub.f32 %v2257_v13, %v2345_v31 }
  0x53   :  { %v193_v58 = vadd.f32 %v192_v43, %v148_v29 }
  0x54   :  { %v175_v7 = vadd.f32 %v174_v61, %v153_v63  ;;  %v154_v63 = vmul.f32 %v2441_v25, %v2441_v25  ;;  %v156_v13 = vmul.f32 %v2449_v36, %v2449_v36 }
  0x55   :  { %v194_v52 = vadd.f32 %v193_v58, %v150_v62 }
  0x56   :  { %v176_v12 = vadd.f32 %v175_v7, %v155_v60  ;;  %v2461_v60 = vsub.f32 %v2281_v26, %v2345_v31 }
  0x57   :  { %v195_v61 = vadd.f32 %v194_v52, %v152_v48 }
  0x58   :  { %v177_v19 = vadd.f32 %v176_v12, %v157_v11  ;;  %v160_v26 = vmul.f32 %v2461_v60, %v2461_v60  ;;  %v2479_v12 = vsub.f32 %v2301_v42, %v2345_v31 }
  0x59   :  { %v196_v11 = vadd.f32 %v195_v61, %v154_v63 }
  0x5a   :  { %v178_v35 = vadd.f32 %v177_v19, %v159_v22  ;;  %v166_v29 = vmul.f32 %v2479_v12, %v2479_v12 }
  0x5b   :  { %v197_v55 = vadd.f32 %v196_v11, %v156_v13 }
  0x5c   :  { %v179_v54 = vadd.f32 %v178_v35, %v161_v32  ;;  %v164_v32 = vmul.f32 %v2473_v15, %v2473_v15 }
  0x5d   :  { %v198_v24 = vadd.f32 %v197_v55, %v158_v21  ;;  %v265_v21 = vld [vmem:[%s3422_s1] sm:$0x3] }
  0x5e   :  { %v180_v49 = vadd.f32 %v179_v54, %v163_v46  ;;  %v2495_v55 = vperm.slane %v265_v21, 0 }
  0x5f   :  { %v199_v19 = vadd.f32 %v198_v24, %v160_v26 }
  0x60   :  { %v181_v47 = vadd.f32 %v180_v49, %v165_v4 }
  0x61   :  { %v200_v0 = vadd.f32 %v199_v19, %v162_v30 }
  0x62   :  { %v182_v5 = vrot.slane %v181_v47, 4 }
  0x63   :  { %v201_v35 = vadd.f32 %v200_v0, %v164_v32 }
  0x64   :  { %v183_v7 = vadd.f32 %v182_v5, %v181_v47 }
  0x65   :  { %v202_v42 = vadd.f32 %v201_v35, %v166_v29 }
  0x66   :  { %v184_v22 = vrot.slane %v183_v7, 2 }
  0x67   :  { %v203_v43 = vrot.slane %v202_v42, 4 }
  0x68   :  { %v185_v59 = vadd.f32 %v184_v22, %v183_v7  ;;  %v303_v7 = vld [vmem:[%s3423_s2] sm:$0x3] }
  0x69   :  { %v204_v4 = vadd.f32 %v203_v43, %v202_v42  ;;  %v2499_v30 = vperm.slane %v303_v7, 0 }
  0x6a   :  { %v186_v34 = vrot.slane %v185_v59, 1 }
  0x6b   :  { %v205_v54 = vrot.slane %v204_v4, 2 }
  0x6c   :  { %v187_v46 = vadd.f32 %v186_v34, %v185_v59 }
  0x6d   :  { %v206_v48 = vadd.f32 %v205_v54, %v204_v4 }
  0x6e   :  { %v209_v62 = vmul.f32 %v187_v46, %v2305_v57 }
  0x6f   :  { %v207_v63 = vrot.slane %v206_v48, 1 }
  0x70   :  { %v211_v31 = vadd.f32 1e-05, %v209_v62 }
  0x71   :  { %v208_v47 = vadd.f32 %v207_v63, %v206_v48 }
  0x72   :  { %1822 = vrsqrt.f32 %v211_v31  ;;  %vm219_vm1 = vweird.f32 %v211_v31 }
  0x73   :  { %v210_v61 = vmul.f32 %v208_v47, %v2305_v57 }
  0x75   :  { %v212_v11 = vadd.f32 1e-05, %v210_v61 }
  0x77   :  { %1824 = vrsqrt.f32 %v212_v11  ;;  %vm229_vm4 = vweird.f32 %v212_v11 }
  0x78   :  { %v1823_v58 = vpop.eup %1822 }
  0x79   :  { %v214_v49 = vmul.f32 %v1823_v58, %v211_v31  ;;  %vm220_vm2 = vweird.f32 %v1823_v58 }
  0x7a   :  { %vm221_vm3 = vmor %vm219_vm1, %vm220_vm2 }
  0x7b   :  { %v215_v52 = vmul.f32 %v1823_v58, %v214_v49 }
  0x7d   :  { %v216_v13 = vmul.f32 0.5, %v215_v52  ;;  %v1825_v46 = vpop.eup %1824 }
  0x7e   :  { %v224_v35 = vmul.f32 %v1825_v46, %v212_v11  ;;  %vm230_vm5 = vweird.f32 %v1825_v46 }
  0x7f   :  { %v217_v5 = vsub.f32 1.5, %v216_v13  ;;  %vm231_vm6 = vmor %vm229_vm4, %vm230_vm5 }
  0x80   :  { %v225_v31 = vmul.f32 %v1825_v46, %v224_v35 }
  0x81   :  { %v218_v26 = vmul.f32 %v1823_v58, %v217_v5 }
  0x83   :  { %v2497_v22 = vsel %vm221_vm3, %v1823_v58, %v218_v26  ;;  %v226_v58 = vmul.f32 0.5, %v225_v31  ;;  %v1751_v31 = vld [vmem:[%s3420_s3 + $0x1f8] sm:$0xf0] }
  0x84   :  { %v233_v57 = vmul.f32 %v2497_v22, %v2309_v1  ;;  %v235_v24 = vmul.f32 %v2497_v22, %v2312_v2  ;;  %v237_v59 = vmul.f32 %v2497_v22, %v2315_v6  ;;  %v239_v32 = vmul.f32 %v2497_v22, %v2318_v10 }
  0x85   :  { %v227_v13 = vsub.f32 1.5, %v226_v58 }
  0x86   :  { %v271_v19 = vmul.f32 %v2495_v55, %v233_v57  ;;  %v273_v34 = vmul.f32 %v2495_v55, %v235_v24  ;;  %v275_v29 = vmul.f32 %v2495_v55, %v237_v59  ;;  %v277_v0 = vmul.f32 %v2495_v55, %v239_v32 }
  0x87   :  { %v228_v57 = vmul.f32 %v1825_v46, %v227_v13  ;;  %v2539_v24 = vperm.slane %v265_v21, 1  ;;  %v2541_v59 = vperm.slane %v303_v7, 1  ;;  %v1784_v21 = vld [vmem:[%s3420_s3 + $0xec] sm:$0xf]  ;;  %v1623_v7 = vld [vmem:[%s3420_s3 + $0xf8] sm:$0xf0] }
  0x88   :  { %v2514_v1 = vadd.f32 %v2499_v30, %v271_v19  ;;  %v2517_v2 = vadd.f32 %v2499_v30, %v273_v34  ;;  %v2520_v6 = vadd.f32 %v2499_v30, %v275_v29  ;;  %v2523_v10 = vadd.f32 %v2499_v30, %v277_v0 }
  0x89   :  { %v2544_v29 = vsel %vm231_vm6, %v1825_v46, %v228_v57  ;;  %v1816_v46 = vld [vmem:[%s3420_s3 + $0x1ec] sm:$0xf] }
  0x8a   :  { %v341_v62 = vmul.f32 %v2514_v1, %v2514_v1  ;;  %v343_v42 = vmul.f32 %v2517_v2, %v2517_v2  ;;  %v345_v43 = vmul.f32 %v2520_v6, %v2520_v6  ;;  %v347_v4 = vmul.f32 %v2523_v10, %v2523_v10 }
  0x8b   :  { %v234_v35 = vmul.f32 %v2544_v29, %v2354_v37  ;;  %v240_v37 = vmul.f32 %v2544_v29, %v2376_v40  ;;  %v243_v40 = vmul.f32 %v2497_v22, %v2330_v17  ;;  %v1754_v58 = vor.u32 %v1816_v46, %v1751_v31 }
  0x8c   :  { %v373_v54 = vmul.f32 %v341_v62, %v2514_v1  ;;  %v375_v48 = vmul.f32 %v343_v42, %v2517_v2  ;;  %v377_v49 = vmul.f32 %v345_v43, %v2520_v6  ;;  %v379_v63 = vmul.f32 %v347_v4, %v2523_v10  ;;  %v1621_v43 = vld [vmem:[%s3420_s3 + $0xe8] sm:$0xf]  ;;  %v1786_v4 = vld [vmem:[%s3420_s3 + $0xf4] sm:$0xf0] }
  0x8d   :  { %v236_v62 = vmul.f32 %v2544_v29, %v2358_v50  ;;  %v238_v42 = vmul.f32 %v2544_v29, %v2367_v44  ;;  %v1626_v50 = vor.u32 %v1784_v21, %v1623_v7  ;;  %v241_v44 = vmul.f32 %v2497_v22, %v2325_v14  ;;  %1382 = vmatpush.bf16.msrb.mxu3 %v1754_v58 }
  0x8e   :  { %v405_v52 = vmul.f32 0.044715, %v373_v54  ;;  %v407_v47 = vmul.f32 0.044715, %v375_v48  ;;  %v409_v61 = vmul.f32 0.044715, %v377_v49  ;;  %v272_v54 = vmul.f32 %v2539_v24, %v234_v35 }
  0x8f   :  { %v411_v5 = vmul.f32 0.044715, %v379_v63  ;;  %v274_v48 = vmul.f32 %v2539_v24, %v236_v62  ;;  %v1749_v49 = vld [vmem:[%s3420_s3 + $0x1e8] sm:$0xf]  ;;  %v1818_v63 = vld [vmem:[%s3420_s3 + $0x1f4] sm:$0xf0]  ;;  %1333 = vmatpush.bf16.msrb.mxu2 %v1626_v50  ;;  %v281_v57 = vmul.f32 %v2495_v55, %v243_v40  ;;  %v242_v7 = vmul.f32 %v2544_v29, %v2389_v53 }
  0x90   :  { %v437_v11 = vadd.f32 %v405_v52, %v2514_v1  ;;  %v439_v26 = vadd.f32 %v407_v47, %v2517_v2  ;;  %v441_v32 = vadd.f32 %v409_v61, %v2520_v6  ;;  %v1622_v52 = vor.u32 %v1786_v4, %v1621_v43 }
  0x91   :  { %v443_v0 = vadd.f32 %v411_v5, %v2523_v10  ;;  %v1750_v14 = vor.u32 %v1818_v63, %v1749_v49  ;;  %v2586_v17 = vadd.f32 %v2541_v59, %v272_v54  ;;  %v2589_v61 = vadd.f32 %v2541_v59, %v274_v48 }
  0x92   :  { %v469_v19 = vmul.f32 0.7978846, %v437_v11  ;;  %v471_v34 = vmul.f32 0.7978846, %v439_v26  ;;  %v473_v47 = vmul.f32 0.7978846, %v441_v32  ;;  %v276_v5 = vmul.f32 %v2539_v24, %v238_v42  ;;  %1235 = vmatpush.bf16.msrb.mxu0 %v1622_v52 }
  0x93   :  { %v475_v13 = vmul.f32 0.7978846, %v443_v0  ;;  %v278_v11 = vmul.f32 %v2539_v24, %v240_v37  ;;  %1284 = vmatpush.bf16.msrb.mxu1 %v1750_v14  ;;  %v279_v26 = vmul.f32 %v2495_v55, %v241_v44  ;;  %v342_v32 = vmul.f32 %v2586_v17, %v2586_v17 }
  0x94   :  { %1826 = vtanh.f32 %v469_v19  ;;  %v344_v19 = vmul.f32 %v2589_v61, %v2589_v61  ;;  %v2609_v21 = vadd.f32 %v2499_v30, %v281_v57  ;;  %v244_v40 = vmul.f32 %v2544_v29, %v2400_v3 }
  0x95   :  { %1828 = vtanh.f32 %v471_v34  ;;  %v2600_v34 = vadd.f32 %v2541_v59, %v276_v5  ;;  %v2603_v35 = vadd.f32 %v2541_v59, %v278_v11  ;;  %v2606_v62 = vadd.f32 %v2499_v30, %v279_v26 }
  0x96   :  { %1830 = vtanh.f32 %v473_v47  ;;  %v374_v37 = vmul.f32 %v342_v32, %v2586_v17  ;;  %v376_v50 = vmul.f32 %v344_v19, %v2589_v61  ;;  %v351_v14 = vmul.f32 %v2609_v21, %v2609_v21 }
  0x97   :  { %1832 = vtanh.f32 %v475_v13  ;;  %v346_v31 = vmul.f32 %v2600_v34, %v2600_v34  ;;  %v348_v4 = vmul.f32 %v2603_v35, %v2603_v35  ;;  %v349_v44 = vmul.f32 %v2606_v62, %v2606_v62 }
  0x98   :  { %v406_v54 = vmul.f32 0.044715, %v374_v37  ;;  %v408_v48 = vmul.f32 0.044715, %v376_v50  ;;  %v280_v50 = vmul.f32 %v2539_v24, %v242_v7  ;;  %v1812_v7 = vld [vmem:[%s3420_s3 + $0x1cc] sm:$0xf] }
  0x99   :  { %v378_v58 = vmul.f32 %v346_v31, %v2600_v34  ;;  %v380_v52 = vmul.f32 %v348_v4, %v2603_v35  ;;  %v381_v47 = vmul.f32 %v349_v44, %v2606_v62  ;;  %v1607_v44 = vld [vmem:[%s3420_s3 + $0xd8] sm:$0xf0] }
  0x9a   :  { %v1827_v0 = vpop.eup %1826  ;;  %v438_v11 = vadd.f32 %v406_v54, %v2586_v17  ;;  %v440_v3 = vadd.f32 %v408_v48, %v2589_v61  ;;  %v282_v54 = vmul.f32 %v2539_v24, %v244_v40  ;;  %v2649_v48 = vadd.f32 %v2541_v59, %v280_v50  ;;  %v1605_v40 = vld [vmem:[%s3420_s3 + $0xc8] sm:$0xf] }
  0x9b   :  { %v1829_v46 = vpop.eup %1828  ;;  %v533_v42 = vadd.f32 1.0, %v1827_v0  ;;  %v410_v19 = vmul.f32 0.044715, %v378_v58  ;;  %v412_v0 = vmul.f32 0.044715, %v380_v52 }
  0x9c   :  { %v535_v43 = vadd.f32 1.0, %v1829_v46  ;;  %v1831_v49 = vpop.eup %1830  ;;  %v470_v46 = vmul.f32 0.7978846, %v438_v11  ;;  %v2666_v11 = vadd.f32 %v2541_v59, %v282_v54 }
  0x9d   :  { %v565_v53 = vmul.f32 0.5, %v533_v42  ;;  %v1833_v13 = vpop.eup %1832  ;;  %v537_v26 = vadd.f32 1.0, %v1831_v49  ;;  %v472_v42 = vmul.f32 0.7978846, %v440_v3  ;;  %v444_v4 = vadd.f32 %v412_v0, %v2603_v35 }
  0x9e   :  { %v567_v63 = vmul.f32 0.5, %v535_v43  ;;  %v539_v32 = vadd.f32 1.0, %v1833_v13  ;;  %1834 = vtanh.f32 %v470_v46  ;;  %v350_v3 = vmul.f32 %v2649_v48, %v2649_v48 }
  0x9f   :  { %v597_v5 = vmul.f32 %v565_v53, %v2514_v1  ;;  %v569_v37 = vmul.f32 0.5, %v537_v26  ;;  %v442_v1 = vadd.f32 %v410_v19, %v2600_v34  ;;  %v383_v53 = vmul.f32 %v351_v14, %v2609_v21  ;;  %v1782_v14 = vld [vmem:[%s3420_s3 + $0xd4] sm:$0xf0] }
  0xa0   :  { %v599_v57 = vmul.f32 %v567_v63, %v2517_v2  ;;  %v571_v43 = vmul.f32 0.5, %v539_v32  ;;  %v1780_v2 = vld [vmem:[%s3420_s3 + $0xcc] sm:$0xf]  ;;  %1836 = vtanh.f32 %v472_v42  ;;  %v476_v49 = vmul.f32 0.7978846, %v444_v4 }
  0xa1   :  { %v474_v58 = vmul.f32 0.7978846, %v442_v1  ;;  %v1735_v63 = vld [vmem:[%s3420_s3 + $0x1d8] sm:$0xf0]  ;;  %v1610_v52 = vor.u32 %v1780_v2, %v1607_v44  ;;  %v601_v26 = vmul.f32 %v569_v37, %v2520_v6  ;;  %v1606_v32 = vor.u32 %v1782_v14, %v1605_v40  ;;  %v1814_v19 = vld [vmem:[%s3420_s3 + $0x1d4] sm:$0xf0] }
  0xa2   :  { %v2633_v31 = vpack.c.bf16 %v599_v57, %v597_v5  ;;  %v1738_v13 = vor.u32 %v1812_v7, %v1735_v63  ;;  %v1733_v5 = vld [vmem:[%s3420_s3 + $0x1c8] sm:$0xf]  ;;  %v603_v57 = vmul.f32 %v571_v43, %v2523_v10  ;;  %v413_v0 = vmul.f32 0.044715, %v381_v47 }
  0xa3   :  { %1838 = vtanh.f32 %v474_v58  ;;  %1334 = vmatpush.bf16.msrb.mxu2 %v1610_v52  ;;  %v1734_v46 = vor.u32 %v1814_v19, %v1733_v5  ;;  %v415_v42 = vmul.f32 0.044715, %v383_v53  ;;  %v352_v50 = vmul.f32 %v2666_v11, %v2666_v11  ;;  %1236 = vmatpush.bf16.msrb.mxu0 %v1606_v32 }
  0xa4   :  { %1047 = vmatmul.bf16.vlgmr.msra.gmra.mxu0 %v2633_v31  ;;  %1145 = vmatmul.bf16.vlgmr.msra.gmra.mxu2 %v2633_v31  ;;  %v445_v1 = vadd.f32 %v413_v0, %v2606_v62  ;;  %v382_v6 = vmul.f32 %v350_v3, %v2649_v48  ;;  %v245_v10 = vmul.f32 %v2497_v22, %v2335_v23  ;;  %v1835_v47 = vpop.eup %1834  ;;  %1840 = vtanh.f32 %v476_v49 }
  0xa5   :  { %1383 = vmatpush.bf16.msrb.mxu3 %v1738_v13  ;;  %v247_v37 = vmul.f32 %v2497_v22, %v2340_v28  ;;  %1285 = vmatpush.bf16.msrb.mxu1 %v1734_v46  ;;  %v447_v43 = vadd.f32 %v415_v42, %v2609_v21  ;;  %v384_v4 = vmul.f32 %v352_v50, %v2666_v11  ;;  %v534_v7 = vadd.f32 1.0, %v1835_v47 }
  0xa6   :  { %v246_v2 = vmul.f32 %v2544_v29, %v2411_v16  ;;  %v1837_v44 = vpop.eup %1836  ;;  %v477_v53 = vmul.f32 0.7978846, %v445_v1  ;;  %v414_v54 = vmul.f32 0.044715, %v382_v6  ;;  %v283_v58 = vmul.f32 %v2495_v55, %v245_v10 }
  0xa7   :  { %v536_v23 = vadd.f32 1.0, %v1837_v44  ;;  %v479_v63 = vmul.f32 0.7978846, %v447_v43  ;;  %v416_v52 = vmul.f32 0.044715, %v384_v4  ;;  %v285_v28 = vmul.f32 %v2495_v55, %v247_v37 }
  0xa8   :  { %v566_v49 = vmul.f32 0.5, %v534_v7  ;;  %1842 = vtanh.f32 %v477_v53  ;;  %v446_v13 = vadd.f32 %v414_v54, %v2649_v48  ;;  %v2691_v40 = vadd.f32 %v2499_v30, %v283_v58 }
  0xa9   :  { %v1839_v14 = vpop.eup %1838  ;;  %v568_v16 = vmul.f32 0.5, %v536_v23  ;;  %1844 = vtanh.f32 %v479_v63  ;;  %v2695_v3 = vadd.f32 %v2499_v30, %v285_v28  ;;  %v248_v32 = vmul.f32 %v2544_v29, %v2422_v20  ;;  %v1808_v23 = vld [vmem:[%s3420_s3 + $0x1ac] sm:$0xf]  ;;  %v1719_v63 = vld [vmem:[%s3420_s3 + $0x1b8] sm:$0xf0] }
  0xaa   :  { %v598_v5 = vmul.f32 %v566_v49, %v2586_v17  ;;  %v1841_v19 = vpop.eup %1840  ;;  %v448_v46 = vadd.f32 %v416_v52, %v2666_v11  ;;  %v478_v42 = vmul.f32 0.7978846, %v446_v13  ;;  %v353_v50 = vmul.f32 %v2691_v40, %v2691_v40  ;;  %v1589_v49 = vld [vmem:[%s3420_s3 + $0xa8] sm:$0xf]  ;;  %v1778_v13 = vld [vmem:[%s3420_s3 + $0xb4] sm:$0xf0] }
  0xab   :  { %v600_v0 = vmul.f32 %v568_v16, %v2589_v61  ;;  %v2703_v1 = vpack.c.bf16 %v603_v57, %v601_v26  ;;  %v355_v17 = vmul.f32 %v2695_v3, %v2695_v3  ;;  %v284_v6 = vmul.f32 %v2539_v24, %v246_v2  ;;  %v1776_v57 = vld [vmem:[%s3420_s3 + $0xac] sm:$0xf]  ;;  %v1591_v2 = vld [vmem:[%s3420_s3 + $0xb8] sm:$0xf0] }
  0xac   :  { %v538_v20 = vadd.f32 1.0, %v1839_v14  ;;  %v540_v47 = vadd.f32 1.0, %v1841_v19  ;;  %v286_v61 = vmul.f32 %v2539_v24, %v248_v32  ;;  %v480_v26 = vmul.f32 0.7978846, %v448_v46  ;;  %v1810_v46 = vld [vmem:[%s3420_s3 + $0x1b4] sm:$0xf0] }
  0xad   :  { %v2708_v10 = vpack.c.bf16 %v600_v0, %v598_v5  ;;  %v2712_v43 = vadd.f32 %v2541_v59, %v284_v6  ;;  %1846 = vtanh.f32 %v478_v42  ;;  %v385_v44 = vmul.f32 %v353_v50, %v2691_v40  ;;  %v1717_v0 = vld [vmem:[%s3420_s3 + $0x1a8] sm:$0xf] }
  0xae   :  { %v1843_v37 = vpop.eup %1842  ;;  %v387_v7 = vmul.f32 %v355_v17, %v2695_v3  ;;  %v1594_v58 = vor.u32 %v1776_v57, %v1591_v2  ;;  %v2733_v52 = vadd.f32 %v2541_v59, %v286_v61  ;;  %v1722_v28 = vor.u32 %v1808_v23, %v1719_v63 }
  0xaf   :  { %v1845_v4 = vpop.eup %1844  ;;  %1096 = vmatmul.bf16.vlgmr.msra.gmra.mxu1 %v2708_v10  ;;  %1194 = vmatmul.bf16.vlgmr.msra.gmra.mxu3 %v2708_v10  ;;  %v541_v53 = vadd.f32 1.0, %v1843_v37  ;;  %v354_v14 = vmul.f32 %v2712_v43, %v2712_v43  ;;  %v249_v16 = vmul.f32 %v2497_v22, %v2348_v33  ;;  %v570_v5 = vmul.f32 0.5, %v538_v20 }
  0xb0   :  { %v543_v54 = vadd.f32 1.0, %v1845_v4  ;;  %v572_v32 = vmul.f32 0.5, %v540_v47  ;;  %1335 = vmatpush.bf16.msrb.mxu2 %v1594_v58  ;;  %v1590_v19 = vor.u32 %v1778_v13, %v1589_v49  ;;  %v356_v42 = vmul.f32 %v2733_v52, %v2733_v52  ;;  %1384 = vmatpush.bf16.msrb.mxu3 %v1722_v28 }
  0xb1   :  { %1848 = vtanh.f32 %v480_v26  ;;  %v1718_v50 = vor.u32 %v1810_v46, %v1717_v0  ;;  %v417_v17 = vmul.f32 0.044715, %v385_v44  ;;  %v251_v33 = vmul.f32 %v2497_v22, %v2361_v38 }
  0xb2   :  { %v573_v6 = vmul.f32 0.5, %v541_v53  ;;  %v575_v37 = vmul.f32 0.5, %v543_v54  ;;  %1237 = vmatpush.bf16.msrb.mxu0 %v1590_v19  ;;  %v419_v20 = vmul.f32 0.044715, %v387_v7  ;;  %v386_v47 = vmul.f32 %v354_v14, %v2712_v43 }
  0xb3   :  { %v1847_v61 = vpop.eup %1846  ;;  %1286 = vmatpush.bf16.msrb.mxu1 %v1718_v50  ;;  %v449_v4 = vadd.f32 %v417_v17, %v2691_v40  ;;  %v388_v57 = vmul.f32 %v356_v42, %v2733_v52  ;;  %v287_v26 = vmul.f32 %v2495_v55, %v249_v16  ;;  %v602_v2 = vmul.f32 %v570_v5, %v2600_v34 }
  0xb4   :  { %1052 = vmatmul.bf16.gmra.mxu0 %v2703_v1  ;;  %1150 = vmatmul.bf16.gmra.mxu2 %v2703_v1  ;;  %v451_v44 = vadd.f32 %v419_v20, %v2695_v3  ;;  %v418_v58 = vmul.f32 0.044715, %v386_v47  ;;  %v604_v38 = vmul.f32 %v572_v32, %v2603_v35  ;;  %v289_v7 = vmul.f32 %v2495_v55, %v251_v33 }
  0xb5   :  { %v481_v53 = vmul.f32 0.7978846, %v449_v4  ;;  %v420_v54 = vmul.f32 0.044715, %v388_v57  ;;  %v605_v23 = vmul.f32 %v573_v6, %v2606_v62  ;;  %v607_v63 = vmul.f32 %v575_v37, %v2609_v21  ;;  %v1575_v4 = vld [vmem:[%s3420_s3 + $0x98] sm:$0xf0] }
  0xb6   :  { %v483_v28 = vmul.f32 0.7978846, %v451_v44  ;;  %v2766_v49 = vadd.f32 %v2499_v30, %v287_v26  ;;  %v542_v14 = vadd.f32 1.0, %v1847_v61  ;;  %v2769_v34 = vadd.f32 %v2499_v30, %v289_v7  ;;  %v1804_v57 = vld [vmem:[%s3420_s3 + $0x18c] sm:$0xf] }
  0xb7   :  { %v1849_v13 = vpop.eup %1848  ;;  %1850 = vtanh.f32 %v481_v53  ;;  %v250_v35 = vmul.f32 %v2544_v29, %v2433_v39  ;;  %v450_v16 = vadd.f32 %v418_v58, %v2712_v43  ;;  %v452_v62 = vadd.f32 %v420_v54, %v2733_v52  ;;  %v1703_v54 = vld [vmem:[%s3420_s3 + $0x198] sm:$0xf0]  ;;  %v1573_v7 = vld [vmem:[%s3420_s3 + $0x88] sm:$0xf] }
  0xb8   :  { %1852 = vtanh.f32 %v483_v28  ;;  %v357_v21 = vmul.f32 %v2766_v49, %v2766_v49  ;;  %v2777_v5 = vpack.c.bf16 %v604_v38, %v602_v2  ;;  %v359_v32 = vmul.f32 %v2769_v34, %v2769_v34 }
  0xb9   :  { %v252_v19 = vmul.f32 %v2544_v29, %v2441_v25  ;;  %v288_v0 = vmul.f32 %v2539_v24, %v250_v35  ;;  %v2784_v46 = vpack.c.bf16 %v607_v63, %v605_v23  ;;  %v544_v39 = vadd.f32 1.0, %v1849_v13  ;;  %v1772_v25 = vld [vmem:[%s3420_s3 + $0x8c] sm:$0xf]  ;;  %v1774_v13 = vld [vmem:[%s3420_s3 + $0x94] sm:$0xf0] }
  0xba   :  { %v389_v42 = vmul.f32 %v357_v21, %v2766_v49  ;;  %v574_v50 = vmul.f32 0.5, %v542_v14  ;;  %v482_v6 = vmul.f32 0.7978846, %v450_v16  ;;  %v484_v37 = vmul.f32 0.7978846, %v452_v62 }
  0xbb   :  { %v290_v17 = vmul.f32 %v2539_v24, %v252_v19  ;;  %v2789_v33 = vadd.f32 %v2541_v59, %v288_v0  ;;  %v391_v20 = vmul.f32 %v359_v32, %v2769_v34  ;;  %v576_v58 = vmul.f32 0.5, %v544_v39  ;;  %v1701_v14 = vld [vmem:[%s3420_s3 + $0x188] sm:$0xf]  ;;  %v1806_v21 = vld [vmem:[%s3420_s3 + $0x194] sm:$0xf0] }
  0xbc   :  { %v421_v47 = vmul.f32 0.044715, %v389_v42  ;;  %v1578_v53 = vor.u32 %v1772_v25, %v1575_v4  ;;  %v1706_v28 = vor.u32 %v1804_v57, %v1703_v54  ;;  %v1574_v62 = vor.u32 %v1774_v13, %v1573_v7 }
  0xbd   :  { %v1851_v61 = vpop.eup %1850  ;;  %v2804_v26 = vadd.f32 %v2541_v59, %v290_v17  ;;  %v358_v2 = vmul.f32 %v2789_v33, %v2789_v33  ;;  %v423_v32 = vmul.f32 0.044715, %v391_v20  ;;  %v253_v19 = vmul.f32 %v2497_v22, %v2370_v45 }
  0xbe   :  { %v1853_v44 = vpop.eup %1852  ;;  %v545_v38 = vadd.f32 1.0, %v1851_v61  ;;  %v453_v23 = vadd.f32 %v421_v47, %v2766_v49  ;;  %1336 = vmatpush.bf16.msrb.mxu2 %v1578_v53  ;;  %1854 = vtanh.f32 %v482_v6  ;;  %1385 = vmatpush.bf16.msrb.mxu3 %v1706_v28  ;;  %v1702_v0 = vor.u32 %v1806_v21, %v1701_v14 }
  0xbf   :  { %1101 = vmatmul.bf16.gmra.mxu1 %v2777_v5  ;;  %1199 = vmatmul.bf16.gmra.mxu3 %v2777_v5  ;;  %v547_v63 = vadd.f32 1.0, %v1853_v44  ;;  %v360_v35 = vmul.f32 %v2804_v26, %v2804_v26  ;;  %v390_v16 = vmul.f32 %v358_v2, %v2789_v33  ;;  %v255_v42 = vmul.f32 %v2497_v22, %v2383_v41 }
  0xc0   :  { %v485_v39 = vmul.f32 0.7978846, %v453_v23  ;;  %v577_v17 = vmul.f32 0.5, %v545_v38  ;;  %1238 = vmatpush.bf16.msrb.mxu0 %v1574_v62  ;;  %v455_v61 = vadd.f32 %v423_v32, %v2769_v34  ;;  %v606_v4 = vmul.f32 %v574_v50, %v2649_v48  ;;  %1287 = vmatpush.bf16.msrb.mxu1 %v1702_v0 }
  0xc1   :  { %v579_v47 = vmul.f32 0.5, %v547_v63  ;;  %v392_v25 = vmul.f32 %v360_v35, %v2804_v26  ;;  %v608_v20 = vmul.f32 %v576_v58, %v2666_v11  ;;  %1856 = vtanh.f32 %v484_v37 }
  0xc2   :  { %v422_v45 = vmul.f32 0.044715, %v390_v16  ;;  %v487_v6 = vmul.f32 0.7978846, %v455_v61  ;;  %1858 = vtanh.f32 %v485_v39  ;;  %v291_v2 = vmul.f32 %v2495_v55, %v253_v19  ;;  %v1559_v61 = vld [vmem:[%s3420_s3 + $0x78] sm:$0xf0] }
  0xc3   :  { %v424_v57 = vmul.f32 0.044715, %v392_v25  ;;  %v293_v44 = vmul.f32 %v2495_v55, %v255_v42  ;;  %v609_v38 = vmul.f32 %v577_v17, %v2691_v40  ;;  %v611_v53 = vmul.f32 %v579_v47, %v2695_v3  ;;  %v1768_v47 = vld [vmem:[%s3420_s3 + $0x6c] sm:$0xf] }
  0xc4   :  { %1057 = vmatmul.bf16.gmra.mxu0 %v2784_v46  ;;  %1155 = vmatmul.bf16.gmra.mxu2 %v2784_v46  ;;  %v454_v41 = vadd.f32 %v422_v45, %v2789_v33  ;;  %1860 = vtanh.f32 %v487_v6  ;;  %v2843_v48 = vadd.f32 %v2499_v30, %v291_v2  ;;  %v1855_v11 = vpop.eup %1854  ;;  %v254_v58 = vmul.f32 %v2544_v29, %v2449_v36  ;;  %v1557_v45 = vld [vmem:[%s3420_s3 + $0x68] sm:$0xf] }
  0xc5   :  { %v456_v50 = vadd.f32 %v424_v57, %v2804_v26  ;;  %v2847_v37 = vadd.f32 %v2499_v30, %v293_v44  ;;  %v256_v54 = vmul.f32 %v2544_v29, %v2455_v8  ;;  %v2853_v7 = vpack.c.bf16 %v608_v20, %v606_v4  ;;  %v1800_v4 = vld [vmem:[%s3420_s3 + $0x16c] sm:$0xf]  ;;  %v1687_v20 = vld [vmem:[%s3420_s3 + $0x178] sm:$0xf0]  ;;  %v1685_v44 = vld [vmem:[%s3420_s3 + $0x168] sm:$0xf] }
  0xc6   :  { %v361_v40 = vmul.f32 %v2843_v48, %v2843_v48  ;;  %v486_v23 = vmul.f32 0.7978846, %v454_v41  ;;  %v292_v28 = vmul.f32 %v2539_v24, %v254_v58  ;;  %v2861_v35 = vpack.c.bf16 %v611_v53, %v609_v38  ;;  %v1770_v41 = vld [vmem:[%s3420_s3 + $0x74] sm:$0xf0] }
  0xc7   :  { %v1857_v3 = vpop.eup %1856  ;;  %v363_v63 = vmul.f32 %v2847_v37, %v2847_v37  ;;  %v294_v13 = vmul.f32 %v2539_v24, %v256_v54  ;;  %v546_v8 = vadd.f32 1.0, %v1855_v11  ;;  %v488_v16 = vmul.f32 0.7978846, %v456_v50  ;;  %v1802_v50 = vld [vmem:[%s3420_s3 + $0x174] sm:$0xf0] }
  0xc8   :  { %v1859_v14 = vpop.eup %1858  ;;  %v393_v36 = vmul.f32 %v361_v40, %v2843_v48  ;;  %v2865_v62 = vadd.f32 %v2541_v59, %v292_v28  ;;  %v548_v32 = vadd.f32 1.0, %v1857_v3  ;;  %1862 = vtanh.f32 %v486_v23 }
  0xc9   :  { %v395_v19 = vmul.f32 %v363_v63, %v2847_v37  ;;  %v2869_v39 = vadd.f32 %v2541_v59, %v294_v13  ;;  %v549_v42 = vadd.f32 1.0, %v1859_v14  ;;  %v1562_v25 = vor.u32 %v1768_v47, %v1559_v61 }
  0xca   :  { %v1861_v21 = vpop.eup %1860  ;;  %v425_v0 = vmul.f32 0.044715, %v393_v36  ;;  %v578_v57 = vmul.f32 0.5, %v546_v8  ;;  %1864 = vtanh.f32 %v488_v16  ;;  %v1690_v2 = vor.u32 %v1800_v4, %v1687_v20 }
  0xcb   :  { %v551_v17 = vadd.f32 1.0, %v1861_v21  ;;  %v362_v38 = vmul.f32 %v2865_v62, %v2865_v62  ;;  %v580_v53 = vmul.f32 0.5, %v548_v32  ;;  %1337 = vmatpush.bf16.msrb.mxu2 %v1562_v25  ;;  %v1558_v11 = vor.u32 %v1770_v41, %v1557_v45 }
  0xcc   :  { %v457_v6 = vadd.f32 %v425_v0, %v2843_v48  ;;  %v427_v58 = vmul.f32 0.044715, %v395_v19  ;;  %v364_v54 = vmul.f32 %v2869_v39, %v2869_v39  ;;  %v581_v40 = vmul.f32 0.5, %v549_v42  ;;  %1386 = vmatpush.bf16.msrb.mxu3 %v1690_v2 }
  0xcd   :  { %v1686_v3 = vor.u32 %v1802_v50, %v1685_v44  ;;  %v257_v63 = vmul.f32 %v2497_v22, %v2394_v56  ;;  %v583_v28 = vmul.f32 0.5, %v551_v17  ;;  %1239 = vmatpush.bf16.msrb.mxu0 %v1558_v11  ;;  %v610_v36 = vmul.f32 %v578_v57, %v2712_v43 }
  0xce   :  { %v489_v23 = vmul.f32 0.7978846, %v457_v6  ;;  %v459_v13 = vadd.f32 %v427_v58, %v2847_v37  ;;  %v1863_v14 = vpop.eup %1862  ;;  %v394_v8 = vmul.f32 %v362_v38, %v2865_v62  ;;  %v259_v16 = vmul.f32 %v2497_v22, %v2405_v51 }
  0xcf   :  { %1106 = vmatmul.bf16.gmra.mxu1 %v2853_v7  ;;  %1204 = vmatmul.bf16.gmra.mxu3 %v2853_v7  ;;  %v612_v21 = vmul.f32 %v580_v53, %v2733_v52  ;;  %v396_v19 = vmul.f32 %v364_v54, %v2869_v39  ;;  %v613_v0 = vmul.f32 %v581_v40, %v2766_v49  ;;  %v550_v61 = vadd.f32 1.0, %v1863_v14  ;;  %v1796_v14 = vld [vmem:[%s3420_s3 + $0x14c] sm:$0xf] }
  0xd0   :  { %1288 = vmatpush.bf16.msrb.mxu1 %v1686_v3  ;;  %v491_v32 = vmul.f32 0.7978846, %v459_v13  ;;  %1866 = vtanh.f32 %v489_v23  ;;  %v1865_v56 = vpop.eup %1864  ;;  %v295_v42 = vmul.f32 %v2495_v55, %v257_v63  ;;  %v297_v17 = vmul.f32 %v2495_v55, %v259_v16  ;;  %v1764_v23 = vld [vmem:[%s3420_s3 + $0x4c] sm:$0xf]  ;;  %v1543_v63 = vld [vmem:[%s3420_s3 + $0x58] sm:$0xf0] }
  0xd1   :  { %v258_v43 = vmul.f32 %v2544_v29, %v2461_v60  ;;  %v615_v47 = vmul.f32 %v583_v28, %v2769_v34  ;;  %v260_v51 = vmul.f32 %v2544_v29, %v2467_v9  ;;  %v426_v52 = vmul.f32 0.044715, %v394_v8  ;;  %v1541_v8 = vld [vmem:[%s3420_s3 + $0x48] sm:$0xf] }
  0xd2   :  { %1868 = vtanh.f32 %v491_v32  ;;  %v2922_v25 = vadd.f32 %v2499_v30, %v295_v42  ;;  %v2925_v49 = vadd.f32 %v2499_v30, %v297_v17  ;;  %v552_v20 = vadd.f32 1.0, %v1865_v56  ;;  %v1669_v56 = vld [vmem:[%s3420_s3 + $0x148] sm:$0xf] }
  0xd3   :  { %v296_v4 = vmul.f32 %v2539_v24, %v258_v43  ;;  %v428_v45 = vmul.f32 0.044715, %v396_v19  ;;  %v298_v60 = vmul.f32 %v2539_v24, %v260_v51  ;;  %v2929_v6 = vpack.c.bf16 %v612_v21, %v610_v36  ;;  %v1671_v36 = vld [vmem:[%s3420_s3 + $0x158] sm:$0xf0]  ;;  %v1766_v19 = vld [vmem:[%s3420_s3 + $0x54] sm:$0xf0] }
  0xd4   :  { %1062 = vmatmul.bf16.gmra.mxu0 %v2861_v35  ;;  %1160 = vmatmul.bf16.gmra.mxu2 %v2861_v35  ;;  %v365_v34 = vmul.f32 %v2922_v25, %v2922_v25  ;;  %v367_v9 = vmul.f32 %v2925_v49, %v2925_v49  ;;  %v2935_v2 = vpack.c.bf16 %v615_v47, %v613_v0  ;;  %v582_v44 = vmul.f32 0.5, %v550_v61  ;;  %v1798_v43 = vld [vmem:[%s3420_s3 + $0x154] sm:$0xf0] }
  0xd5   :  { %v2938_v41 = vadd.f32 %v2541_v59, %v296_v4  ;;  %v458_v38 = vadd.f32 %v426_v52, %v2865_v62  ;;  %v584_v11 = vmul.f32 0.5, %v552_v20  ;;  %v460_v50 = vadd.f32 %v428_v45, %v2869_v39 }
  0xd6   :  { %v1867_v57 = vpop.eup %1866  ;;  %v397_v58 = vmul.f32 %v365_v34, %v2922_v25  ;;  %v2944_v54 = vadd.f32 %v2541_v59, %v298_v60  ;;  %v399_v28 = vmul.f32 %v367_v9, %v2925_v49  ;;  %v1546_v13 = vor.u32 %v1764_v23, %v1543_v63 }
  0xd7   :  { %v553_v40 = vadd.f32 1.0, %v1867_v57  ;;  %v366_v16 = vmul.f32 %v2938_v41, %v2938_v41  ;;  %v490_v21 = vmul.f32 0.7978846, %v458_v38  ;;  %v1674_v32 = vor.u32 %v1796_v14, %v1671_v36 }
  0xd8   :  { %v1869_v53 = vpop.eup %1868  ;;  %v261_v0 = vmul.f32 %v2497_v22, %v2416_v18  ;;  %v492_v42 = vmul.f32 0.7978846, %v460_v50  ;;  %1338 = vmatpush.bf16.msrb.mxu2 %v1546_v13  ;;  %v1542_v17 = vor.u32 %v1766_v19, %v1541_v8  ;;  %v429_v47 = vmul.f32 0.044715, %v397_v58 }
  0xd9   :  { %v555_v3 = vadd.f32 1.0, %v1869_v53  ;;  %v368_v61 = vmul.f32 %v2944_v54, %v2944_v54  ;;  %1387 = vmatpush.bf16.msrb.mxu3 %v1674_v32  ;;  %v1670_v51 = vor.u32 %v1798_v43, %v1669_v56  ;;  %v431_v52 = vmul.f32 0.044715, %v399_v28  ;;  %v1760_v56 = vld [vmem:[%s3420_s3 + $0x2c] sm:$0xf] }
  0xda   :  { %v263_v4 = vmul.f32 %v2497_v22, %v2427_v27  ;;  %v585_v20 = vmul.f32 0.5, %v553_v40  ;;  %1240 = vmatpush.bf16.msrb.mxu0 %v1542_v17  ;;  %v461_v18 = vadd.f32 %v429_v47, %v2922_v25  ;;  %v398_v60 = vmul.f32 %v366_v16, %v2938_v41  ;;  %v1792_v47 = vld [vmem:[%s3420_s3 + $0x12c] sm:$0xf] }
  0xdb   :  { %v587_v45 = vmul.f32 0.5, %v555_v3  ;;  %v614_v34 = vmul.f32 %v582_v44, %v2789_v33  ;;  %1870 = vtanh.f32 %v490_v21  ;;  %1289 = vmatpush.bf16.msrb.mxu1 %v1670_v51  ;;  %v463_v9 = vadd.f32 %v431_v52, %v2925_v49 }
  0xdc   :  { %v299_v57 = vmul.f32 %v2495_v55, %v261_v0  ;;  %v616_v38 = vmul.f32 %v584_v11, %v2804_v26  ;;  %1872 = vtanh.f32 %v492_v42  ;;  %v493_v53 = vmul.f32 0.7978846, %v461_v18  ;;  %v1527_v0 = vld [vmem:[%s3420_s3 + $0x38] sm:$0xf0] }
  0xdd   :  { %v400_v27 = vmul.f32 %v368_v61, %v2944_v54  ;;  %v495_v22 = vmul.f32 0.7978846, %v463_v9  ;;  %v301_v50 = vmul.f32 %v2495_v55, %v263_v4  ;;  %v262_v33 = vmul.f32 %v2544_v29, %v2473_v15  ;;  %v1655_v61 = vld [vmem:[%s3420_s3 + $0x138] sm:$0xf0]  ;;  %v1653_v9 = vld [vmem:[%s3420_s3 + $0x128] sm:$0xf] }
  0xde   :  { %v2992_v58 = vadd.f32 %v2499_v30, %v299_v57  ;;  %v617_v44 = vmul.f32 %v585_v20, %v2843_v48  ;;  %v619_v40 = vmul.f32 %v587_v45, %v2847_v37  ;;  %1874 = vtanh.f32 %v493_v53  ;;  %v1525_v20 = vld [vmem:[%s3420_s3 + $0x28] sm:$0xf]  ;;  %v1762_v45 = vld [vmem:[%s3420_s3 + $0x34] sm:$0xf0] }
  0xdf   :  { %1111 = vmatmul.bf16.gmra.mxu1 %v2929_v6  ;;  %1209 = vmatmul.bf16.gmra.mxu3 %v2929_v6  ;;  %v430_v3 = vmul.f32 0.044715, %v398_v60  ;;  %1876 = vtanh.f32 %v495_v22  ;;  %v2999_v26 = vadd.f32 %v2499_v30, %v301_v50  ;;  %v264_v55 = vmul.f32 %v2544_v29, %v2479_v12  ;;  %v1794_v57 = vld [vmem:[%s3420_s3 + $0x134] sm:$0xf0] }
  0xe0   :  { %v369_v11 = vmul.f32 %v2992_v58, %v2992_v58  ;;  %v432_v23 = vmul.f32 0.044715, %v400_v27  ;;  %v300_v63 = vmul.f32 %v2539_v24, %v262_v33  ;;  %v3006_v28 = vpack.c.bf16 %v616_v38, %v614_v34 }
  0xe1   :  { %v1871_v15 = vpop.eup %1870  ;;  %v371_v48 = vmul.f32 %v2999_v26, %v2999_v26  ;;  %v302_v30 = vmul.f32 %v2539_v24, %v264_v55  ;;  %v3012_v14 = vpack.c.bf16 %v619_v40, %v617_v44  ;;  %v462_v36 = vadd.f32 %v430_v3, %v2938_v41 }
  0xe2   :  { %v401_v37 = vmul.f32 %v369_v11, %v2992_v58  ;;  %v1873_v13 = vpop.eup %1872  ;;  %v3016_v12 = vadd.f32 %v2541_v59, %v300_v63  ;;  %v464_v16 = vadd.f32 %v432_v23, %v2944_v54  ;;  %v554_v24 = vadd.f32 1.0, %v1871_v15 }
  0xe3   :  { %v3020_v21 = vadd.f32 %v2541_v59, %v302_v30  ;;  %v556_v19 = vadd.f32 1.0, %v1873_v13  ;;  %v403_v42 = vmul.f32 %v371_v48, %v2999_v26  ;;  %v1530_v43 = vor.u32 %v1760_v56, %v1527_v0  ;;  %v1511_v56 = vld [vmem:[%s3420_s3 + $0x18] sm:$0xf0] }
  0xe4   :  { %1067 = vmatmul.bf16.gmra.mxu0 %v2935_v2  ;;  %1165 = vmatmul.bf16.gmra.mxu2 %v2935_v2  ;;  %v433_v8 = vmul.f32 0.044715, %v401_v37  ;;  %v1875_v29 = vpop.eup %1874  ;;  %v494_v52 = vmul.f32 0.7978846, %v462_v36  ;;  %v1658_v4 = vor.u32 %v1792_v47, %v1655_v61  ;;  %v370_v18 = vmul.f32 %v3016_v12, %v3016_v12 }
  0xe5   :  { %v1877_v32 = vpop.eup %1876  ;;  %v557_v59 = vadd.f32 1.0, %v1875_v29  ;;  %v496_v60 = vmul.f32 0.7978846, %v464_v16  ;;  %1339 = vmatpush.bf16.msrb.mxu2 %v1530_v43  ;;  %v1526_v34 = vor.u32 %v1762_v45, %v1525_v20  ;;  %v372_v38 = vmul.f32 %v3020_v21, %v3020_v21  ;;  %v1639_v43 = vld [vmem:[%s3420_s3 + $0x118] sm:$0xf0] }
  0xe6   :  { %v559_v17 = vadd.f32 1.0, %v1877_v32  ;;  %v465_v51 = vadd.f32 %v433_v8, %v2992_v58  ;;  %v586_v53 = vmul.f32 0.5, %v554_v24  ;;  %v588_v27 = vmul.f32 0.5, %v556_v19  ;;  %1388 = vmatpush.bf16.msrb.mxu3 %v1658_v4  ;;  %v1756_v19 = vld [vmem:[%s3420_s3 + $0xc] sm:$0xf] }
  0xe7   :  { %v1654_v22 = vor.u32 %v1794_v57, %v1653_v9  ;;  %v435_v50 = vmul.f32 0.044715, %v403_v42  ;;  %v589_v33 = vmul.f32 0.5, %v557_v59  ;;  %1241 = vmatpush.bf16.msrb.mxu0 %v1526_v34  ;;  %1878 = vtanh.f32 %v494_v52  ;;  %v1758_v52 = vld [vmem:[%s3420_s3 + $0x14] sm:$0xf0] }
  0xe8   :  { %v591_v44 = vmul.f32 0.5, %v559_v17  ;;  %v497_v40 = vmul.f32 0.7978846, %v465_v51  ;;  %v402_v11 = vmul.f32 %v370_v18, %v3016_v12  ;;  %1880 = vtanh.f32 %v496_v60  ;;  %v1788_v17 = vld [vmem:[%s3420_s3 + $0x10c] sm:$0xf] }
  0xe9   :  { %1290 = vmatpush.bf16.msrb.mxu1 %v1654_v22  ;;  %v467_v3 = vadd.f32 %v435_v50, %v2999_v26  ;;  %v404_v55 = vmul.f32 %v372_v38, %v3020_v21  ;;  %v618_v23 = vmul.f32 %v586_v53, %v2865_v62  ;;  %v620_v63 = vmul.f32 %v588_v27, %v2869_v39  ;;  %v1509_v51 = vld [vmem:[%s3420_s3 + $0x8] sm:$0xf]  ;;  %v1790_v18 = vld [vmem:[%s3420_s3 + $0x114] sm:$0xf0] }
  0xea   :  { %1882 = vtanh.f32 %v497_v40  ;;  %v621_v48 = vmul.f32 %v589_v33, %v2922_v25  ;;  %v623_v37 = vmul.f32 %v591_v44, %v2925_v49  ;;  %v434_v30 = vmul.f32 0.044715, %v402_v11  ;;  %v1637_v45 = vld [vmem:[%s3420_s3 + $0x108] sm:$0xf] }
  0xeb   :  { %v499_v15 = vmul.f32 0.7978846, %v467_v3  ;;  %v436_v13 = vmul.f32 0.044715, %v404_v55  ;;  %v3063_v8 = vpack.c.bf16 %v620_v63, %v618_v23  ;;  %v1514_v59 = vor.u32 %v1756_v19, %v1511_v56 }
  0xec   :  { %v3065_v16 = vpack.c.bf16 %v623_v37, %v621_v48  ;;  %v466_v62 = vadd.f32 %v434_v30, %v3016_v12  ;;  %v1642_v61 = vor.u32 %v1788_v17, %v1639_v43  ;;  %v1510_v20 = vor.u32 %v1758_v52, %v1509_v51 }
  0xed   :  { %1884 = vtanh.f32 %v499_v15  ;;  %v1879_v36 = vpop.eup %1878  ;;  %v468_v39 = vadd.f32 %v436_v13, %v3020_v21  ;;  %1340 = vmatpush.bf16.msrb.mxu2 %v1514_v59  ;;  %v1638_v9 = vor.u32 %v1790_v18, %v1637_v45  ;;  %v3120_v15 = vld [vmem:[%s3424_s4] sm:$0xf] }
  0xee   :  { %v1881_v29 = vpop.eup %1880  ;;  %v558_v25 = vadd.f32 1.0, %v1879_v36  ;;  %v498_v47 = vmul.f32 0.7978846, %v466_v62  ;;  %1389 = vmatpush.bf16.msrb.mxu3 %v1642_v61  ;;  %1242 = vmatpush.bf16.msrb.mxu0 %v1510_v20  ;;  %v3127_v30 = vperm.slane %v3120_v15, 1 }
  0xef   :  { %1116 = vmatmul.bf16.gmra.mxu1 %v3006_v28  ;;  %1214 = vmatmul.bf16.gmra.mxu3 %v3006_v28  ;;  %v560_v49 = vadd.f32 1.0, %v1881_v29  ;;  %v500_v4 = vmul.f32 0.7978846, %v468_v39 }
  0xf0   :  { %v1883_v32 = vpop.eup %1882  ;;  %v590_v60 = vmul.f32 0.5, %v558_v25  ;;  %1886 = vtanh.f32 %v498_v47  ;;  %1291 = vmatpush.bf16.msrb.mxu1 %v1638_v9 }
  0xf1   :  { %v561_v0 = vadd.f32 1.0, %v1883_v32  ;;  %v592_v34 = vmul.f32 0.5, %v560_v49  ;;  %1888 = vtanh.f32 %v500_v4 }
  0xf2   :  { %v622_v53 = vmul.f32 %v590_v60, %v2938_v41 }
  0xf3   :  { %v1885_v24 = vpop.eup %1884  ;;  %v593_v57 = vmul.f32 0.5, %v561_v0  ;;  %v624_v27 = vmul.f32 %v592_v34, %v2944_v54 }
  0xf4   :  { %1072 = vmatmul.bf16.gmra.mxu0 %v3012_v14  ;;  %1170 = vmatmul.bf16.gmra.mxu2 %v3012_v14  ;;  %v563_v42 = vadd.f32 1.0, %v1885_v24 }
  0xf5   :  { %v625_v22 = vmul.f32 %v593_v57, %v2992_v58  ;;  %v3101_v44 = vpack.c.bf16 %v624_v27, %v622_v53 }
  0xf6   :  { %v595_v38 = vmul.f32 0.5, %v563_v42  ;;  %v1887_v33 = vpop.eup %1886 }
  0xf7   :  { %v1889_v40 = vpop.eup %1888  ;;  %v562_v11 = vadd.f32 1.0, %v1887_v33 }
  0xf8   :  { %v627_v50 = vmul.f32 %v595_v38, %v2999_v26  ;;  %v564_v55 = vadd.f32 1.0, %v1889_v40 }
  0xf9   :  { %v594_v41 = vmul.f32 0.5, %v562_v11 }
  0xfa   :  { %v3103_v3 = vpack.c.bf16 %v627_v50, %v625_v22  ;;  %v596_v54 = vmul.f32 0.5, %v564_v55 }
  0xfb   :  { %v626_v58 = vmul.f32 %v594_v41, %v3016_v12  ;;  %v3123_v12 = vperm.slane %v3120_v15, 0 }
  0xfc   :  { %v628_v26 = vmul.f32 %v596_v54, %v3020_v21 }
  0xfe   :  { %v3111_v23 = vpack.c.bf16 %v628_v26, %v626_v58 }
  0xff   :  { %1121 = vmatmul.bf16.gmra.mxu1 %v3063_v8  ;;  %1219 = vmatmul.bf16.gmra.mxu3 %v3063_v8 }
 0x104   :  { %1077 = vmatmul.bf16.gmra.mxu0 %v3065_v16  ;;  %1175 = vmatmul.bf16.gmra.mxu2 %v3065_v16 }
 0x10f   :  { %1126 = vmatmul.bf16.gmra.mxu1 %v3101_v44  ;;  %1224 = vmatmul.bf16.gmra.mxu3 %v3101_v44 }
 0x114   :  { %1082 = vmatmul.bf16.gmra.mxu0 %v3103_v3  ;;  %1180 = vmatmul.bf16.gmra.mxu2 %v3103_v3 }
 0x11f   :  { %1131 = vmatmul.bf16.gmra.mxu1 %v3111_v23  ;;  %1229 = vmatmul.bf16.gmra.mxu3 %v3111_v23 }
 0x121   :  { %v1048_v63 = vpop.f32.mrf.mxu0 }
 0x122   :  { %v1049_v37 = vadd.f32 %v1048_v63, %v3123_v12 }
 0x124   :  { %1243 = vmatmul.bf16.vlgmr.msrb.gmra.mxu0 %v2633_v31  ;;  %1341 = vmatmul.bf16.vlgmr.msrb.gmra.mxu2 %v2633_v31 }
 0x127   :  { %v1146_v48 = vpop.f32.mrf.mxu2 }
 0x128   :  { %v1147_v31 = vadd.f32 %v1146_v48, %v3127_v30 }
 0x129   :  { %v1050_v21 = vpop.f32.mrf.mxu0 }
 0x12a   :  { %v1051_v62 = vadd.f32 %v1050_v21, %v3123_v12 }
 0x12c   :  { %v1097_v36 = vpop.f32.mrf.mxu1 }
 0x12d   :  { %v1098_v29 = vadd.f32 %v1097_v36, %v1049_v37 }
 0x12f   :  { %v1148_v13 = vpop.f32.mrf.mxu2  ;;  %1431 = vst [vmem:[%s3425_s5] sm:$0xff] %v1098_v29  ;;  %1292 = vmatmul.bf16.vlgmr.msrb.gmra.mxu1 %v2708_v10  ;;  %1390 = vmatmul.bf16.vlgmr.msrb.gmra.mxu3 %v2708_v10 }
 0x130   :  { %v1149_v10 = vadd.f32 %v1148_v13, %v3127_v30 }
 0x131   :  { %v1053_v32 = vpop.f32.mrf.mxu0 }
 0x132   :  { %v1195_v39 = vpop.f32.mrf.mxu3 }
 0x133   :  { %v1196_v24 = vadd.f32 %v1195_v39, %v1147_v31 }
 0x134   :  { %1248 = vmatmul.bf16.gmra.mxu0 %v2703_v1  ;;  %1346 = vmatmul.bf16.gmra.mxu2 %v2703_v1  ;;  %v1099_v49 = vpop.f32.mrf.mxu1  ;;  %v1054_v1 = vadd.f32 %v1053_v32, %v3123_v12 }
 0x135   :  { %1432 = vst [vmem:[%s3425_s5 + $0x8] sm:$0xff] %v1196_v24  ;;  %v1100_v19 = vadd.f32 %v1099_v49, %v1051_v62 }
 0x137   :  { %v1151_v25 = vpop.f32.mrf.mxu2  ;;  %1435 = vst [vmem:[%s3425_s5 + $0x20] sm:$0xff] %v1100_v19 }
 0x138   :  { %v1152_v61 = vadd.f32 %v1151_v25, %v3127_v30 }
 0x139   :  { %v1055_v56 = vpop.f32.mrf.mxu0 }
 0x13a   :  { %v1197_v0 = vpop.f32.mrf.mxu3  ;;  %v1056_v51 = vadd.f32 %v1055_v56, %v3123_v12 }
 0x13b   :  { %v1198_v42 = vadd.f32 %v1197_v0, %v1149_v10 }
 0x13c   :  { %v1102_v17 = vpop.f32.mrf.mxu1 }
 0x13d   :  { %1436 = vst [vmem:[%s3425_s5 + $0x28] sm:$0xff] %v1198_v42  ;;  %v1103_v43 = vadd.f32 %v1102_v17, %v1054_v1 }
 0x13f   :  { %v1153_v59 = vpop.f32.mrf.mxu2  ;;  %1439 = vst [vmem:[%s3425_s5 + $0x40] sm:$0xff] %v1103_v43  ;;  %1297 = vmatmul.bf16.gmra.mxu1 %v2777_v5  ;;  %1395 = vmatmul.bf16.gmra.mxu3 %v2777_v5 }
 0x140   :  { %v1154_v5 = vadd.f32 %v1153_v59, %v3127_v30 }
 0x141   :  { %v1058_v47 = vpop.f32.mrf.mxu0 }
 0x142   :  { %v1200_v52 = vpop.f32.mrf.mxu3 }
 0x143   :  { %v1201_v4 = vadd.f32 %v1200_v52, %v1152_v61 }
 0x144   :  { %1253 = vmatmul.bf16.gmra.mxu0 %v2784_v46  ;;  %1351 = vmatmul.bf16.gmra.mxu2 %v2784_v46  ;;  %v1104_v45 = vpop.f32.mrf.mxu1  ;;  %v1059_v46 = vadd.f32 %v1058_v47, %v3123_v12 }
 0x145   :  { %1440 = vst [vmem:[%s3425_s5 + $0x48] sm:$0xff] %v1201_v4  ;;  %v1105_v18 = vadd.f32 %v1104_v45, %v1056_v51 }
 0x147   :  { %v1156_v20 = vpop.f32.mrf.mxu2  ;;  %1443 = vst [vmem:[%s3425_s5 + $0x60] sm:$0xff] %v1105_v18 }
 0x148   :  { %v1157_v22 = vadd.f32 %v1156_v20, %v3127_v30 }
 0x149   :  { %v1060_v60 = vpop.f32.mrf.mxu0 }
 0x14a   :  { %v1202_v34 = vpop.f32.mrf.mxu3  ;;  %v1061_v50 = vadd.f32 %v1060_v60, %v3123_v12 }
 0x14b   :  { %v1203_v9 = vadd.f32 %v1202_v34, %v1154_v5 }
 0x14c   :  { %v1107_v38 = vpop.f32.mrf.mxu1 }
 0x14d   :  { %1444 = vst [vmem:[%s3425_s5 + $0x68] sm:$0xff] %v1203_v9  ;;  %v1108_v53 = vadd.f32 %v1107_v38, %v1059_v46 }
 0x14f   :  { %v1158_v57 = vpop.f32.mrf.mxu2  ;;  %1447 = vst [vmem:[%s3425_s5 + $0x80] sm:$0xff] %v1108_v53  ;;  %1302 = vmatmul.bf16.gmra.mxu1 %v2853_v7  ;;  %1400 = vmatmul.bf16.gmra.mxu3 %v2853_v7 }
 0x150   :  { %v1159_v7 = vadd.f32 %v1158_v57, %v3127_v30 }
 0x151   :  { %v1063_v27 = vpop.f32.mrf.mxu0 }
 0x152   :  { %v1205_v33 = vpop.f32.mrf.mxu3 }
 0x153   :  { %v1206_v40 = vadd.f32 %v1205_v33, %v1157_v22 }
 0x154   :  { %1258 = vmatmul.bf16.gmra.mxu0 %v2861_v35  ;;  %1356 = vmatmul.bf16.gmra.mxu2 %v2861_v35  ;;  %v1109_v55 = vpop.f32.mrf.mxu1  ;;  %v1064_v35 = vadd.f32 %v1063_v27, %v3123_v12 }
 0x155   :  { %1448 = vst [vmem:[%s3425_s5 + $0x88] sm:$0xff] %v1206_v40  ;;  %v1110_v41 = vadd.f32 %v1109_v55, %v1061_v50 }
 0x157   :  { %v1161_v11 = vpop.f32.mrf.mxu2  ;;  %1451 = vst [vmem:[%s3425_s5 + $0xa0] sm:$0xff] %v1110_v41 }
 0x158   :  { %v1162_v13 = vadd.f32 %v1161_v11, %v3127_v30 }
 0x159   :  { %v1065_v54 = vpop.f32.mrf.mxu0 }
 0x15a   :  { %v1207_v58 = vpop.f32.mrf.mxu3  ;;  %v1066_v36 = vadd.f32 %v1065_v54, %v3123_v12 }
 0x15b   :  { %v1208_v26 = vadd.f32 %v1207_v58, %v1159_v7 }
 0x15c   :  { %v1112_v48 = vpop.f32.mrf.mxu1 }
 0x15d   :  { %1452 = vst [vmem:[%s3425_s5 + $0xa8] sm:$0xff] %v1208_v26  ;;  %v1113_v21 = vadd.f32 %v1112_v48, %v1064_v35 }
 0x15f   :  { %v1163_v63 = vpop.f32.mrf.mxu2  ;;  %1455 = vst [vmem:[%s3425_s5 + $0xc0] sm:$0xff] %v1113_v21  ;;  %1307 = vmatmul.bf16.gmra.mxu1 %v2929_v6  ;;  %1405 = vmatmul.bf16.gmra.mxu3 %v2929_v6 }
 0x160   :  { %v1164_v6 = vadd.f32 %v1163_v63, %v3127_v30 }
 0x161   :  { %v1068_v37 = vpop.f32.mrf.mxu0 }
 0x162   :  { %v1210_v29 = vpop.f32.mrf.mxu3 }
 0x163   :  { %v1211_v32 = vadd.f32 %v1210_v29, %v1162_v13 }
 0x164   :  { %1263 = vmatmul.bf16.gmra.mxu0 %v2935_v2  ;;  %1361 = vmatmul.bf16.gmra.mxu2 %v2935_v2  ;;  %v1114_v62 = vpop.f32.mrf.mxu1  ;;  %v1069_v2 = vadd.f32 %v1068_v37, %v3123_v12 }
 0x165   :  { %1456 = vst [vmem:[%s3425_s5 + $0xc8] sm:$0xff] %v1211_v32  ;;  %v1115_v39 = vadd.f32 %v1114_v62, %v1066_v36 }
 0x167   :  { %v1166_v31 = vpop.f32.mrf.mxu2  ;;  %1459 = vst [vmem:[%s3425_s5 + $0xe0] sm:$0xff] %v1115_v39 }
 0x168   :  { %v1167_v0 = vadd.f32 %v1166_v31, %v3127_v30 }
 0x169   :  { %v1070_v24 = vpop.f32.mrf.mxu0 }
 0x16a   :  { %v1212_v25 = vpop.f32.mrf.mxu3  ;;  %v1071_v42 = vadd.f32 %v1070_v24, %v3123_v12 }
 0x16b   :  { %v1213_v49 = vadd.f32 %v1212_v25, %v1164_v6 }
 0x16c   :  { %v1117_v56 = vpop.f32.mrf.mxu1 }
 0x16d   :  { %1460 = vst [vmem:[%s3425_s5 + $0xe8] sm:$0xff] %v1213_v49  ;;  %v1118_v10 = vadd.f32 %v1117_v56, %v1069_v2  ;;  %v3280_v49 = vperm.slane %v3120_v15, 2 }
 0x16f   :  { %v1168_v19 = vpop.f32.mrf.mxu2  ;;  %1463 = vst [vmem:[%s3425_s5 + $0x100] sm:$0xff] %v1118_v10  ;;  %1312 = vmatmul.bf16.gmra.mxu1 %v3006_v28  ;;  %1410 = vmatmul.bf16.gmra.mxu3 %v3006_v28 }
 0x170   :  { %v1169_v28 = vadd.f32 %v1168_v19, %v3127_v30 }
 0x171   :  { %v1073_v1 = vpop.f32.mrf.mxu0 }
 0x172   :  { %v1215_v59 = vpop.f32.mrf.mxu3 }
 0x173   :  { %v1216_v17 = vadd.f32 %v1215_v59, %v1167_v0 }
 0x174   :  { %1268 = vmatmul.bf16.gmra.mxu0 %v3012_v14  ;;  %1366 = vmatmul.bf16.gmra.mxu2 %v3012_v14  ;;  %v1119_v47 = vpop.f32.mrf.mxu1  ;;  %v1074_v14 = vadd.f32 %v1073_v1, %v3123_v12  ;;  %v3288_v1 = vperm.slane %v3120_v15, 3 }
 0x175   :  { %1464 = vst [vmem:[%s3425_s5 + $0x108] sm:$0xff] %v1216_v17  ;;  %v1120_v61 = vadd.f32 %v1119_v47, %v1071_v42 }
 0x177   :  { %v1171_v43 = vpop.f32.mrf.mxu2  ;;  %1467 = vst [vmem:[%s3425_s5 + $0x120] sm:$0xff] %v1120_v61 }
 0x178   :  { %v1172_v5 = vadd.f32 %v1171_v43, %v3127_v30 }
 0x179   :  { %v1075_v51 = vpop.f32.mrf.mxu0 }
 0x17a   :  { %v1217_v52 = vpop.f32.mrf.mxu3  ;;  %v1076_v46 = vadd.f32 %v1075_v51, %v3123_v12 }
 0x17b   :  { %v1218_v4 = vadd.f32 %v1217_v52, %v1169_v28 }
 0x17c   :  { %v1122_v45 = vpop.f32.mrf.mxu1 }
 0x17d   :  { %1468 = vst [vmem:[%s3425_s5 + $0x128] sm:$0xff] %v1218_v4  ;;  %v1123_v18 = vadd.f32 %v1122_v45, %v1074_v14 }
 0x17f   :  { %v1173_v20 = vpop.f32.mrf.mxu2  ;;  %1471 = vst [vmem:[%s3425_s5 + $0x140] sm:$0xff] %v1123_v18  ;;  %1317 = vmatmul.bf16.gmra.mxu1 %v3063_v8  ;;  %1415 = vmatmul.bf16.gmra.mxu3 %v3063_v8 }
 0x180   :  { %v1174_v8 = vadd.f32 %v1173_v20, %v3127_v30 }
 0x181   :  { %v1078_v60 = vpop.f32.mrf.mxu0 }
 0x182   :  { %v1220_v34 = vpop.f32.mrf.mxu3 }
 0x183   :  { %v1221_v9 = vadd.f32 %v1220_v34, %v1172_v5 }
 0x184   :  { %1273 = vmatmul.bf16.gmra.mxu0 %v3065_v16  ;;  %1371 = vmatmul.bf16.gmra.mxu2 %v3065_v16  ;;  %v1124_v38 = vpop.f32.mrf.mxu1  ;;  %v1079_v16 = vadd.f32 %v1078_v60, %v3123_v12 }
 0x185   :  { %1472 = vst [vmem:[%s3425_s5 + $0x148] sm:$0xff] %v1221_v9  ;;  %v1125_v53 = vadd.f32 %v1124_v38, %v1076_v46 }
 0x187   :  { %v1176_v57 = vpop.f32.mrf.mxu2  ;;  %1475 = vst [vmem:[%s3425_s5 + $0x160] sm:$0xff] %v1125_v53 }
 0x188   :  { %v1177_v41 = vadd.f32 %v1176_v57, %v3127_v30 }
 0x189   :  { %v1080_v27 = vpop.f32.mrf.mxu0 }
 0x18a   :  { %v1222_v22 = vpop.f32.mrf.mxu3  ;;  %v1081_v54 = vadd.f32 %v1080_v27, %v3123_v12 }
 0x18b   :  { %v1223_v50 = vadd.f32 %v1222_v22, %v1174_v8 }
 0x18c   :  { %v1127_v40 = vpop.f32.mrf.mxu1 }
 0x18d   :  { %1476 = vst [vmem:[%s3425_s5 + $0x168] sm:$0xff] %v1223_v50  ;;  %v1128_v11 = vadd.f32 %v1127_v40, %v1079_v16 }
 0x18f   :  { %v1178_v33 = vpop.f32.mrf.mxu2  ;;  %1479 = vst [vmem:[%s3425_s5 + $0x180] sm:$0xff] %v1128_v11  ;;  %1322 = vmatmul.bf16.gmra.mxu1 %v3101_v44  ;;  %1420 = vmatmul.bf16.gmra.mxu3 %v3101_v44 }
 0x190   :  { %v1179_v44 = vadd.f32 %v1178_v33, %v3127_v30 }
 0x191   :  { %v1083_v55 = vpop.f32.mrf.mxu0 }
 0x192   :  { %v1225_v7 = vpop.f32.mrf.mxu3 }
 0x193   :  { %v1226_v35 = vadd.f32 %v1225_v7, %v1177_v41 }
 0x194   :  { %1278 = vmatmul.bf16.gmra.mxu0 %v3103_v3  ;;  %1376 = vmatmul.bf16.gmra.mxu2 %v3103_v3  ;;  %v1129_v26 = vpop.f32.mrf.mxu1  ;;  %v1084_v3 = vadd.f32 %v1083_v55, %v3123_v12 }
 0x195   :  { %1480 = vst [vmem:[%s3425_s5 + $0x188] sm:$0xff] %v1226_v35  ;;  %v1130_v63 = vadd.f32 %v1129_v26, %v1081_v54 }
 0x197   :  { %v1181_v58 = vpop.f32.mrf.mxu2  ;;  %1483 = vst [vmem:[%s3425_s5 + $0x1a0] sm:$0xff] %v1130_v63 }
 0x198   :  { %v1182_v31 = vadd.f32 %v1181_v58, %v3127_v30 }
 0x199   :  { %v1085_v48 = vpop.f32.mrf.mxu0 }
 0x19a   :  { %v1227_v21 = vpop.f32.mrf.mxu3  ;;  %v1086_v62 = vadd.f32 %v1085_v48, %v3123_v12 }
 0x19b   :  { %v1228_v37 = vadd.f32 %v1227_v21, %v1179_v44 }
 0x19c   :  { %v1132_v36 = vpop.f32.mrf.mxu1 }
 0x19d   :  { %1484 = vst [vmem:[%s3425_s5 + $0x1a8] sm:$0xff] %v1228_v37  ;;  %v1133_v29 = vadd.f32 %v1132_v36, %v1084_v3 }
 0x19f   :  { %v1183_v13 = vpop.f32.mrf.mxu2  ;;  %1487 = vst [vmem:[%s3425_s5 + $0x1c0] sm:$0xff] %v1133_v29  ;;  %1327 = vmatmul.bf16.gmra.mxu1 %v3111_v23  ;;  %1425 = vmatmul.bf16.gmra.mxu3 %v3111_v23 }
 0x1a0   :  { %v1184_v23 = vadd.f32 %v1183_v13, %v3127_v30 }
 0x1a1   :  { %v1244_v32 = vpop.f32.mrf.mxu0 }
 0x1a2   :  { %v1230_v39 = vpop.f32.mrf.mxu3  ;;  %v1245_v12 = vadd.f32 %v1244_v32, %v3280_v49 }
 0x1a3   :  { %v1231_v24 = vadd.f32 %v1230_v39, %v1182_v31 }
 0x1a4   :  { %v1134_v2 = vpop.f32.mrf.mxu1 }
 0x1a5   :  { %1488 = vst [vmem:[%s3425_s5 + $0x1c8] sm:$0xff] %v1231_v24  ;;  %v1135_v25 = vadd.f32 %v1134_v2, %v1086_v62 }
 0x1a7   :  { %v1342_v6 = vpop.f32.mrf.mxu2  ;;  %1491 = vst [vmem:[%s3425_s5 + $0x1e0] sm:$0xff] %v1135_v25 }
 0x1a8   :  { %v1343_v30 = vadd.f32 %v1342_v6, %v3288_v1 }
 0x1a9   :  { %v1246_v19 = vpop.f32.mrf.mxu0 }
 0x1aa   :  { %v1232_v56 = vpop.f32.mrf.mxu3  ;;  %v1247_v43 = vadd.f32 %v1246_v19, %v3280_v49 }
 0x1ab   :  { %v1233_v10 = vadd.f32 %v1232_v56, %v1184_v23 }
 0x1ac   :  { %v1293_v42 = vpop.f32.mrf.mxu1 }
 0x1ad   :  { %1492 = vst [vmem:[%s3425_s5 + $0x1e8] sm:$0xff] %v1233_v10  ;;  %v1294_v59 = vadd.f32 %v1293_v42, %v1245_v12 }
 0x1af   :  { %v1344_v0 = vpop.f32.mrf.mxu2  ;;  %1433 = vst [vmem:[%s3425_s5 + $0x10] sm:$0xff] %v1294_v59 }
 0x1b0   :  { %v1345_v52 = vadd.f32 %v1344_v0, %v3288_v1 }
 0x1b1   :  { %v1249_v17 = vpop.f32.mrf.mxu0 }
 0x1b2   :  { %v1391_v47 = vpop.f32.mrf.mxu3  ;;  %v1250_v4 = vadd.f32 %v1249_v17, %v3280_v49 }
 0x1b3   :  { %v1392_v61 = vadd.f32 %v1391_v47, %v1343_v30 }
 0x1b4   :  { %v1295_v51 = vpop.f32.mrf.mxu1 }
 0x1b5   :  { %1434 = vst [vmem:[%s3425_s5 + $0x18] sm:$0xff] %v1392_v61  ;;  %v1296_v28 = vadd.f32 %v1295_v51, %v1247_v43 }
 0x1b7   :  { %v1347_v15 = vpop.f32.mrf.mxu2  ;;  %1437 = vst [vmem:[%s3425_s5 + $0x30] sm:$0xff] %v1296_v28 }
 0x1b8   :  { %v1348_v34 = vadd.f32 %v1347_v15, %v3288_v1 }
 0x1b9   :  { %v1251_v14 = vpop.f32.mrf.mxu0 }
 0x1ba   :  { %v1393_v20 = vpop.f32.mrf.mxu3  ;;  %v1252_v9 = vadd.f32 %v1251_v14, %v3280_v49 }
 0x1bb   :  { %v1394_v45 = vadd.f32 %v1393_v20, %v1345_v52 }
 0x1bc   :  { %v1298_v60 = vpop.f32.mrf.mxu1 }
 0x1bd   :  { %1438 = vst [vmem:[%s3425_s5 + $0x38] sm:$0xff] %v1394_v45  ;;  %v1299_v5 = vadd.f32 %v1298_v60, %v1250_v4 }
 0x1bf   :  { %v1349_v18 = vpop.f32.mrf.mxu2  ;;  %1441 = vst [vmem:[%s3425_s5 + $0x50] sm:$0xff] %v1299_v5 }
 0x1c0   :  { %v1350_v22 = vadd.f32 %v1349_v18, %v3288_v1 }
 0x1c1   :  { %v1254_v46 = vpop.f32.mrf.mxu0 }
 0x1c2   :  { %v1396_v57 = vpop.f32.mrf.mxu3  ;;  %v1255_v50 = vadd.f32 %v1254_v46, %v3280_v49 }
 0x1c3   :  { %v1397_v38 = vadd.f32 %v1396_v57, %v1348_v34 }
 0x1c4   :  { %v1300_v27 = vpop.f32.mrf.mxu1 }
 0x1c5   :  { %1442 = vst [vmem:[%s3425_s5 + $0x58] sm:$0xff] %v1397_v38  ;;  %v1301_v8 = vadd.f32 %v1300_v27, %v1252_v9 }
 0x1c7   :  { %v1352_v53 = vpop.f32.mrf.mxu2  ;;  %1445 = vst [vmem:[%s3425_s5 + $0x70] sm:$0xff] %v1301_v8 }
 0x1c8   :  { %v1353_v7 = vadd.f32 %v1352_v53, %v3288_v1 }
 0x1c9   :  { %v1256_v16 = vpop.f32.mrf.mxu0 }
 0x1ca   :  { %v1398_v33 = vpop.f32.mrf.mxu3  ;;  %v1257_v35 = vadd.f32 %v1256_v16, %v3280_v49 }
 0x1cb   :  { %v1399_v40 = vadd.f32 %v1398_v33, %v1350_v22 }
 0x1cc   :  { %v1303_v55 = vpop.f32.mrf.mxu1 }
 0x1cd   :  { %1446 = vst [vmem:[%s3425_s5 + $0x78] sm:$0xff] %v1399_v40  ;;  %v1304_v41 = vadd.f32 %v1303_v55, %v1255_v50 }
 0x1cf   :  { %v1354_v11 = vpop.f32.mrf.mxu2  ;;  %1449 = vst [vmem:[%s3425_s5 + $0x90] sm:$0xff] %v1304_v41 }
 0x1d0   :  { %v1355_v21 = vadd.f32 %v1354_v11, %v3288_v1 }
 0x1d1   :  { %v1259_v54 = vpop.f32.mrf.mxu0 }
 0x1d2   :  { %v1401_v58 = vpop.f32.mrf.mxu3  ;;  %v1260_v37 = vadd.f32 %v1259_v54, %v3280_v49 }
 0x1d3   :  { %v1402_v26 = vadd.f32 %v1401_v58, %v1353_v7 }
 0x1d4   :  { %v1305_v48 = vpop.f32.mrf.mxu1 }
 0x1d5   :  { %1450 = vst [vmem:[%s3425_s5 + $0x98] sm:$0xff] %v1402_v26  ;;  %v1306_v44 = vadd.f32 %v1305_v48, %v1257_v35 }
 0x1d7   :  { %v1357_v63 = vpop.f32.mrf.mxu2  ;;  %1453 = vst [vmem:[%s3425_s5 + $0xb0] sm:$0xff] %v1306_v44 }
 0x1d8   :  { %v1358_v39 = vadd.f32 %v1357_v63, %v3288_v1 }
 0x1d9   :  { %v1261_v3 = vpop.f32.mrf.mxu0 }
 0x1da   :  { %v1403_v13 = vpop.f32.mrf.mxu3  ;;  %v1262_v24 = vadd.f32 %v1261_v3, %v3280_v49 }
 0x1db   :  { %v1404_v36 = vadd.f32 %v1403_v13, %v1355_v21 }
 0x1dc   :  { %v1308_v32 = vpop.f32.mrf.mxu1 }
 0x1dd   :  { %1454 = vst [vmem:[%s3425_s5 + $0xb8] sm:$0xff] %v1404_v36  ;;  %v1309_v31 = vadd.f32 %v1308_v32, %v1260_v37 }
 0x1df   :  { %v1359_v29 = vpop.f32.mrf.mxu2  ;;  %1457 = vst [vmem:[%s3425_s5 + $0xd0] sm:$0xff] %v1309_v31 }
 0x1e0   :  { %v1360_v56 = vadd.f32 %v1359_v29, %v3288_v1 }
 0x1e1   :  { %v1264_v62 = vpop.f32.mrf.mxu0 }
 0x1e2   :  { %v1406_v6 = vpop.f32.mrf.mxu3  ;;  %v1265_v10 = vadd.f32 %v1264_v62, %v3280_v49 }
 0x1e3   :  { %v1407_v2 = vadd.f32 %v1406_v6, %v1358_v39 }
 0x1e4   :  { %v1310_v19 = vpop.f32.mrf.mxu1 }
 0x1e5   :  { %1458 = vst [vmem:[%s3425_s5 + $0xd8] sm:$0xff] %v1407_v2  ;;  %v1311_v23 = vadd.f32 %v1310_v19, %v1262_v24 }
 0x1e7   :  { %v1362_v25 = vpop.f32.mrf.mxu2  ;;  %1461 = vst [vmem:[%s3425_s5 + $0xf0] sm:$0xff] %v1311_v23 }
 0x1e8   :  { %v1363_v47 = vadd.f32 %v1362_v25, %v3288_v1 }
 0x1e9   :  { %v1266_v12 = vpop.f32.mrf.mxu0 }
 0x1ea   :  { %v1408_v0 = vpop.f32.mrf.mxu3  ;;  %v1267_v61 = vadd.f32 %v1266_v12, %v3280_v49 }
 0x1eb   :  { %v1409_v42 = vadd.f32 %v1408_v0, %v1360_v56 }
 0x1ec   :  { %v1313_v17 = vpop.f32.mrf.mxu1 }
 0x1ed   :  { %1462 = vst [vmem:[%s3425_s5 + $0xf8] sm:$0xff] %v1409_v42  ;;  %v1314_v30 = vadd.f32 %v1313_v17, %v1265_v10 }
 0x1ef   :  { %v1364_v59 = vpop.f32.mrf.mxu2  ;;  %1465 = vst [vmem:[%s3425_s5 + $0x110] sm:$0xff] %v1314_v30 }
 0x1f0   :  { %v1365_v20 = vadd.f32 %v1364_v59, %v3288_v1 }
 0x1f1   :  { %v1269_v43 = vpop.f32.mrf.mxu0 }
 0x1f2   :  { %v1411_v15 = vpop.f32.mrf.mxu3  ;;  %v1270_v45 = vadd.f32 %v1269_v43, %v3280_v49 }
 0x1f3   :  { %v1412_v51 = vadd.f32 %v1411_v15, %v1363_v47 }
 0x1f4   :  { %v1315_v14 = vpop.f32.mrf.mxu1 }
 0x1f5   :  { %1466 = vst [vmem:[%s3425_s5 + $0x118] sm:$0xff] %v1412_v51  ;;  %v1316_v52 = vadd.f32 %v1315_v14, %v1267_v61 }
 0x1f7   :  { %v1367_v28 = vpop.f32.mrf.mxu2  ;;  %1469 = vst [vmem:[%s3425_s5 + $0x130] sm:$0xff] %v1316_v52 }
 0x1f8   :  { %v1368_v9 = vadd.f32 %v1367_v28, %v3288_v1 }
 0x1f9   :  { %v1271_v4 = vpop.f32.mrf.mxu0 }
 0x1fa   :  { %v1413_v18 = vpop.f32.mrf.mxu3  ;;  %v1272_v38 = vadd.f32 %v1271_v4, %v3280_v49 }
 0x1fb   :  { %v1414_v60 = vadd.f32 %v1413_v18, %v1365_v20 }
 0x1fc   :  { %v1318_v5 = vpop.f32.mrf.mxu1 }
 0x1fd   :  { %1470 = vst [vmem:[%s3425_s5 + $0x138] sm:$0xff] %v1414_v60  ;;  %v1319_v34 = vadd.f32 %v1318_v5, %v1270_v45 }
 0x1ff   :  { %v1369_v46 = vpop.f32.mrf.mxu2  ;;  %1473 = vst [vmem:[%s3425_s5 + $0x150] sm:$0xff] %v1319_v34 }
 0x200   :  { %v1370_v50 = vadd.f32 %v1369_v46, %v3288_v1 }
 0x201   :  { %v1274_v57 = vpop.f32.mrf.mxu0 }
 0x202   :  { %v1416_v53 = vpop.f32.mrf.mxu3  ;;  %v1275_v33 = vadd.f32 %v1274_v57, %v3280_v49 }
 0x203   :  { %v1417_v27 = vadd.f32 %v1416_v53, %v1368_v9 }
 0x204   :  { %v1320_v8 = vpop.f32.mrf.mxu1 }
 0x205   :  { %1474 = vst [vmem:[%s3425_s5 + $0x158] sm:$0xff] %v1417_v27  ;;  %v1321_v16 = vadd.f32 %v1320_v8, %v1272_v38 }
 0x207   :  { %v1372_v22 = vpop.f32.mrf.mxu2  ;;  %1477 = vst [vmem:[%s3425_s5 + $0x170] sm:$0xff] %v1321_v16 }
 0x208   :  { %v1373_v7 = vadd.f32 %v1372_v22, %v3288_v1 }
 0x209   :  { %v1276_v11 = vpop.f32.mrf.mxu0 }
 0x20a   :  { %v1418_v40 = vpop.f32.mrf.mxu3  ;;  %v1277_v58 = vadd.f32 %v1276_v11, %v3280_v49 }
 0x20b   :  { %v1419_v55 = vadd.f32 %v1418_v40, %v1370_v50 }
 0x20c   :  { %v1323_v41 = vpop.f32.mrf.mxu1 }
 0x20d   :  { %1478 = vst [vmem:[%s3425_s5 + $0x178] sm:$0xff] %v1419_v55  ;;  %v1324_v54 = vadd.f32 %v1323_v41, %v1275_v33 }
 0x20f   :  { %1481 = vst [vmem:[%s3425_s5 + $0x190] sm:$0xff] %v1324_v54  ;;  %v1374_v35 = vpop.f32.mrf.mxu2 }
 0x210   :  { %v1375_v21 = vadd.f32 %v1374_v35, %v3288_v1 }
 0x211   :  { %v1279_v44 = vpop.f32.mrf.mxu0 }
 0x212   :  { %v1421_v26 = vpop.f32.mrf.mxu3  ;;  %v1280_v37 = vadd.f32 %v1279_v44, %v3280_v49 }
 0x213   :  { %v1422_v63 = vadd.f32 %v1421_v26, %v1373_v7 }
 0x214   :  { %v1325_v48 = vpop.f32.mrf.mxu1 }
 0x215   :  { %1482 = vst [vmem:[%s3425_s5 + $0x198] sm:$0xff] %v1422_v63  ;;  %v1326_v3 = vadd.f32 %v1325_v48, %v1277_v58 }
 0x217   :  { %1485 = vst [vmem:[%s3425_s5 + $0x1b0] sm:$0xff] %v1326_v3  ;;  %v1377_v36 = vpop.f32.mrf.mxu2 }
 0x218   :  { %v1378_v39 = vadd.f32 %v1377_v36, %v3288_v1 }
 0x219   :  { %v1281_v62 = vpop.f32.mrf.mxu0 }
 0x21a   :  { %v1423_v13 = vpop.f32.mrf.mxu3  ;;  %v1282_v24 = vadd.f32 %v1281_v62, %v3280_v49 }
 0x21b   :  { %v1424_v29 = vadd.f32 %v1423_v13, %v1375_v21 }
 0x21c   :  { %v1328_v32 = vpop.f32.mrf.mxu1 }
 0x21d   :  { %1486 = vst [vmem:[%s3425_s5 + $0x1b8] sm:$0xff] %v1424_v29  ;;  %v1329_v31 = vadd.f32 %v1328_v32, %v1280_v37 }
 0x21f   :  { %1489 = vst [vmem:[%s3425_s5 + $0x1d0] sm:$0xff] %v1329_v31  ;;  %v1379_v19 = vpop.f32.mrf.mxu2 }
 0x220   :  { %v1380_v12 = vadd.f32 %v1379_v19, %v3288_v1 }
 0x222   :  { %v1426_v6 = vpop.f32.mrf.mxu3 }
 0x223   :  { %v1427_v2 = vadd.f32 %v1426_v6, %v1378_v39 }
 0x224   :  { %v1330_v25 = vpop.f32.mrf.mxu1 }
 0x225   :  { %1490 = vst [vmem:[%s3425_s5 + $0x1d8] sm:$0xff] %v1427_v2  ;;  %v1331_v23 = vadd.f32 %v1330_v25, %v1282_v24 }
 0x227   :  { %1493 = vst [vmem:[%s3425_s5 + $0x1f0] sm:$0xff] %v1331_v23 }
 0x22a   :  { %v1428_v56 = vpop.f32.mrf.mxu3 }
 0x22b   :  { %v1429_v10 = vadd.f32 %v1428_v56, %v1380_v12 }
 0x22d   :  { %1494 = vst [vmem:[%s3425_s5 + $0x1f8] sm:$0xff] %v1429_v10 }

// kernel: jepa_segmentor_forward.11
= control target key start
LH: loop header
LB: loop body
LE: loop exit
PB: predicated region body
PF: predicated region fallthrough
CT: control target
= control target key end

     0   :  { %s2761_s21 = smov 0   ;;  %s3540_s0 = inlined_call_operand.vmem [shape: f32[2,256,128], index: 0, kind: input, shape index: {}]   ;;  %s3541_s1 = inlined_call_operand.vmem [shape: f32[2,64,128], index: 1, kind: input, shape index: {}]   ;;  %s3542_s2 = inlined_call_operand.vmem [shape: f32[2,16,32], index: 2, kind: input, shape index: {}]   ;;  %s3543_s3 = inlined_call_operand.vmem [shape: f32[2,4,32], index: 3, kind: input, shape index: {}]   ;;  %s3544_s4 = inlined_call_operand.vmem [shape: f32[2,16,32], index: 4, kind: input, shape index: {}]   ;;  %s3545_s5 = inlined_call_operand.vmem [shape: bf16[128,32], index: 5, kind: input, shape index: {}]   ;;  %s3546_s6 = inlined_call_operand.vmem [shape: bf16[128,32], index: 6, kind: input, shape index: {}]   ;;  %s3547_s7 = inlined_call_operand.vmem [shape: bf16[32,32], index: 7, kind: input, shape index: {}]   ;;  %s3548_s8 = inlined_call_operand.vmem [shape: bf16[32,32], index: 8, kind: input, shape index: {}]   ;;  %s3549_s9 = inlined_call_operand.vmem [shape: bf16[32,32], index: 9, kind: input, shape index: {}]   ;;  %s3550_s10 = inlined_call_operand.vmem [shape: f32[1,32], index: 10, kind: input, shape index: {}]   ;;  %s3551_s11 = inlined_call_operand.vmem [shape: bf16[256,64], index: 11, kind: input, shape index: {}]   ;;  %s3552_s12 = inlined_call_operand.vmem [shape: bf16[256,16], index: 12, kind: input, shape index: {}]   ;;  %s3553_s13 = inlined_call_operand.vmem [shape: bf16[256,4], index: 13, kind: input, shape index: {}]   ;;  %s3554_s14 = inlined_call_operand.vmem [shape: bf16[3,32], index: 14, kind: input, shape index: {}]   ;;  %s3555_s15 = inlined_call_operand.vmem [shape: f32[3,1], index: 15, kind: input, shape index: {}]   ;;  %s3556_s16 = inlined_call_operand.vmem [shape: f32[2,3,256], index: 16, kind: output, shape index: {}]  }
   0x1   :  { %3563 = sst [smem:[#allocation24_spill]] %s3540_s0 }
   0x2 LB: > { %s2205_s22 = sadd.s32 4294967295, %s2673_s21   ;;  %p2209_p0 = scmp.ge.s32.totalorder %s2673_s21, 1  ;;  %s2673_s21 = sphi %s2761_s21, %s26_s21  }
   0x3   : > { %p501_p1 = scmp.lt.s32.totalorder %s2673_s21, 3 }
   0x5   : > { %p502_p2 = pnand %p2209_p0, %p501_p1 }
   0x7   : > { %505 = sbr.rel (%p502_p2) target bundleno = 1219 (0x4c3), region = 84 }
   0xc   : > { %v2592_v0 = vld [vmem:[%s3546_s6 + $0x38] sm:$0xff]  ;;  %v2591_v2 = vld [vmem:[%s3546_s6 + $0x30] sm:$0xff]  ;;  %v2590_v4 = vld [vmem:[%s3546_s6 + $0x28] sm:$0xff]  ;;  %p570_p3 = scmp.lt.s32.totalorder %s2205_s22, 1  ;;  %s3564_s17 = sld [smem:[#allocation24_spill]]  ;;  %vm1179_vm0 = vcmask 261120  }
   0xd   : > { %v2775_v1 = vld [vmem:[%s3545_s5 + $0x38] sm:$0xff]  ;;  %740 = vmatpush.bf16.msra.mxu0 %v2592_v0  ;;  %v2784_v3 = vld [vmem:[%s3545_s5 + $0x30] sm:$0xff]  ;;  %v2793_v5 = vld [vmem:[%s3545_s5 + $0x28] sm:$0xff]  ;;  %vm1676_vm1 = vcmask 1041408   ;;  %vm1627_vm2 = vcmask 31744   ;;  %vm885_vm3 = vcmask 523264  }
   0xe   : > { %2647 = vmatpush.bf16.msra.mxu2 %v2775_v1  ;;  %v2589_v6 = vld [vmem:[%s3546_s6 + $0x20] sm:$0xff]  ;;  %v2588_v8 = vld [vmem:[%s3546_s6 + $0x18] sm:$0xff]  ;;  %s3610_s22 = smov (!%p570_p3, %s2205_s22), 1  ;;  %v2587_v10 = vld [vmem:[%s3546_s6 + $0x10] sm:$0xff]  ;;  %vm1310_vm4 = vcmask 130048   ;;  %vm2098_vm5 = vcmask 1043456  }
   0xf   : > { %v2802_v7 = vld [vmem:[%s3545_s5 + $0x20] sm:$0xff]  ;;  %v2811_v9 = vld [vmem:[%s3545_s5 + $0x18] sm:$0xff]  ;;  %v2822_v11 = vld [vmem:[%s3545_s5 + $0x10] sm:$0xff]  ;;  %s2573_s19 = sshll.u32 %s3610_s22, 6  ;;  %s2572_s20 = sshll.u32 %s3610_s22, 8 }
  0x10   : > { %v2586_v12 = vld [vmem:[%s3546_s6 + $0x8] sm:$0xff]  ;;  %s2838_s29 = scalar_lea.vmem %s3541_s1, %s2573_s19  ;;  %v2585_v14 = vld [vmem:[%s3546_s6] sm:$0xff]  ;;  %s2574_s19 = sshll.u32 %s3610_s22, 4 }
  0x11   : > { %741 = vmatpush.bf16.msra.mxu0 %v2591_v2  ;;  %v2833_v13 = vld [vmem:[%s3545_s5 + $0x8] sm:$0xff]  ;;  %v2851_v15 = vld [vmem:[%s3545_s5] sm:$0xff]  ;;  %v666_v22 = vld [vmem:[%s2838_s29 + $0x10] sm:$0xff]  ;;  %s584_s28 = scalar_lea.vmem %s3542_s2, %s2574_s19  ;;  %s2216_s27 = sshll.u32 %s3610_s22, 2 }
  0x12   : > { %2648 = vmatpush.bf16.msra.mxu2 %v2784_v3  ;;  %s2843_s18 = scalar_lea.vmem %s3564_s17, %s2572_s20  ;;  %v664_v16 = vld [vmem:[%s2838_s29] sm:$0xff]  ;;  %v665_v17 = vld [vmem:[%s2838_s29 + $0x8] sm:$0xff]  ;;  %v667_v23 = vld [vmem:[%s2838_s29 + $0x18] sm:$0xff]  ;;  %s588_s0 = scalar_lea.vmem %s3543_s3, %s2216_s27 }
  0x13   : > { %v606_v18 = vld [vmem:[%s2843_s18 + $0x30] sm:$0xff]  ;;  %v607_v19 = vld [vmem:[%s2843_s18 + $0x38] sm:$0xff]  ;;  %v672_v20 = vpack.c.bf16 %v665_v17, %v664_v16  ;;  %v608_v24 = vld [vmem:[%s2843_s18 + $0x40] sm:$0xff]  ;;  %v673_v26 = vpack.c.bf16 %v667_v23, %v666_v22  ;;  %s593_s24 = scalar_lea.vmem %s3544_s4, %s2574_s19 }
  0x14   : > { %v635_v21 = vpack.c.bf16 %v607_v19, %v606_v18  ;;  %v609_v25 = vld [vmem:[%s2843_s18 + $0x48] sm:$0xff]  ;;  %v2609_v30 = vld [vmem:[%s3547_s7] sm:$0xff]  ;;  %v610_v37 = vld [vmem:[%s2843_s18 + $0x50] sm:$0xff] }
  0x15   : > { %742 = vmatpush.bf16.msra.mxu0 %v2590_v4  ;;  %v636_v27 = vpack.c.bf16 %v609_v25, %v608_v24  ;;  %v2610_v28 = vld [vmem:[%s3547_s7 + $0x8] sm:$0xff]  ;;  %v2627_v31 = vld [vmem:[%s3548_s8] sm:$0xff]  ;;  %v611_v38 = vld [vmem:[%s2843_s18 + $0x58] sm:$0xff] }
  0x16   : > { %2649 = vmatpush.bf16.msra.mxu2 %v2793_v5  ;;  %v2628_v29 = vld [vmem:[%s3548_s8 + $0x8] sm:$0xff]  ;;  %1189 = vmatpush.bf16.msra.mxu3 %v2610_v28  ;;  %v1160_v32 = vld [vmem:[%s584_s28] sm:$0xff]  ;;  %v637_v40 = vpack.c.bf16 %v611_v38, %v610_v37  ;;  %v670_v41 = vld [vmem:[%s2838_s29 + $0x30] sm:$0xff] }
  0x17   : > { %v1161_v33 = vld [vmem:[%s584_s28 + $0x8] sm:$0xff]  ;;  %v668_v35 = vld [vmem:[%s2838_s29 + $0x20] sm:$0xff]  ;;  %v671_v42 = vld [vmem:[%s2838_s29 + $0x38] sm:$0xff]  ;;  %s2576_s28 = sshll.u32 %s3610_s22, 3 }
  0x18   : > { %v1162_v34 = vpack.c.bf16 %v1161_v33, %v1160_v32  ;;  %v669_v36 = vld [vmem:[%s2838_s29 + $0x28] sm:$0xff]  ;;  %v612_v43 = vld [vmem:[%s2843_s18 + $0x60] sm:$0xff]  ;;  %v675_v45 = vpack.c.bf16 %v671_v42, %v670_v41  ;;  %v614_v47 = vld [vmem:[%s2843_s18 + $0x70] sm:$0xff]  ;;  %s598_s29 = scalar_lea.vmem %s3556_s16, %s2576_s28 }
  0x19   : > { %743 = vmatpush.bf16.msra.mxu0 %v2589_v6  ;;  %v674_v39 = vpack.c.bf16 %v669_v36, %v668_v35  ;;  %v613_v44 = vld [vmem:[%s2843_s18 + $0x68] sm:$0xff]  ;;  %v615_v48 = vld [vmem:[%s2843_s18 + $0x78] sm:$0xff]  ;;  %v1480_v49 = vld [vmem:[%s588_s0] sm:$0xf] }
  0x1a   : > { %2650 = vmatpush.bf16.msra.mxu2 %v2802_v7  ;;  %1190 = vmatpush.bf16.msra.mxu3 %v2609_v30  ;;  %v638_v46 = vpack.c.bf16 %v613_v44, %v612_v43  ;;  %v639_v50 = vpack.c.bf16 %v615_v48, %v614_v47  ;;  %v1481_v51 = vpack.c.bf16 %v1480_v49, %v1480_v49  ;;  %v616_v52 = vld [vmem:[%s2843_s18 + $0x80] sm:$0xff]  ;;  %v617_v53 = vld [vmem:[%s2843_s18 + $0x88] sm:$0xff]  ;;  %v618_v55 = vld [vmem:[%s2843_s18 + $0x90] sm:$0xff] }
  0x1b   : > { %v640_v54 = vpack.c.bf16 %v617_v53, %v616_v52  ;;  %v619_v56 = vld [vmem:[%s2843_s18 + $0x98] sm:$0xff]  ;;  %v620_v58 = vld [vmem:[%s2843_s18 + $0xa0] sm:$0xff]  ;;  %v621_v59 = vld [vmem:[%s2843_s18 + $0xa8] sm:$0xff] }
  0x1c   : > { %v641_v57 = vpack.c.bf16 %v619_v56, %v618_v55  ;;  %v642_v60 = vpack.c.bf16 %v621_v59, %v620_v58  ;;  %v622_v61 = vld [vmem:[%s2843_s18 + $0xb0] sm:$0xff]  ;;  %v623_v62 = vld [vmem:[%s2843_s18 + $0xb8] sm:$0xff]  ;;  %v624_v6 = vld [vmem:[%s2843_s18 + $0xc0] sm:$0xff] }
  0x1d   : > { %744 = vmatpush.bf16.msra.mxu0 %v2588_v8  ;;  %2373 = vmatmul.msk.bf16.vlgmr.msra.gmra.mxu3 %vm1179_vm0, %v1162_v34  ;;  %v643_v63 = vpack.c.bf16 %v623_v62, %v622_v61  ;;  %v625_v8 = vld [vmem:[%s2843_s18 + $0xc8] sm:$0xff]  ;;  %v626_v18 = vld [vmem:[%s2843_s18 + $0xd0] sm:$0xff]  ;;  %v627_v19 = vld [vmem:[%s2843_s18 + $0xd8] sm:$0xff] }
  0x1e   : > { %2651 = vmatpush.bf16.msra.mxu2 %v2811_v9  ;;  %v630_v36 = vld [vmem:[%s2843_s18 + $0xf0] sm:$0xff]  ;;  %v631_v37 = vld [vmem:[%s2843_s18 + $0xf8] sm:$0xff]  ;;  %v2593_v48 = vld [vmem:[%s3551_s11] sm:$0xff] }
  0x1f   : > { %v2594_v52 = vld [vmem:[%s3551_s11 + $0x8] sm:$0xff]  ;;  %v2596_v56 = vld [vmem:[%s3551_s11 + $0x18] sm:$0xff]  ;;  %v2633_v59 = vld [vmem:[%s3553_s13 + $0x20] sm:$0xff] }
  0x20   : > { %v3009_v58 = vld [vmem:[%s3552_s12 + $0x18] sm:$0xff]  ;;  %v2597_v61 = vld [vmem:[%s3551_s11 + $0x20] sm:$0xff] }
  0x21   : > { %745 = vmatpush.bf16.msra.mxu0 %v2587_v10 }
  0x22   : > { %2652 = vmatpush.bf16.msra.mxu2 %v2822_v11 }
  0x25   : > { %746 = vmatpush.bf16.msra.mxu0 %v2586_v12  ;;  %v644_v12 = vpack.c.bf16 %v625_v8, %v624_v6  ;;  %v2598_v8 = vld [vmem:[%s3551_s11 + $0x28] sm:$0xff] }
  0x26   : > { %2653 = vmatpush.bf16.msra.mxu2 %v2833_v13 }
  0x29   : > { %747 = vmatpush.bf16.msra.mxu0 %v2585_v14 }
  0x2a   : > { %2654 = vmatpush.bf16.msra.mxu2 %v2851_v15 }
  0x2c   : > { %748 = vmatmul.bf16.vlgmr.msra.gmra.mxu0 %v672_v20 }
  0x2d   : > { %1094 = vmatmul.bf16.vlgmr.msra.gmra.mxu2 %v635_v21  ;;  %1507 = vmatpush.bf16.msrb.mxu0 %v2628_v29  ;;  %v645_v21 = vpack.c.bf16 %v627_v19, %v626_v18  ;;  %v2599_v19 = vld [vmem:[%s3551_s11 + $0x30] sm:$0xff] }
  0x31   : > { %1508 = vmatpush.bf16.msrb.mxu0 %v2627_v31 }
  0x3c   : > { %753 = vmatmul.bf16.gmra.mxu0 %v673_v26  ;;  %v628_v26 = vld [vmem:[%s2843_s18 + $0xe0] sm:$0xff] }
  0x3d   : > { %1099 = vmatmul.bf16.gmra.mxu2 %v636_v27  ;;  %v629_v27 = vld [vmem:[%s2843_s18 + $0xe8] sm:$0xff] }
  0x3e   : > { %v646_v31 = vpack.c.bf16 %v629_v27, %v628_v26  ;;  %v2600_v27 = vld [vmem:[%s3551_s11 + $0x38] sm:$0xff] }
  0x4c   : > { %758 = vmatmul.bf16.gmra.mxu0 %v674_v39 }
  0x4d   : > { %1104 = vmatmul.bf16.gmra.mxu2 %v637_v40  ;;  %v647_v40 = vpack.c.bf16 %v631_v37, %v630_v36  ;;  %v2601_v36 = vld [vmem:[%s3551_s11 + $0x40] sm:$0xff] }
  0x5c   : > { %763 = vmatmul.bf16.gmra.mxu0 %v675_v45  ;;  %v2629_v45 = vld [vmem:[%s3553_s13] sm:$0xff] }
  0x5d   : > { %1109 = vmatmul.bf16.gmra.mxu2 %v638_v46 }
  0x6c   : > { %2462 = vmatmul.msk.bf16.vlgmr.msrb.gmra.mxu0 %vm1179_vm0, %v1481_v51  ;;  %v2946_v51 = vld [vmem:[%s3552_s12] sm:$0xff] }
  0x6d   : > { %1114 = vmatmul.bf16.gmra.mxu2 %v639_v50 }
  0x7d   : > { %1119 = vmatmul.bf16.gmra.mxu2 %v640_v54  ;;  %v2990_v54 = vld [vmem:[%s3552_s12 + $0x10] sm:$0xff] }
  0x8d   : > { %1124 = vmatmul.bf16.gmra.mxu2 %v641_v57 }
  0x9d   : > { %1129 = vmatmul.bf16.gmra.mxu2 %v642_v60 }
  0xa0   : > { %v1192_v23 = vpop.f32.mrf.mxu3 }
  0xa8   : > { %v1194_v28 = vpop.f32.mrf.mxu3 }
  0xa9   : > { %v749_v0 = vpop.f32.mrf.mxu0  ;;  %v1229_v30 = vpack.c.bf16 %v1194_v28, %v1192_v23  ;;  %v2636_v23 = vld [vmem:[%s3553_s13 + $0x38] sm:$0xff] }
  0xab   : > { %1366 = vmatpush.bf16.msrb.mxu2 %v1229_v30  ;;  %2655 = vmatpush.bf16.msrb.mxu3 %v1229_v30  ;;  %v3095_v30 = vld [vmem:[%s3552_s12 + $0x38] sm:$0xff] }
  0xad   : > { %1134 = vmatmul.bf16.gmra.mxu2 %v643_v63  ;;  %v3028_v63 = vld [vmem:[%s3552_s12 + $0x20] sm:$0xff] }
  0xb0   : > { %v2905_v2 = vpop.f32.mrf.mxu2 }
  0xb1   : > { %v751_v4 = vpop.f32.mrf.mxu0 }
  0xb2   : > { %v801_v46 = vpack.c.bf16 %v751_v4, %v749_v0  ;;  %v2634_v0 = vld [vmem:[%s3553_s13 + $0x28] sm:$0xff] }
  0xb3   : > { %v2646_v4 = vld [vmem:[%s3549_s9 + $0x8] sm:$0xff] }
  0xb8   : > { %v2909_v10 = vpop.f32.mrf.mxu2 }
  0xb9   : > { %v754_v14 = vpop.f32.mrf.mxu0 }
  0xbd   : > { %1139 = vmatmul.bf16.gmra.mxu2 %v644_v12 }
  0xc0   : > { %v2911_v16 = vpop.f32.mrf.mxu2 }
  0xc1   : > { %v756_v17 = vpop.f32.mrf.mxu0 }
  0xc2   : > { %v802_v43 = vpack.c.bf16 %v756_v17, %v754_v14  ;;  %v3050_v14 = vld [vmem:[%s3552_s12 + $0x28] sm:$0xff]  ;;  %v2635_v17 = vld [vmem:[%s3553_s13 + $0x30] sm:$0xff] }
  0xc8   : > { %v2915_v20 = vpop.f32.mrf.mxu2 }
  0xc9   : > { %v759_v22 = vpop.f32.mrf.mxu0 }
  0xcd   : > { %1144 = vmatmul.bf16.gmra.mxu2 %v645_v21 }
  0xd0   : > { %v2917_v24 = vpop.f32.mrf.mxu2 }
  0xd1   : > { %v761_v25 = vpop.f32.mrf.mxu0 }
  0xd2   : > { %v803_v38 = vpack.c.bf16 %v761_v25, %v759_v22  ;;  %v3069_v22 = vld [vmem:[%s3552_s12 + $0x30] sm:$0xff]  ;;  %v3079_v25 = vld [vmem:[%s3552_s12 + $0x48] sm:$0xff] }
  0xd3   : > { %2447 = vmatmul.msk.bf16.vlgmr.msrb.gmra.mxu3 %vm1310_vm4, %v3079_v25 }
  0xd8   : > { %v2921_v29 = vpop.f32.mrf.mxu2 }
  0xd9   : > { %v764_v32 = vpop.f32.mrf.mxu0 }
  0xdd   : > { %1149 = vmatmul.bf16.gmra.mxu2 %v646_v31  ;;  %v2637_v31 = vld [vmem:[%s3553_s13 + $0x40] sm:$0xff] }
  0xe0   : > { %v2923_v33 = vpop.f32.mrf.mxu2 }
  0xe1   : > { %v766_v34 = vpop.f32.mrf.mxu0 }
  0xe2   : > { %v804_v35 = vpack.c.bf16 %v766_v34, %v764_v32  ;;  %v3107_v34 = vld [vmem:[%s3552_s12 + $0x50] sm:$0xff] }
  0xe3   : > { %3566 = vst [vmem:[#allocation3_spill] sm:$0xff] %v3107_v34  ;;  %2448 = vmatmul.msk.bf16.gmra.mxu3 %vm1310_vm4, %v3107_v34 }
  0xe4   : > { %938 = vmatpush.bf16.msra.mxu1 %v804_v35 }
  0xe8   : > { %v2927_v39 = vpop.f32.mrf.mxu2  ;;  %939 = vmatpush.bf16.msra.mxu1 %v803_v38 }
  0xe9   : > { %v1510_v41 = vpop.f32.mrf.mxu0 }
  0xea   : > { %v1546_v42 = vpack.c.bf16 %v1510_v41, %v1510_v41 }
  0xec   : > { %v1678_v44 = vsel %vm1676_vm1, %v1546_v42, 0  ;;  %940 = vmatpush.bf16.msra.mxu1 %v802_v43  ;;  %v3129_v42 = vld [vmem:[%s3552_s12 + $0x40] sm:$0xff]  ;;  %v2638_v43 = vld [vmem:[%s3553_s13 + $0x48] sm:$0xff] }
  0xed   : > { %1154 = vmatmul.bf16.gmra.mxu2 %v647_v40  ;;  %1687 = vmatpush.bf16.msra.mxu0 %v1678_v44 }
  0xf0   : > { %v2932_v47 = vpop.f32.mrf.mxu2  ;;  %941 = vmatpush.bf16.msra.mxu1 %v801_v46  ;;  %2527 = vmatmul.msk.bf16.vlgmr.msra.gmra.mxu0 %vm1627_vm2, %v2629_v45  ;;  %v3141_v45 = vld [vmem:[%s3552_s12 + $0x58] sm:$0xff] }
  0xf1   : > { %v1512_v49 = vpop.f32.mrf.mxu0  ;;  %1829 = vmatpush.bf16.msrb.mxu0 %v2646_v4  ;;  %3567 = vst [vmem:[#allocation4_spill] sm:$0xff] %v3141_v45 }
  0xf3   : > { %2317 = vmatmul.msk.bf16.vlgmr.msra.gmra.mxu1 %vm885_vm3, %v2593_v48  ;;  %v2602_v48 = vld [vmem:[%s3551_s11 + $0x48] sm:$0xff]  ;;  %2449 = vmatmul.msk.bf16.gmra.mxu3 %vm1310_vm4, %v3141_v45 }
  0xf4   : > { %1071 = vmatpush.bf16.msrb.mxu1 %v2775_v1  ;;  %v2630_v1 = vld [vmem:[%s3553_s13 + $0x8] sm:$0xff] }
  0xf8   : > { %1072 = vmatpush.bf16.msrb.mxu1 %v2784_v3  ;;  %v2941_v50 = vpop.f32.mrf.mxu2 }
  0xf9   : > { %3565 = vst [vmem:[#allocation2_spill] sm:$0xff] %v2941_v50 }
  0xfc   : > { %1073 = vmatpush.bf16.msrb.mxu1 %v2793_v5 }
  0xfd   : > { %2438 = vmatmul.msk.bf16.vlgmr.msrb.gmra.mxu2 %vm1310_vm4, %v2946_v51 }
 0x100   : > { %1074 = vmatpush.bf16.msrb.mxu1 %v2802_v7  ;;  %v2955_v3 = vpop.f32.mrf.mxu2  ;;  %2528 = vmatmul.msk.bf16.gmra.mxu0 %vm1627_vm2, %v2630_v1  ;;  %v2969_v7 = vld [vmem:[%s3552_s12 + $0x8] sm:$0xff] }
 0x103   : > { %2318 = vmatmul.msk.bf16.gmra.mxu1 %vm885_vm3, %v2594_v52 }
 0x104   : > { %1075 = vmatpush.bf16.msrb.mxu1 %v2811_v9  ;;  %v2631_v9 = vld [vmem:[%s3553_s13 + $0x10] sm:$0xff] }
 0x108   : > { %1076 = vmatpush.bf16.msrb.mxu1 %v2822_v11  ;;  %v2964_v5 = vpop.f32.mrf.mxu2  ;;  %v2595_v11 = vld [vmem:[%s3551_s11 + $0x10] sm:$0xff] }
 0x10c   : > { %1077 = vmatpush.bf16.msrb.mxu1 %v2833_v13 }
 0x10d   : > { %2439 = vmatmul.msk.bf16.gmra.mxu2 %vm1310_vm4, %v2969_v7 }
 0x110   : > { %1078 = vmatpush.bf16.msrb.mxu1 %v2851_v15  ;;  %v2978_v53 = vpop.f32.mrf.mxu2  ;;  %2529 = vmatmul.msk.bf16.gmra.mxu0 %vm1627_vm2, %v2631_v9  ;;  %v2632_v15 = vld [vmem:[%s3553_s13 + $0x18] sm:$0xff] }
 0x113   : > { %2319 = vmatmul.msk.bf16.gmra.mxu1 %vm885_vm3, %v2595_v11  ;;  %v2639_v11 = vld [vmem:[%s3553_s13 + $0x50] sm:$0xff] }
 0x118   : > { %v2985_v13 = vpop.f32.mrf.mxu2 }
 0x11d   : > { %2440 = vmatmul.msk.bf16.gmra.mxu2 %vm1310_vm4, %v2990_v54 }
 0x120   : > { %v2997_v55 = vpop.f32.mrf.mxu2  ;;  %2530 = vmatmul.msk.bf16.gmra.mxu0 %vm1627_vm2, %v2632_v15 }
 0x123   : > { %2320 = vmatmul.msk.bf16.gmra.mxu1 %vm885_vm3, %v2596_v56  ;;  %v3168_v56 = vld [vmem:[%s3552_s12 + $0x60] sm:$0xff] }
 0x124   : > { %3570 = vst [vmem:[#allocation7_spill] sm:$0xff] %v3168_v56  ;;  %2450 = vmatmul.msk.bf16.gmra.mxu3 %vm1310_vm4, %v3168_v56  ;;  %v2641_v56 = vld [vmem:[%s3553_s13 + $0x60] sm:$0xff] }
 0x128   : > { %v3004_v57 = vpop.f32.mrf.mxu2 }
 0x12d   : > { %2441 = vmatmul.msk.bf16.gmra.mxu2 %vm1310_vm4, %v3009_v58 }
 0x130   : > { %v3016_v60 = vpop.f32.mrf.mxu2  ;;  %2531 = vmatmul.msk.bf16.gmra.mxu0 %vm1627_vm2, %v2633_v59 }
 0x133   : > { %2321 = vmatmul.msk.bf16.gmra.mxu1 %vm885_vm3, %v2597_v61  ;;  %v2603_v61 = vld [vmem:[%s3551_s11 + $0x50] sm:$0xff] }
 0x138   : > { %v3023_v62 = vpop.f32.mrf.mxu2 }
 0x13d   : > { %2442 = vmatmul.msk.bf16.gmra.mxu2 %vm1310_vm4, %v3028_v63 }
 0x140   : > { %v3038_v6 = vpop.f32.mrf.mxu2  ;;  %2532 = vmatmul.msk.bf16.gmra.mxu0 %vm1627_vm2, %v2634_v0 }
 0x143   : > { %2322 = vmatmul.msk.bf16.gmra.mxu1 %vm885_vm3, %v2598_v8 }
 0x148   : > { %v3045_v12 = vpop.f32.mrf.mxu2 }
 0x14d   : > { %2443 = vmatmul.msk.bf16.gmra.mxu2 %vm1310_vm4, %v3050_v14 }
 0x150   : > { %v3057_v18 = vpop.f32.mrf.mxu2  ;;  %2533 = vmatmul.msk.bf16.gmra.mxu0 %vm1627_vm2, %v2635_v17 }
 0x153   : > { %2323 = vmatmul.msk.bf16.gmra.mxu1 %vm885_vm3, %v2599_v19  ;;  %v2640_v19 = vld [vmem:[%s3553_s13 + $0x58] sm:$0xff] }
 0x158   : > { %v3064_v21 = vpop.f32.mrf.mxu2 }
 0x15d   : > { %2444 = vmatmul.msk.bf16.gmra.mxu2 %vm1310_vm4, %v3069_v22 }
 0x160   : > { %v3081_v26 = vpop.f32.mrf.mxu2  ;;  %2534 = vmatmul.msk.bf16.gmra.mxu0 %vm1627_vm2, %v2636_v23 }
 0x163   : > { %2324 = vmatmul.msk.bf16.gmra.mxu1 %vm885_vm3, %v2600_v27  ;;  %v3193_v27 = vld [vmem:[%s3552_s12 + $0x68] sm:$0xff] }
 0x164   : > { %3574 = vst [vmem:[#allocation11_spill] sm:$0xff] %v3193_v27  ;;  %2451 = vmatmul.msk.bf16.gmra.mxu3 %vm1310_vm4, %v3193_v27  ;;  %v3213_v27 = vld [vmem:[%s3552_s12 + $0x70] sm:$0xff] }
 0x165   : > { %3577 = vst [vmem:[#allocation14_spill] sm:$0xff] %v3213_v27 }
 0x168   : > { %v3090_v28 = vpop.f32.mrf.mxu2 }
 0x16d   : > { %2445 = vmatmul.msk.bf16.gmra.mxu2 %vm1310_vm4, %v3095_v30  ;;  %v3102_v32 = vpop.f32.mrf.mxu0 }
 0x170   : > { %v3109_v35 = vpop.f32.mrf.mxu2  ;;  %v3116_v37 = vpop.f32.mrf.mxu1  ;;  %2535 = vmatmul.msk.bf16.gmra.mxu0 %vm1627_vm2, %v2637_v31 }
 0x173   : > { %2325 = vmatmul.msk.bf16.gmra.mxu1 %vm885_vm3, %v2601_v36  ;;  %v2604_v36 = vld [vmem:[%s3551_s11 + $0x58] sm:$0xff] }
 0x174   : > { %2452 = vmatmul.msk.bf16.gmra.mxu3 %vm1310_vm4, %v3213_v27 }
 0x175   : > { %v3120_v38 = vpop.f32.mrf.mxu0 }
 0x178   : > { %v3122_v40 = vpop.f32.mrf.mxu2  ;;  %v3124_v41 = vpop.f32.mrf.mxu1 }
 0x17d   : > { %2446 = vmatmul.msk.bf16.gmra.mxu2 %vm1310_vm4, %v3129_v42  ;;  %v3136_v44 = vpop.f32.mrf.mxu0 }
 0x180   : > { %v3143_v46 = vpop.f32.mrf.mxu2  ;;  %v3150_v49 = vpop.f32.mrf.mxu1  ;;  %2536 = vmatmul.msk.bf16.gmra.mxu0 %vm1627_vm2, %v2638_v43 }
 0x183   : > { %2326 = vmatmul.msk.bf16.gmra.mxu1 %vm885_vm3, %v2602_v48 }
 0x185   : > { %v3154_v1 = vpop.f32.mrf.mxu0 }
 0x186   : > { %3568 = vst [vmem:[#allocation5_spill] sm:$0xff] %v3154_v1 }
 0x188   : > { %v3156_v52 = vpop.f32.mrf.mxu2  ;;  %v3158_v9 = vpop.f32.mrf.mxu1 }
 0x18d   : > { %v3163_v15 = vpop.f32.mrf.mxu0 }
 0x18e   : > { %3569 = vst [vmem:[#allocation6_spill] sm:$0xff] %v3163_v15 }
 0x190   : > { %v3170_v59 = vpop.f32.mrf.mxu2  ;;  %v3177_v0 = vpop.f32.mrf.mxu1  ;;  %2537 = vmatmul.msk.bf16.gmra.mxu0 %vm1627_vm2, %v2639_v11 }
 0x191   : > { %3571 = vst [vmem:[#allocation8_spill] sm:$0xff] %v3177_v0 }
 0x193   : > { %2327 = vmatmul.msk.bf16.gmra.mxu1 %vm885_vm3, %v2603_v61 }
 0x195   : > { %v3181_v4 = vpop.f32.mrf.mxu0 }
 0x196   : > { %3572 = vst [vmem:[#allocation9_spill] sm:$0xff] %v3181_v4 }
 0x198   : > { %v3183_v8 = vpop.f32.mrf.mxu2  ;;  %v3185_v17 = vpop.f32.mrf.mxu1 }
 0x199   : > { %3573 = vst [vmem:[#allocation10_spill] sm:$0xff] %v3185_v17 }
 0x19d   : > { %v1704_v23 = vpop.f32.mrf.mxu0 }
 0x1a0   : > { %v3195_v31 = vpop.f32.mrf.mxu2  ;;  %v958_v43 = vpop.f32.mrf.mxu1  ;;  %2538 = vmatmul.msk.bf16.gmra.mxu0 %vm1627_vm2, %v2640_v19  ;;  %v2605_v19 = vld [vmem:[%s3551_s11 + $0x60] sm:$0xff] }
 0x1a1   : > { %3575 = vst [vmem:[#allocation12_spill] sm:$0xff] %v3195_v31  ;;  %v1096_v50 = vadd.f32 %v2905_v2, %v958_v43 }
 0x1a3   : > { %2328 = vmatmul.msk.bf16.gmra.mxu1 %vm885_vm3, %v2604_v36 }
 0x1a5   : > { %v1706_v48 = vpop.f32.mrf.mxu0 }
 0x1a8   : > { %v3204_v11 = vpop.f32.mrf.mxu2  ;;  %v960_v61 = vpop.f32.mrf.mxu1 }
 0x1a9   : > { %3576 = vst [vmem:[#allocation13_spill] sm:$0xff] %v3204_v11  ;;  %v1098_v15 = vadd.f32 %v2909_v10, %v960_v61  ;;  %v3237_v10 = vld [vmem:[%s3552_s12 + $0x78] sm:$0xff] }
 0x1aa   : > { %3578 = vst [vmem:[#allocation15_spill] sm:$0xff] %v3237_v10  ;;  %2453 = vmatmul.msk.bf16.gmra.mxu3 %vm1310_vm4, %v3237_v10 }
 0x1ad   : > { %v1709_v45 = vpop.f32.mrf.mxu0 }
 0x1b0   : > { %v1383_v4 = vpop.f32.mrf.mxu2  ;;  %v963_v2 = vpop.f32.mrf.mxu1  ;;  %2539 = vmatmul.msk.bf16.gmra.mxu0 %vm1627_vm2, %v2641_v56  ;;  %v2645_v56 = vld [vmem:[%s3549_s9] sm:$0xff] }
 0x1b1   : > { %v1454_v36 = vadd.f32 %v1383_v4, %v1096_v50  ;;  %v1101_v1 = vadd.f32 %v2911_v16, %v963_v2  ;;  %v2642_v50 = vld [vmem:[%s3553_s13 + $0x68] sm:$0xff]  ;;  %1830 = vmatpush.bf16.msrb.mxu0 %v2645_v56 }
 0x1b3   : > { %v3221_v43 = vadd.f32 %v1704_v23, %v1454_v36  ;;  %2329 = vmatmul.msk.bf16.gmra.mxu1 %vm885_vm3, %v2605_v19 }
 0x1b5   : > { %v1711_v11 = vpop.f32.mrf.mxu0 }
 0x1b8   : > { %v1385_v31 = vpop.f32.mrf.mxu2  ;;  %v965_v34 = vpop.f32.mrf.mxu1 }
 0x1b9   : > { %v1455_v17 = vadd.f32 %v1385_v31, %v1098_v15 }
 0x1bb   : > { %v3225_v0 = vadd.f32 %v1706_v48, %v1455_v17  ;;  %v2606_v17 = vld [vmem:[%s3551_s11 + $0x68] sm:$0xff]  ;;  %v1103_v48 = vadd.f32 %v2915_v20, %v965_v34 }
 0x1bd   : > { %v1714_v4 = vpop.f32.mrf.mxu0 }
 0x1c0   : > { %v1388_v15 = vpop.f32.mrf.mxu2  ;;  %v968_v23 = vpop.f32.mrf.mxu1  ;;  %2540 = vmatmul.msk.bf16.gmra.mxu0 %vm1627_vm2, %v2642_v50 }
 0x1c1   : > { %v1456_v16 = vadd.f32 %v1388_v15, %v1101_v1  ;;  %v1106_v56 = vadd.f32 %v2917_v24, %v968_v23  ;;  %v2643_v1 = vld [vmem:[%s3553_s13 + $0x70] sm:$0xff] }
 0x1c3   : > { %v3245_v31 = vadd.f32 %v1709_v45, %v1456_v16  ;;  %2330 = vmatmul.msk.bf16.gmra.mxu1 %vm885_vm3, %v2606_v17  ;;  %v2607_v45 = vld [vmem:[%s3551_s11 + $0x70] sm:$0xff] }
 0x1c5   : > { %v1716_v61 = vpop.f32.mrf.mxu0 }
 0x1c8   : > { %v1390_v19 = vpop.f32.mrf.mxu2  ;;  %v970_v2 = vpop.f32.mrf.mxu1 }
 0x1c9   : > { %v1457_v36 = vadd.f32 %v1390_v19, %v1103_v48  ;;  %v1108_v24 = vadd.f32 %v2921_v29, %v970_v2 }
 0x1cb   : > { %v3249_v27 = vadd.f32 %v1711_v11, %v1457_v36 }
 0x1cd   : > { %v1719_v15 = vpop.f32.mrf.mxu0 }
 0x1d0   : > { %v1393_v50 = vpop.f32.mrf.mxu2  ;;  %v973_v20 = vpop.f32.mrf.mxu1  ;;  %2541 = vmatmul.msk.bf16.gmra.mxu0 %vm1627_vm2, %v2643_v1 }
 0x1d1   : > { %v1458_v17 = vadd.f32 %v1393_v50, %v1106_v56  ;;  %v1111_v36 = vadd.f32 %v2923_v33, %v973_v20  ;;  %v2644_v56 = vld [vmem:[%s3553_s13 + $0x78] sm:$0xff] }
 0x1d2   : > { %v2608_v50 = vld [vmem:[%s3551_s11 + $0x78] sm:$0xff] }
 0x1d3   : > { %v3259_v34 = vadd.f32 %v1714_v4, %v1458_v17  ;;  %2331 = vmatmul.msk.bf16.gmra.mxu1 %vm885_vm3, %v2607_v45  ;;  %v1413_v17 = vpop.f32.mrf.mxu3 }
 0x1d5   : > { %3579 = vst [vmem:[#allocation16_spill] sm:$0xff] %v3259_v34  ;;  %v1721_v11 = vpop.f32.mrf.mxu0 }
 0x1d8   : > { %v1395_v16 = vpop.f32.mrf.mxu2  ;;  %v975_v48 = vpop.f32.mrf.mxu1 }
 0x1d9   : > { %v1459_v23 = vadd.f32 %v1395_v16, %v1108_v24  ;;  %v1113_v33 = vadd.f32 %v2927_v39, %v975_v48  ;;  %v600_v39 = vld [vmem:[%s2843_s18] sm:$0xff]  ;;  %v601_v48 = vld [vmem:[%s2843_s18 + $0x8] sm:$0xff] }
 0x1db   : > { %v3263_v19 = vadd.f32 %v1716_v61, %v1459_v23  ;;  %v1801_v23 = vld [vmem:[%s593_s24] sm:$0xff] }
 0x1dd   : > { %3580 = vst [vmem:[#allocation17_spill] sm:$0xff] %v3263_v19  ;;  %v1724_v1 = vpop.f32.mrf.mxu0 }
 0x1e0   : > { %v1398_v4 = vpop.f32.mrf.mxu2  ;;  %v978_v2 = vpop.f32.mrf.mxu1  ;;  %2542 = vmatmul.msk.bf16.gmra.mxu0 %vm1627_vm2, %v2644_v56 }
 0x1e1   : > { %v1460_v29 = vadd.f32 %v1398_v4, %v1111_v36  ;;  %v1802_v36 = vld [vmem:[%s593_s24 + $0x8] sm:$0xff]  ;;  %v1116_v4 = vadd.f32 %v2932_v47, %v978_v2 }
 0x1e2   : > { %v1803_v56 = vpack.c.bf16 %v1802_v36, %v1801_v23  ;;  %v602_v36 = vld [vmem:[%s2843_s18 + $0x10] sm:$0xff] }
 0x1e3   : > { %v3273_v61 = vadd.f32 %v1719_v15, %v1460_v29  ;;  %2332 = vmatmul.msk.bf16.gmra.mxu1 %vm885_vm3, %v2608_v50 }
 0x1e5   : > { %3581 = vst [vmem:[#allocation18_spill] sm:$0xff] %v3273_v61  ;;  %v3277_v45 = vpop.f32.mrf.mxu0 }
 0x1e6   : > { %3582 = vst [vmem:[#allocation19_spill] sm:$0xff] %v3277_v45  ;;  %v632_v45 = vpack.c.bf16 %v601_v48, %v600_v39 }
 0x1e8   : > { %v1400_v20 = vpop.f32.mrf.mxu2  ;;  %v3284_v16 = vpop.f32.mrf.mxu1 }
 0x1e9   : > { %v1461_v24 = vadd.f32 %v1400_v20, %v1113_v33  ;;  %3583 = vst [vmem:[#allocation20_spill] sm:$0xff] %v3284_v16  ;;  %v1415_v33 = vpop.f32.mrf.mxu3  ;;  %v603_v16 = vld [vmem:[%s2843_s18 + $0x18] sm:$0xff] }
 0x1ea   : > { %v633_v39 = vpack.c.bf16 %v603_v16, %v602_v36  ;;  %v604_v36 = vld [vmem:[%s2843_s18 + $0x20] sm:$0xff] }
 0x1eb   : > { %v3286_v15 = vadd.f32 %v1721_v11, %v1461_v24 }
 0x1ed   : > { %3584 = vst [vmem:[#allocation21_spill] sm:$0xff] %v3286_v15  ;;  %v1729_v50 = vpop.f32.mrf.mxu0 }
 0x1f0   : > { %v1403_v29 = vpop.f32.mrf.mxu2  ;;  %v983_v61 = vpop.f32.mrf.mxu1  ;;  %2551 = vmatmul.msk.bf16.vlgmr.msrb.gmra.mxu0 %vm1179_vm0, %v1803_v56 }
 0x1f1   : > { %v1462_v10 = vadd.f32 %v1403_v29, %v1116_v4  ;;  %v1418_v47 = vpop.f32.mrf.mxu3  ;;  %v1121_v2 = vadd.f32 %v2955_v3, %v983_v61 }
 0x1f3   : > { %v3292_v20 = vadd.f32 %v1724_v1, %v1462_v10  ;;  %1079 = vmatmul.bf16.vlgmr.msrb.gmra.mxu1 %v632_v45 }
 0x1f5   : > { %3585 = vst [vmem:[#allocation22_spill] sm:$0xff] %v3292_v20  ;;  %v1731_v11 = vpop.f32.mrf.mxu0 }
 0x1f8   : > { %v3294_v24 = vpop.f32.mrf.mxu2  ;;  %v985_v23 = vpop.f32.mrf.mxu1 }
 0x1f9   : > { %3586 = vst [vmem:[#allocation23_spill] sm:$0xff] %v3294_v24  ;;  %v1123_v56 = vadd.f32 %v2964_v5, %v985_v23  ;;  %v1420_v29 = vpop.f32.mrf.mxu3 }
 0x1fd   : > { %v1734_v15 = vpop.f32.mrf.mxu0 }
 0x200   : > { %v1408_v19 = vpop.f32.mrf.mxu2  ;;  %v988_v48 = vpop.f32.mrf.mxu1 }
 0x201   : > { %v1464_v4 = vadd.f32 %v1408_v19, %v1121_v2  ;;  %v1126_v10 = vadd.f32 %v2978_v53, %v988_v48  ;;  %v605_v53 = vld [vmem:[%s2843_s18 + $0x28] sm:$0xff] }
 0x203   : > { %v3300_v1 = vadd.f32 %v1729_v50, %v1464_v4  ;;  %v1466_v45 = vadd.f32 %v1413_v17, %v1126_v10  ;;  %1084 = vmatmul.bf16.gmra.mxu1 %v633_v39  ;;  %v1423_v17 = vpop.f32.mrf.mxu3  ;;  %v634_v39 = vpack.c.bf16 %v605_v53, %v604_v36 }
 0x205   : > { %v1736_v20 = vpop.f32.mrf.mxu0  ;;  %v3303_v3 = vadd.f32 %v1734_v15, %v1466_v45 }
 0x208   : > { %v1410_v61 = vpop.f32.mrf.mxu2  ;;  %v990_v34 = vpop.f32.mrf.mxu1 }
 0x209   : > { %v1465_v24 = vadd.f32 %v1410_v61, %v1123_v56  ;;  %v1128_v19 = vadd.f32 %v2985_v13, %v990_v34 }
 0x20b   : > { %v3306_v16 = vadd.f32 %v1731_v11, %v1465_v24  ;;  %v1467_v2 = vadd.f32 %v1415_v33, %v1128_v19  ;;  %v1425_v13 = vpop.f32.mrf.mxu3 }
 0x20d   : > { %v1739_v50 = vpop.f32.mrf.mxu0  ;;  %v3310_v4 = vadd.f32 %v1736_v20, %v1467_v2 }
 0x210   : > { %v993_v5 = vpop.f32.mrf.mxu1 }
 0x211   : > { %v1131_v23 = vadd.f32 %v2997_v55, %v993_v5 }
 0x213   : > { %v1468_v15 = vadd.f32 %v1418_v47, %v1131_v23  ;;  %1089 = vmatmul.bf16.gmra.mxu1 %v634_v39  ;;  %v1428_v61 = vpop.f32.mrf.mxu3 }
 0x215   : > { %v1741_v48 = vpop.f32.mrf.mxu0  ;;  %v3313_v10 = vadd.f32 %v1739_v50, %v1468_v15 }
 0x218   : > { %v995_v45 = vpop.f32.mrf.mxu1 }
 0x219   : > { %v1133_v34 = vadd.f32 %v3004_v57, %v995_v45 }
 0x21b   : > { %v1469_v33 = vadd.f32 %v1420_v29, %v1133_v34  ;;  %v1430_v50 = vpop.f32.mrf.mxu3 }
 0x21d   : > { %v1744_v11 = vpop.f32.mrf.mxu0  ;;  %v3316_v24 = vadd.f32 %v1741_v48, %v1469_v33 }
 0x220   : > { %v998_v20 = vpop.f32.mrf.mxu1 }
 0x221   : > { %v1136_v56 = vadd.f32 %v3016_v60, %v998_v20 }
 0x223   : > { %v1470_v19 = vadd.f32 %v1423_v17, %v1136_v56  ;;  %v1433_v60 = vpop.f32.mrf.mxu3 }
 0x225   : > { %v1746_v2 = vpop.f32.mrf.mxu0  ;;  %v3319_v55 = vadd.f32 %v1744_v11, %v1470_v19 }
 0x228   : > { %v1000_v47 = vpop.f32.mrf.mxu1 }
 0x229   : > { %v1138_v36 = vadd.f32 %v3023_v62, %v1000_v47 }
 0x22b   : > { %v1471_v53 = vadd.f32 %v1425_v13, %v1138_v36  ;;  %v1435_v13 = vpop.f32.mrf.mxu3 }
 0x22d   : > { %v1749_v39 = vpop.f32.mrf.mxu0  ;;  %v3322_v5 = vadd.f32 %v1746_v2, %v1471_v53 }
 0x230   : > { %v1003_v57 = vpop.f32.mrf.mxu1 }
 0x231   : > { %v1141_v29 = vadd.f32 %v3038_v6, %v1003_v57 }
 0x233   : > { %v1472_v23 = vadd.f32 %v1428_v61, %v1141_v29  ;;  %v1438_v47 = vpop.f32.mrf.mxu3 }
 0x235   : > { %v1751_v15 = vpop.f32.mrf.mxu0  ;;  %v3325_v48 = vadd.f32 %v1749_v39, %v1472_v23 }
 0x238   : > { %v1005_v17 = vpop.f32.mrf.mxu1 }
 0x239   : > { %v1143_v45 = vadd.f32 %v3045_v12, %v1005_v17 }
 0x23b   : > { %v1473_v34 = vadd.f32 %v1430_v50, %v1143_v45  ;;  %v1440_v29 = vpop.f32.mrf.mxu3 }
 0x23d   : > { %v1754_v33 = vpop.f32.mrf.mxu0  ;;  %v3328_v11 = vadd.f32 %v1751_v15, %v1473_v34 }
 0x240   : > { %v1008_v62 = vpop.f32.mrf.mxu1 }
 0x241   : > { %v1146_v20 = vadd.f32 %v3057_v18, %v1008_v62 }
 0x243   : > { %v1474_v56 = vadd.f32 %v1433_v60, %v1146_v20 }
 0x245   : > { %v1756_v19 = vpop.f32.mrf.mxu0  ;;  %v3331_v2 = vadd.f32 %v1754_v33, %v1474_v56 }
 0x248   : > { %v1010_v6 = vpop.f32.mrf.mxu1 }
 0x249   : > { %v1148_v61 = vadd.f32 %v3064_v21, %v1010_v6  ;;  %v1443_v21 = vpop.f32.mrf.mxu3 }
 0x24b   : > { %v1475_v36 = vadd.f32 %v1435_v13, %v1148_v61 }
 0x24d   : > { %v1759_v53 = vpop.f32.mrf.mxu0  ;;  %v3334_v39 = vadd.f32 %v1756_v19, %v1475_v36 }
 0x250   : > { %v1013_v12 = vpop.f32.mrf.mxu1 }
 0x251   : > { %v1151_v50 = vadd.f32 %v3081_v26, %v1013_v12  ;;  %v1445_v19 = vpop.f32.mrf.mxu3 }
 0x253   : > { %v1476_v57 = vadd.f32 %v1438_v47, %v1151_v50 }
 0x255   : > { %v1761_v23 = vpop.f32.mrf.mxu0  ;;  %v3337_v15 = vadd.f32 %v1759_v53, %v1476_v57 }
 0x258   : > { %v1015_v18 = vpop.f32.mrf.mxu1 }
 0x259   : > { %v1153_v60 = vadd.f32 %v3090_v28, %v1015_v18 }
 0x25b   : > { %v1477_v17 = vadd.f32 %v1440_v29, %v1153_v60 }
 0x25d   : > { %v1764_v45 = vpop.f32.mrf.mxu0  ;;  %v3340_v34 = vadd.f32 %v1761_v23, %v1477_v17 }
 0x260   : > { %v1018_v33 = vpop.f32.mrf.mxu1 }
 0x261   : > { %v1156_v62 = vadd.f32 %v3109_v35, %v1018_v33 }
 0x263   : > { %v1478_v13 = vadd.f32 %v1443_v21, %v1156_v62  ;;  %v3587_v21 = vld [vmem:[#allocation5_spill] sm:$0xff] }
 0x265   : > { %v1766_v20 = vpop.f32.mrf.mxu0  ;;  %v3343_v56 = vadd.f32 %v1764_v45, %v1478_v13 }
 0x268   : > { %v1020_v26 = vpop.f32.mrf.mxu1 }
 0x269   : > { %v1158_v6 = vadd.f32 %v3122_v40, %v1020_v26 }
 0x26b   : > { %v1479_v61 = vadd.f32 %v1445_v19, %v1158_v6 }
 0x26d   : > { %v1832_v47 = vpop.f32.mrf.mxu0  ;;  %v3346_v36 = vadd.f32 %v1766_v20, %v1479_v61  ;;  %v3588_v20 = vld [vmem:[#allocation8_spill] sm:$0xff] }
 0x26e   : > { %v3591_v61 = vld [vmem:[#allocation12_spill] sm:$0xff] }
 0x270   : > { %v1080_v35 = vpop.f32.mrf.mxu1 }
 0x275   : > { %v1834_v28 = vpop.f32.mrf.mxu0 }
 0x276   : > { %v1837_v53 = vpack.c.bf16 %v1834_v28, %v1832_v47  ;;  %v3592_v28 = vld [vmem:[#allocation13_spill] sm:$0xff] }
 0x278   : > { %1845 = vmatpush.bf16.msra.mxu3 %v1837_v53 }
 0x27b   : > { %2552 = vmatmul.msk.bf16.vlgmr.msra.gmra.mxu3 %vm1310_vm4, %v2946_v51  ;;  %v1082_v51 = vpop.f32.mrf.mxu1 }
 0x28b   : > { %2553 = vmatmul.msk.bf16.gmra.mxu3 %vm1310_vm4, %v2969_v7  ;;  %v1081_v7 = vadd.f32 %v1080_v35, %v3116_v37  ;;  %v3593_v35 = vld [vmem:[#allocation6_spill] sm:$0xff] }
 0x28d   : > { %v1448_v40 = vadd.f32 %v3143_v46, %v1081_v7 }
 0x29b   : > { %2554 = vmatmul.msk.bf16.gmra.mxu3 %vm1310_vm4, %v2990_v54  ;;  %v1085_v54 = vpop.f32.mrf.mxu1 }
 0x2a3   : > { %v1087_v50 = vpop.f32.mrf.mxu1 }
 0x2a4   : > { %v1088_v29 = vadd.f32 %v1087_v50, %v3158_v9 }
 0x2a6   : > { %v1451_v60 = vadd.f32 %v3183_v8, %v1088_v29  ;;  %v3590_v8 = vld [vmem:[#allocation10_spill] sm:$0xff] }
 0x2a8   : > { %v1772_v33 = vadd.f32 %v3587_v21, %v1451_v60 }
 0x2ab   : > { %2555 = vmatmul.msk.bf16.gmra.mxu3 %vm1310_vm4, %v3009_v58  ;;  %v1083_v58 = vadd.f32 %v1082_v51, %v3124_v41  ;;  %v1090_v18 = vpop.f32.mrf.mxu1 }
 0x2ac   : > { %v1091_v26 = vadd.f32 %v1090_v18, %v3588_v20 }
 0x2ae   : > { %v1452_v47 = vadd.f32 %v3591_v61, %v1091_v26 }
 0x2b0   : > { %v1773_v51 = vadd.f32 %v3593_v35, %v1452_v47  ;;  %v3601_v47 = vld [vmem:[#allocation18_spill] sm:$0xff]  ;;  %v3602_v35 = vld [vmem:[#allocation21_spill] sm:$0xff] }
 0x2b3   : > { %v1092_v9 = vpop.f32.mrf.mxu1 }
 0x2b4   : > { %v1093_v19 = vadd.f32 %v1092_v9, %v3590_v8  ;;  %v3598_v9 = vld [vmem:[#allocation16_spill] sm:$0xff] }
 0x2b6   : > { %v1453_v53 = vadd.f32 %v3592_v28, %v1093_v19 }
 0x2bb   : > { %2556 = vmatmul.msk.bf16.gmra.mxu3 %vm1310_vm4, %v3028_v63 }
 0x2cb   : > { %2557 = vmatmul.msk.bf16.gmra.mxu3 %vm1310_vm4, %v3050_v14  ;;  %v1449_v14 = vadd.f32 %v3156_v52, %v1083_v58  ;;  %v1086_v52 = vadd.f32 %v1085_v54, %v3150_v49  ;;  %v3594_v54 = vld [vmem:[#allocation9_spill] sm:$0xff] }
 0x2cc   : > { %v1774_v58 = vadd.f32 %v3594_v54, %v1453_v53 }
 0x2cd   : > { %v1770_v37 = vadd.f32 %v3120_v38, %v1449_v14  ;;  %v1450_v23 = vadd.f32 %v3170_v59, %v1086_v52  ;;  %v3589_v59 = vld [vmem:[#allocation3_spill] sm:$0xff] }
 0x2cf   : > { %v1771_v17 = vadd.f32 %v3136_v44, %v1450_v23  ;;  %v3596_v23 = vld [vmem:[#allocation7_spill] sm:$0xff] }
 0x2db   : > { %2558 = vmatmul.msk.bf16.gmra.mxu3 %vm1310_vm4, %v3069_v22  ;;  %v1769_v22 = vadd.f32 %v3102_v32, %v1448_v40 }
 0x2eb   : > { %2559 = vmatmul.msk.bf16.gmra.mxu3 %vm1310_vm4, %v3095_v30  ;;  %v3374_v30 = vld [vmem:[%s3550_s10] ss:$0 sm:$0xff] }
 0x2fb   : > { %2560 = vmatmul.msk.bf16.gmra.mxu3 %vm1310_vm4, %v3129_v42 }
 0x2fe   : > { %v1847_v63 = vpop.f32.mrf.mxu3 }
 0x2ff   : > { %v1927_v12 = vadd.f32 %v1847_v63, %v1769_v22 }
 0x301   : > { %v3378_v41 = vadd.f32 %v3374_v30, %v1927_v12  ;;  %v3595_v12 = vld [vmem:[#allocation4_spill] sm:$0xff] }
 0x306   : > { %v1849_v42 = vpop.f32.mrf.mxu3 }
 0x307   : > { %v1928_v57 = vadd.f32 %v1849_v42, %v1770_v37 }
 0x309   : > { %v3381_v46 = vadd.f32 %v3374_v30, %v1928_v57 }
 0x30b   : > { %2561 = vmatmul.msk.bf16.gmra.mxu3 %vm1310_vm4, %v3079_v25  ;;  %v1996_v32 = vpack.c.bf16 %v3381_v46, %v3378_v41 }
 0x30e   : > { %v1852_v38 = vpop.f32.mrf.mxu3 }
 0x30f   : > { %v1929_v45 = vadd.f32 %v1852_v38, %v1771_v17 }
 0x311   : > { %v3394_v25 = vadd.f32 %v3374_v30, %v1929_v45 }
 0x316   : > { %v1854_v49 = vpop.f32.mrf.mxu3 }
 0x317   : > { %v1930_v62 = vadd.f32 %v1854_v49, %v1772_v33  ;;  %v3597_v49 = vld [vmem:[#allocation11_spill] sm:$0xff] }
 0x319   : > { %v3397_v13 = vadd.f32 %v3374_v30, %v1930_v62 }
 0x31b   : > { %2562 = vmatmul.msk.bf16.gmra.mxu3 %vm1310_vm4, %v3589_v59  ;;  %v1997_v44 = vpack.c.bf16 %v3397_v13, %v3394_v25  ;;  %v3599_v59 = vld [vmem:[#allocation17_spill] sm:$0xff] }
 0x31e   : > { %v1857_v6 = vpop.f32.mrf.mxu3 }
 0x31f   : > { %v1931_v7 = vadd.f32 %v1857_v6, %v1773_v51  ;;  %v3600_v6 = vld [vmem:[#allocation14_spill] sm:$0xff] }
 0x321   : > { %v3410_v14 = vadd.f32 %v3374_v30, %v1931_v7 }
 0x326   : > { %v1859_v63 = vpop.f32.mrf.mxu3 }
 0x327   : > { %v1932_v40 = vadd.f32 %v1859_v63, %v1774_v58  ;;  %v3603_v58 = vld [vmem:[#allocation15_spill] sm:$0xff] }
 0x329   : > { %v3413_v22 = vadd.f32 %v3374_v30, %v1932_v40  ;;  %v3604_v40 = vld [vmem:[#allocation20_spill] sm:$0xff] }
 0x32b   : > { %2563 = vmatmul.msk.bf16.gmra.mxu3 %vm1310_vm4, %v3595_v12  ;;  %v1998_v37 = vpack.c.bf16 %v3413_v22, %v3410_v14  ;;  %v3605_v12 = vld [vmem:[#allocation2_spill] sm:$0xff]  ;;  %v2022_v22 = vsel %vm1179_vm0, %v1996_v32, 0 }
 0x32e   : > { %v1862_v50 = vpop.f32.mrf.mxu3 }
 0x32f   : > { %v1933_v42 = vadd.f32 %v1862_v50, %v3221_v43  ;;  %v1118_v50 = vadd.f32 %v3605_v12, %v3604_v40 }
 0x331   : > { %v1969_v29 = vadd.f32 %v3374_v30, %v1933_v42 }
 0x336   : > { %v1864_v57 = vpop.f32.mrf.mxu3 }
 0x337   : > { %v1934_v52 = vadd.f32 %v1864_v57, %v3225_v0  ;;  %v3606_v57 = vld [vmem:[#allocation23_spill] sm:$0xff] }
 0x339   : > { %v1970_v38 = vadd.f32 %v3374_v30, %v1934_v52  ;;  %v1463_v52 = vadd.f32 %v3606_v57, %v1118_v50 }
 0x33b   : > { %2564 = vmatmul.msk.bf16.gmra.mxu3 %vm1310_vm4, %v3596_v23  ;;  %v1999_v18 = vpack.c.bf16 %v1970_v38, %v1969_v29  ;;  %v3607_v29 = vld [vmem:[#allocation22_spill] sm:$0xff]  ;;  %v3608_v23 = vld [vmem:[#allocation19_spill] sm:$0xff] }
 0x33e   : > { %v1867_v60 = vpop.f32.mrf.mxu3 }
 0x33f   : > { %v1935_v17 = vadd.f32 %v1867_v60, %v3245_v31  ;;  %v1784_v60 = vadd.f32 %v3608_v23, %v1463_v52 }
 0x341   : > { %v1971_v33 = vadd.f32 %v3374_v30, %v1935_v17 }
 0x346   : > { %v1869_v45 = vpop.f32.mrf.mxu3 }
 0x347   : > { %v1936_v21 = vadd.f32 %v1869_v45, %v3249_v27 }
 0x349   : > { %v1972_v43 = vadd.f32 %v3374_v30, %v1936_v21 }
 0x34b   : > { %2565 = vmatmul.msk.bf16.gmra.mxu3 %vm1310_vm4, %v3597_v49  ;;  %v2000_v0 = vpack.c.bf16 %v1972_v43, %v1971_v33 }
 0x34e   : > { %v1872_v62 = vpop.f32.mrf.mxu3 }
 0x34f   : > { %v1937_v20 = vadd.f32 %v1872_v62, %v3598_v9 }
 0x351   : > { %v1973_v19 = vadd.f32 %v3374_v30, %v1937_v20 }
 0x356   : > { %v1874_v26 = vpop.f32.mrf.mxu3 }
 0x357   : > { %v1938_v8 = vadd.f32 %v1874_v26, %v3599_v59 }
 0x359   : > { %v1974_v31 = vadd.f32 %v3374_v30, %v1938_v8 }
 0x35b   : > { %2566 = vmatmul.msk.bf16.gmra.mxu3 %vm1310_vm4, %v3600_v6  ;;  %v2001_v27 = vpack.c.bf16 %v1974_v31, %v1973_v19 }
 0x35d   : > { %v2037_v6 = vsel %vm1179_vm0, %v2001_v27, 0  ;;  %v2031_v27 = vsel %vm1179_vm0, %v1999_v18, 0  ;;  %v2025_v18 = vsel %vm1179_vm0, %v1997_v44, 0 }
 0x35e   : > { %v1877_v61 = vpop.f32.mrf.mxu3 }
 0x35f   : > { %v1939_v28 = vadd.f32 %v1877_v61, %v3601_v47  ;;  %v2034_v47 = vsel %vm1179_vm0, %v2000_v0, 0 }
 0x361   : > { %v1975_v7 = vadd.f32 %v3374_v30, %v1939_v28 }
 0x366   : > { %v1879_v53 = vpop.f32.mrf.mxu3 }
 0x367   : > { %v1940_v51 = vadd.f32 %v1879_v53, %v3602_v35 }
 0x369   : > { %v1976_v54 = vadd.f32 %v3374_v30, %v1940_v51 }
 0x36b   : > { %2567 = vmatmul.msk.bf16.gmra.mxu3 %vm1310_vm4, %v3603_v58  ;;  %v2002_v63 = vpack.c.bf16 %v1976_v54, %v1975_v7 }
 0x36d   : > { %v2040_v20 = vsel %vm1179_vm0, %v2002_v63, 0 }
 0x36e   : > { %v1882_v42 = vpop.f32.mrf.mxu3 }
 0x36f   : > { %v1941_v38 = vadd.f32 %v1882_v42, %v3607_v29 }
 0x371   : > { %v1977_v21 = vadd.f32 %v3374_v30, %v1941_v38 }
 0x376   : > { %v1884_v17 = vpop.f32.mrf.mxu3 }
 0x377   : > { %v1942_v45 = vadd.f32 %v1884_v17, %v1784_v60 }
 0x379   : > { %v1978_v33 = vadd.f32 %v3374_v30, %v1942_v45 }
 0x37b   : > { %v2003_v43 = vpack.c.bf16 %v1978_v33, %v1977_v21 }
 0x37d   : > { %v2043_v49 = vsel %vm1179_vm0, %v2003_v43, 0 }
 0x37e   : > { %v1887_v62 = vpop.f32.mrf.mxu3  ;;  %2069 = vmatpush.bf16.xpose.msra.mxu2 %v2043_v49 }
 0x37f   : > { %v1943_v9 = vadd.f32 %v1887_v62, %v3300_v1 }
 0x381   : > { %v3455_v8 = vadd.f32 %v3374_v30, %v1943_v9 }
 0x386   : > { %v1889_v26 = vpop.f32.mrf.mxu3  ;;  %2070 = vmatpush.bf16.xpose.msra.mxu2 %v2040_v20 }
 0x387   : > { %v1944_v59 = vadd.f32 %v1889_v26, %v3306_v16 }
 0x389   : > { %v3458_v19 = vadd.f32 %v3374_v30, %v1944_v59 }
 0x38b   : > { %v2004_v31 = vpack.c.bf16 %v3458_v19, %v3455_v8 }
 0x38e   : > { %v1892_v61 = vpop.f32.mrf.mxu3  ;;  %2071 = vmatpush.bf16.xpose.msra.mxu2 %v2037_v6  ;;  %v2012_v6 = vld [vmem:[%s3555_s15] sm:$0x7] }
 0x38f   : > { %v1945_v1 = vadd.f32 %v1892_v61, %v3303_v3  ;;  %v2675_v61 = vmov 0  }
 0x390   : > { %2665 = vset.pattern.permute.xlu0 %v2675_v61 }
 0x391   : > { %v3467_v53 = vadd.f32 %v3374_v30, %v1945_v1  ;;  %2015 = vperm.xlu0 %2665, %v2012_v6  }
 0x396   : > { %v1894_v28 = vpop.f32.mrf.mxu3  ;;  %2072 = vmatpush.bf16.xpose.msra.mxu2 %v2034_v47 }
 0x397   : > { %v1946_v16 = vadd.f32 %v1894_v28, %v3310_v4  ;;  %v2028_v4 = vsel %vm1179_vm0, %v1998_v37, 0  ;;  %v2046_v28 = vsel %vm1179_vm0, %v2004_v31, 0 }
 0x399   : > { %v3470_v35 = vadd.f32 %v3374_v30, %v1946_v16 }
 0x39b   : > { %v2005_v51 = vpack.c.bf16 %v3470_v35, %v3467_v53 }
 0x39d   : > { %v2049_v47 = vsel %vm1179_vm0, %v2005_v51, 0 }
 0x39e   : > { %v1897_v7 = vpop.f32.mrf.mxu3  ;;  %2073 = vmatpush.bf16.xpose.msra.mxu2 %v2031_v27 }
 0x39f   : > { %v1947_v3 = vadd.f32 %v1897_v7, %v3313_v10 }
 0x3a1   : > { %v1983_v58 = vadd.f32 %v3374_v30, %v1947_v3 }
 0x3a6   : > { %v1899_v0 = vpop.f32.mrf.mxu3  ;;  %2074 = vmatpush.bf16.xpose.msra.mxu2 %v2028_v4 }
 0x3a7   : > { %v1948_v54 = vadd.f32 %v1899_v0, %v3316_v24 }
 0x3a9   : > { %v1984_v63 = vadd.f32 %v3374_v30, %v1948_v54 }
 0x3ab   : > { %v2006_v40 = vpack.c.bf16 %v1984_v63, %v1983_v58 }
 0x3ad   : > { %v2052_v1 = vsel %vm1179_vm0, %v2006_v40, 0 }
 0x3ae   : > { %v1902_v10 = vpop.f32.mrf.mxu3  ;;  %2075 = vmatpush.bf16.xpose.msra.mxu2 %v2025_v18 }
 0x3af   : > { %v1949_v14 = vadd.f32 %v1902_v10, %v3319_v55 }
 0x3b1   : > { %v1985_v12 = vadd.f32 %v3374_v30, %v1949_v14 }
 0x3b6   : > { %v1904_v24 = vpop.f32.mrf.mxu3  ;;  %2076 = vmatpush.bf16.xpose.msra.mxu2 %v2022_v22 }
 0x3b7   : > { %v1950_v37 = vadd.f32 %v1904_v24, %v3322_v5 }
 0x3b9   : > { %v1986_v50 = vadd.f32 %v3374_v30, %v1950_v37 }
 0x3bb   : > { %v2007_v25 = vpack.c.bf16 %v1986_v50, %v1985_v12 }
 0x3be   : > { %v1907_v13 = vpop.f32.mrf.mxu3 }
 0x3bf   : > { %v1951_v44 = vadd.f32 %v1907_v13, %v3325_v48 }
 0x3c1   : > { %v1987_v57 = vadd.f32 %v3374_v30, %v1951_v44 }
 0x3c6   : > { %v1909_v42 = vpop.f32.mrf.mxu3 }
 0x3c7   : > { %v1952_v55 = vadd.f32 %v1909_v42, %v3328_v11 }
 0x3c9   : > { %v1988_v41 = vadd.f32 %v3374_v30, %v1952_v55 }
 0x3cb   : > { %v2008_v46 = vpack.c.bf16 %v1988_v41, %v1987_v57 }
 0x3ce   : > { %v1912_v32 = vpop.f32.mrf.mxu3 }
 0x3cf   : > { %v1953_v52 = vadd.f32 %v1912_v32, %v3331_v2 }
 0x3d1   : > { %v1989_v38 = vadd.f32 %v3374_v30, %v1953_v52 }
 0x3d6   : > { %v1914_v5 = vpop.f32.mrf.mxu3 }
 0x3d7   : > { %v1954_v29 = vadd.f32 %v1914_v5, %v3334_v39 }
 0x3d9   : > { %v1990_v23 = vadd.f32 %v3374_v30, %v1954_v29 }
 0x3db   : > { %v2009_v60 = vpack.c.bf16 %v1990_v23, %v1989_v38 }
 0x3dd   : > { %v2061_v59 = vsel %vm1179_vm0, %v2009_v60, 0 }
 0x3de   : > { %v1917_v48 = vpop.f32.mrf.mxu3 }
 0x3df   : > { %v1955_v17 = vadd.f32 %v1917_v48, %v3337_v15 }
 0x3e1   : > { %v1991_v21 = vadd.f32 %v3374_v30, %v1955_v17 }
 0x3e6   : > { %v1919_v11 = vpop.f32.mrf.mxu3 }
 0x3e7   : > { %v1956_v45 = vadd.f32 %v1919_v11, %v3340_v34 }
 0x3e9   : > { %v1992_v33 = vadd.f32 %v3374_v30, %v1956_v45 }
 0x3eb   : > { %v2010_v43 = vpack.c.bf16 %v1992_v33, %v1991_v21 }
 0x3ed   : > { %v2064_v34 = vsel %vm1179_vm0, %v2010_v43, 0 }
 0x3ee   : > { %v1922_v2 = vpop.f32.mrf.mxu3 }
 0x3ef   : > { %v1957_v49 = vadd.f32 %v1922_v2, %v3343_v56  ;;  %v1995_v56 = vld [vmem:[%s3554_s14] sm:$0x3] }
 0x3f0   : > { %2568 = vmatmul.msk.bf16.vlgmr.msra.gmra.mxu2 %vm1179_vm0, %v1995_v56 }
 0x3f1   : > { %v1993_v9 = vadd.f32 %v3374_v30, %v1957_v49 }
 0x3f6   : > { %v1924_v39 = vpop.f32.mrf.mxu3 }
 0x3f7   : > { %v1958_v62 = vadd.f32 %v1924_v39, %v3346_v36  ;;  %v2058_v36 = vsel %vm1179_vm0, %v2008_v46, 0 }
 0x3f9   : > { %v1994_v20 = vadd.f32 %v3374_v30, %v1958_v62  ;;  %v2055_v30 = vsel %vm1179_vm0, %v2007_v25, 0 }
 0x3fb   : > { %v2011_v26 = vpack.c.bf16 %v1994_v20, %v1993_v9 }
 0x3fd   : > { %v2067_v15 = vsel %vm1179_vm0, %v2011_v26, 0 }
 0x3fe   : > { %2082 = vmatpush.bf16.xpose.msra.mxu1 %v2067_v15 }
 0x403   : > { %v2016_v7 = vpop.permute.xlu0 %2015 }
 0x406   : > { %2083 = vmatpush.bf16.xpose.msra.mxu1 %v2064_v34 }
 0x40e   : > { %2084 = vmatpush.bf16.xpose.msra.mxu1 %v2061_v59 }
 0x416   : > { %2085 = vmatpush.bf16.xpose.msra.mxu1 %v2058_v36 }
 0x41e   : > { %2086 = vmatpush.bf16.xpose.msra.mxu1 %v2055_v30 }
 0x426   : > { %2087 = vmatpush.bf16.xpose.msra.mxu1 %v2052_v1 }
 0x42e   : > { %2088 = vmatpush.bf16.xpose.msra.mxu1 %v2049_v47 }
 0x436   : > { %2089 = vmatpush.bf16.xpose.msra.mxu1 %v2046_v28 }
 0x43d   : > { %2569 = vmatmul.msk.bf16.vlgmr.msra.gmra.mxu1 %vm1179_vm0, %v1995_v56 }
 0x473   : > { %v2078_v16 = vpop.f32.mrf.mxu2 }
 0x474   : > { %v2079_v53 = vadd.f32 %v2078_v16, %v2016_v7 }
 0x47b   : > { %v2080_v27 = vpop.f32.mrf.mxu2 }
 0x4ba   : > { %v2091_v3 = vpop.f32.mrf.mxu1 }
 0x4bb   : > { %v2092_v4 = vadd.f32 %v2091_v3, %v2016_v7 }
 0x4bd   : > { %v2097_v35 = vrot.slane %v2092_v4, 4 }
 0x4bf   : > { %v2099_v51 = vsel %vm2098_vm5, %v2079_v53, %v2097_v35 }
 0x4c0   : > { %2101 = vst [vmem:[%s598_s29] sm:$0x77] %v2099_v51 }
 0x4c2   : > { %v2093_v8 = vpop.f32.mrf.mxu1 }
 0x4c3 PF: > { %s26_s21 = sadd.s32 1, %s2673_s21  }
 0x4c4   : > { %p23_p4 = scmp.ge.s32.totalorder %s26_s21, 4  }
 0x4c6   :  { %25 = sbr.rel (!%p23_p4) target bundleno = 2 (0x2), region = 126 }

</bundles_post_ra>
